<compile_context>
chip_gen: v7x
topology: tpu7x:2x2x1
jax: 0.10.0
libtpu: 0.0.40
codegen_flags: <defaults>
</compile_context>

<pallas_src>
import jax
import jax.numpy as jnp
import numpy as np
from jax.experimental import pallas as pl
from jax.experimental.pallas import tpu as pltpu


# ----------------------------------------------------------------------------
# Fused Pallas kernel: one grid step == one batch element.
# ----------------------------------------------------------------------------
def _ca_block_kernel(x_ref, p_ref, m1_ref, b1_ref, m2_ref, b2_ref,
                     g1_ref, sb1_ref, w2_ref, sb2_ref, o_ref):
    x = x_ref[0].astype(jnp.float32)                        # (DH, WC)

    def conv3x3x3(v, m_ref, b_ref):
        acc = jnp.zeros(v.shape, jnp.float32)
        for t in range(9):                                  # static unroll: (kd, kh) taps
            shifted = jnp.dot(p_ref[t], v,                  # D/H shift w/ zero pad
                              preferred_element_type=jnp.float32)
            acc = acc + jnp.dot(shifted, m_ref[t],          # W shift + C mixing
                                preferred_element_type=jnp.float32)
        return acc + b_ref[...]                             # bias, broadcast (1, WC)

    # res = relu(conv1(x)) + x
    r = jnp.maximum(conv3x3x3(x, m1_ref, b1_ref), 0.0) + x
    # res = conv2(res)
    r2 = conv3x3x3(r, m2_ref, b2_ref)

    # Channel attention: GAP -> 1x1x1 conv MLP -> sigmoid gate, then final +x.
    rowsum = jnp.sum(r2, axis=0, keepdims=True)             # (1, WC)  sum over D*H
    h = jnp.sum(g1_ref[...] * rowsum, axis=1, keepdims=True)  # (Cr, 1)  (1/S and W-sum folded into g1)
    h = jnp.maximum(h + sb1_ref[...], 0.0)                  # ReLU
    y = jnp.sum(w2_ref[...] * h, axis=0, keepdims=True)     # (1, WC)
    y = jax.nn.sigmoid(y + sb2_ref[...])                    # per-channel gate, tiled over W

    o_ref[0] = (r2 * y + x).astype(o_ref.dtype)


# ----------------------------------------------------------------------------
# Host-side construction of the shift / lane-mixing matrices (static).
# ----------------------------------------------------------------------------
def _shift_mats(D, H):
    """P[t] @ v applies the (od, oh) = (t//3 - 1, t%3 - 1) shift over the
    flattened (D, H) row dim with zero padding at the D/H boundaries."""
    DH = D * H
    p = np.zeros((3, 3, DH, DH), np.float32)
    for od in (-1, 0, 1):
        for oh in (-1, 0, 1):
            for d in range(D):
                for h in range(H):
                    ds, hs = d + od, h + oh
                    if 0 <= ds < D and 0 <= hs < H:
                        p[od + 1, oh + 1, d * H + h, ds * H + hs] = 1.0
    return jnp.asarray(p.reshape(9, DH, DH))


def _lane_mats(w, W):
    """w: (C_out, C_in, 3, 3, 3) PyTorch conv weight.  Returns (9, W*C_in, W*C_out):
    for tap t = kd*3 + kh, a banded block matrix that applies the kw shift within
    the lane-flattened W axis (implicit zero padding at the W boundary) fused
    with the C_in -> C_out channel mixing."""
    mats = []
    for kd in range(3):
        for kh in range(3):
            m = None
            for kw in range(3):
                # band[w_src, w_dst] = 1  iff  w_src = w_dst + (kw - 1)
                band = jnp.asarray(np.eye(W, k=-(kw - 1), dtype=np.float32))
                blk = w[:, :, kd, kh, kw].T                 # (C_in, C_out)
                term = jnp.kron(band, blk)                  # (W*C_in, W*C_out)
                m = term if m is None else m + term
            mats.append(m)
    return jnp.stack(mats)


# ----------------------------------------------------------------------------
# Wrapper: layout glue + pallas_call.
# ----------------------------------------------------------------------------
def ca_block_3d(x_ncdhw, p):
    """Forward of CA_block_3D. Input/output: [N, C, D, H, W] float32."""
    N, C, D, H, W = x_ncdhw.shape
    DH, WC = D * H, W * C
    S = D * H * W
    Cr = p["du1_w"].shape[0]

    # NCDHW -> [N, D*H, W*C]  (channels-last; lane dim = W*C = 128 for C=16, W=8)
    x_l = jnp.transpose(x_ncdhw, (0, 2, 3, 4, 1)).reshape(N, DH, WC)

    shift = _shift_mats(D, H)                               # (9, DH, DH)
    m1 = _lane_mats(p["conv1_w"], W)                        # (9, WC, WC)
    m2 = _lane_mats(p["conv2_w"], W)
    b1 = jnp.tile(p["conv1_b"], W).reshape(1, WC)
    b2 = jnp.tile(p["conv2_b"], W).reshape(1, WC)
    # SE MLP weights laid out over the W*C lane dim; 1/S (GAP mean) folded in.
    g1 = (jnp.tile(p["du1_w"], (1, W)) / float(S)).astype(jnp.float32)   # (Cr, WC)
    sb1 = p["du1_b"].reshape(Cr, 1)
    w2 = jnp.tile(p["du2_w"].T, (1, W))                     # (Cr, WC)
    sb2 = jnp.tile(p["du2_b"], W).reshape(1, WC)

    def full(shp):
        return pl.BlockSpec(shp, lambda n, _s=shp: (0,) * len(_s))

    out = pl.pallas_call(
        _ca_block_kernel,
        out_shape=jax.ShapeDtypeStruct((N, DH, WC), x_ncdhw.dtype),
        grid=(N,),
        in_specs=[
            pl.BlockSpec((1, DH, WC), lambda n: (n, 0, 0)),   # x tile
            full((9, DH, DH)),                                # D/H shift mats
            full((9, WC, WC)),                                # conv1 lane mats
            full((1, WC)),                                    # conv1 bias (tiled)
            full((9, WC, WC)),                                # conv2 lane mats
            full((1, WC)),                                    # conv2 bias (tiled)
            full((Cr, WC)),                                   # SE layer-1 weight
            full((Cr, 1)),                                    # SE layer-1 bias
            full((Cr, WC)),                                   # SE layer-2 weight
            full((1, WC)),                                    # SE layer-2 bias
        ],
        out_specs=pl.BlockSpec((1, DH, WC), lambda n: (n, 0, 0)),
        compiler_params=pltpu.CompilerParams(
            dimension_semantics=("parallel",)),
    )(x_l, shift, m1, b1, m2, b2, g1, sb1, w2, sb2)

    # TODO(synk): if callers can accept channels-last I/O, these two boundary
    # transposes (full-tensor HBM round trips) can be dropped entirely.
    return jnp.transpose(out.reshape(N, D, H, W, C), (0, 4, 1, 2, 3))


# ----------------------------------------------------------------------------
# Pure-JAX reference (correctness check only)
# ----------------------------------------------------------------------------
def reference(x, p):
    def conv3(z, w, b):
        out = jax.lax.conv_general_dilated(
            z, w, window_strides=(1, 1, 1), padding="SAME",
            dimension_numbers=("NCDHW", "OIDHW", "NCDHW"))
        return out + b[None, :, None, None, None]

    r = jax.nn.relu(conv3(x, p["conv1_w"], p["conv1_b"])) + x
    r = conv3(r, p["conv2_w"], p["conv2_b"])
    m = jnp.mean(r, axis=(2, 3, 4))                          # (N, C)
    h = jax.nn.relu(m @ p["du1_w"].T + p["du1_b"])           # (N, Cr)
    y = jax.nn.sigmoid(h @ p["du2_w"].T + p["du2_b"])        # (N, C)
    return r * y[:, :, None, None, None] + x


# ----------------------------------------------------------------------------
# Main
# ----------------------------------------------------------------------------
if __name__ == "__main__":
    N, C, D, H, W = 2, 16, 8, 8, 8
    reduction = 8
    Cr = C // reduction

    key = jax.random.PRNGKey(0)
    ks = jax.random.split(key, 9)
    x = jax.random.normal(ks[0], (N, C, D, H, W), jnp.float32)

    params = dict(
        conv1_w=jax.random.normal(ks[1], (C, C, 3, 3, 3), jnp.float32) * 0.05,
        conv1_b=jax.random.normal(ks[2], (C,), jnp.float32) * 0.05,
        conv2_w=jax.random.normal(ks[3], (C, C, 3, 3, 3), jnp.float32) * 0.05,
        conv2_b=jax.random.normal(ks[4], (C,), jnp.float32) * 0.05,
        du1_w=jax.random.normal(ks[5], (Cr, C), jnp.float32) * 0.2,   # 1x1x1 conv C->Cr
        du1_b=jax.random.normal(ks[6], (Cr,), jnp.float32) * 0.1,
        du2_w=jax.random.normal(ks[7], (C, Cr), jnp.float32) * 0.2,   # 1x1x1 conv Cr->C
        du2_b=jax.random.normal(ks[8], (C,), jnp.float32) * 0.1,
    )

    out = jax.block_until_ready(jax.jit(ca_block_3d)(x, params))
    ref = jax.block_until_ready(reference(x, params))
    np.testing.assert_allclose(np.asarray(out), np.asarray(ref),
                               rtol=2e-3, atol=2e-3)
    print("KERNEL_OK")
</pallas_src>

<mosaic_0001>
module attributes {stable_mosaic.version = 11 : i64} {
  func.func @_ca_block_kernel(%arg0: i32, %arg1: memref<1x64x128xf32, #tpu.memory_space<vmem>>, %arg2: memref<9x64x64xf32, #tpu.memory_space<vmem>>, %arg3: memref<9x128x128xf32, #tpu.memory_space<vmem>>, %arg4: memref<1x128xf32, #tpu.memory_space<vmem>>, %arg5: memref<9x128x128xf32, #tpu.memory_space<vmem>>, %arg6: memref<1x128xf32, #tpu.memory_space<vmem>>, %arg7: memref<2x128xf32, #tpu.memory_space<vmem>>, %arg8: memref<2x1xf32, #tpu.memory_space<vmem>>, %arg9: memref<2x128xf32, #tpu.memory_space<vmem>>, %arg10: memref<1x128xf32, #tpu.memory_space<vmem>>, %arg11: memref<1x64x128xf32, #tpu.memory_space<vmem>>) attributes {dimension_semantics = [#tpu.dimension_semantics<parallel>], iteration_bounds = array<i64: 2>, scalar_prefetch = 0 : i64, scratch_operands = 0 : i64, tpu.core_type = #tpu.core_type<tc>, window_params = [{transform_indices = @transform_0, window_bounds = array<i64: 1, 64, 128>}, {pipeline_mode = #tpu.pipeline_mode<synchronous>, transform_indices = @transform_1, window_bounds = array<i64: 9, 64, 64>}, {pipeline_mode = #tpu.pipeline_mode<synchronous>, transform_indices = @transform_2, window_bounds = array<i64: 9, 128, 128>}, {pipeline_mode = #tpu.pipeline_mode<synchronous>, transform_indices = @transform_3, window_bounds = array<i64: 1, 128>}, {pipeline_mode = #tpu.pipeline_mode<synchronous>, transform_indices = @transform_4, window_bounds = array<i64: 9, 128, 128>}, {pipeline_mode = #tpu.pipeline_mode<synchronous>, transform_indices = @transform_5, window_bounds = array<i64: 1, 128>}, {pipeline_mode = #tpu.pipeline_mode<synchronous>, transform_indices = @transform_6, window_bounds = array<i64: 2, 128>}, {pipeline_mode = #tpu.pipeline_mode<synchronous>, transform_indices = @transform_7, window_bounds = array<i64: 2, 1>}, {pipeline_mode = #tpu.pipeline_mode<synchronous>, transform_indices = @transform_8, window_bounds = array<i64: 2, 128>}, {pipeline_mode = #tpu.pipeline_mode<synchronous>, transform_indices = @transform_9, window_bounds = array<i64: 1, 128>}, {transform_indices = @transform_10, window_bounds = array<i64: 1, 64, 128>}]} {
    %c0 = arith.constant 0 : index
    %c0_0 = arith.constant 0 : index
    %c0_1 = arith.constant 0 : index
    %0 = vector.load %arg1[%c0, %c0_0, %c0_1] : memref<1x64x128xf32, #tpu.memory_space<vmem>>, vector<1x64x128xf32>
    %1 = vector.shape_cast %0 : vector<1x64x128xf32> to vector<64x128xf32>
    %cst = arith.constant 0.000000e+00 : f32
    %2 = vector.broadcast %cst : f32 to vector<64x128xf32>
    %c0_2 = arith.constant 0 : index
    %c0_3 = arith.constant 0 : index
    %c0_4 = arith.constant 0 : index
    %3 = vector.load %arg2[%c0_2, %c0_3, %c0_4] : memref<9x64x64xf32, #tpu.memory_space<vmem>>, vector<1x64x64xf32>
    %4 = vector.shape_cast %3 : vector<1x64x64xf32> to vector<64x64xf32>
    %cst_5 = arith.constant dense<0.000000e+00> : vector<64x128xf32>
    %5 = tpu.matmul %4, %1, %cst_5 {dimension_numbers = #tpu.dot_dimension_numbers<[1], [0], [0], [1], [0, 0, 1, 1], [], []>} : vector<64x64xf32>, vector<64x128xf32>, vector<64x128xf32> -> vector<64x128xf32>
    %c0_6 = arith.constant 0 : index
    %c0_7 = arith.constant 0 : index
    %c0_8 = arith.constant 0 : index
    %6 = vector.load %arg3[%c0_6, %c0_7, %c0_8] : memref<9x128x128xf32, #tpu.memory_space<vmem>>, vector<1x128x128xf32>
    %7 = vector.shape_cast %6 : vector<1x128x128xf32> to vector<128x128xf32>
    %cst_9 = arith.constant dense<0.000000e+00> : vector<64x128xf32>
    %8 = tpu.matmul %5, %7, %cst_9 {dimension_numbers = #tpu.dot_dimension_numbers<[1], [0], [0], [1], [0, 0, 1, 1], [], []>} : vector<64x128xf32>, vector<128x128xf32>, vector<64x128xf32> -> vector<64x128xf32>
    %9 = arith.addf %2, %8 : vector<64x128xf32>
    %c1 = arith.constant 1 : index
    %c0_10 = arith.constant 0 : index
    %c0_11 = arith.constant 0 : index
    %10 = vector.load %arg2[%c1, %c0_10, %c0_11] : memref<9x64x64xf32, #tpu.memory_space<vmem>>, vector<1x64x64xf32>
    %11 = vector.shape_cast %10 : vector<1x64x64xf32> to vector<64x64xf32>
    %cst_12 = arith.constant dense<0.000000e+00> : vector<64x128xf32>
    %12 = tpu.matmul %11, %1, %cst_12 {dimension_numbers = #tpu.dot_dimension_numbers<[1], [0], [0], [1], [0, 0, 1, 1], [], []>} : vector<64x64xf32>, vector<64x128xf32>, vector<64x128xf32> -> vector<64x128xf32>
    %c1_13 = arith.constant 1 : index
    %c0_14 = arith.constant 0 : index
    %c0_15 = arith.constant 0 : index
    %13 = vector.load %arg3[%c1_13, %c0_14, %c0_15] : memref<9x128x128xf32, #tpu.memory_space<vmem>>, vector<1x128x128xf32>
    %14 = vector.shape_cast %13 : vector<1x128x128xf32> to vector<128x128xf32>
    %cst_16 = arith.constant dense<0.000000e+00> : vector<64x128xf32>
    %15 = tpu.matmul %12, %14, %cst_16 {dimension_numbers = #tpu.dot_dimension_numbers<[1], [0], [0], [1], [0, 0, 1, 1], [], []>} : vector<64x128xf32>, vector<128x128xf32>, vector<64x128xf32> -> vector<64x128xf32>
    %16 = arith.addf %9, %15 : vector<64x128xf32>
    %c2 = arith.constant 2 : index
    %c0_17 = arith.constant 0 : index
    %c0_18 = arith.constant 0 : index
    %17 = vector.load %arg2[%c2, %c0_17, %c0_18] : memref<9x64x64xf32, #tpu.memory_space<vmem>>, vector<1x64x64xf32>
    %18 = vector.shape_cast %17 : vector<1x64x64xf32> to vector<64x64xf32>
    %cst_19 = arith.constant dense<0.000000e+00> : vector<64x128xf32>
    %19 = tpu.matmul %18, %1, %cst_19 {dimension_numbers = #tpu.dot_dimension_numbers<[1], [0], [0], [1], [0, 0, 1, 1], [], []>} : vector<64x64xf32>, vector<64x128xf32>, vector<64x128xf32> -> vector<64x128xf32>
    %c2_20 = arith.constant 2 : index
    %c0_21 = arith.constant 0 : index
    %c0_22 = arith.constant 0 : index
    %20 = vector.load %arg3[%c2_20, %c0_21, %c0_22] : memref<9x128x128xf32, #tpu.memory_space<vmem>>, vector<1x128x128xf32>
    %21 = vector.shape_cast %20 : vector<1x128x128xf32> to vector<128x128xf32>
    %cst_23 = arith.constant dense<0.000000e+00> : vector<64x128xf32>
    %22 = tpu.matmul %19, %21, %cst_23 {dimension_numbers = #tpu.dot_dimension_numbers<[1], [0], [0], [1], [0, 0, 1, 1], [], []>} : vector<64x128xf32>, vector<128x128xf32>, vector<64x128xf32> -> vector<64x128xf32>
    %23 = arith.addf %16, %22 : vector<64x128xf32>
    %c3 = arith.constant 3 : index
    %c0_24 = arith.constant 0 : index
    %c0_25 = arith.constant 0 : index
    %24 = vector.load %arg2[%c3, %c0_24, %c0_25] : memref<9x64x64xf32, #tpu.memory_space<vmem>>, vector<1x64x64xf32>
    %25 = vector.shape_cast %24 : vector<1x64x64xf32> to vector<64x64xf32>
    %cst_26 = arith.constant dense<0.000000e+00> : vector<64x128xf32>
    %26 = tpu.matmul %25, %1, %cst_26 {dimension_numbers = #tpu.dot_dimension_numbers<[1], [0], [0], [1], [0, 0, 1, 1], [], []>} : vector<64x64xf32>, vector<64x128xf32>, vector<64x128xf32> -> vector<64x128xf32>
    %c3_27 = arith.constant 3 : index
    %c0_28 = arith.constant 0 : index
    %c0_29 = arith.constant 0 : index
    %27 = vector.load %arg3[%c3_27, %c0_28, %c0_29] : memref<9x128x128xf32, #tpu.memory_space<vmem>>, vector<1x128x128xf32>
    %28 = vector.shape_cast %27 : vector<1x128x128xf32> to vector<128x128xf32>
    %cst_30 = arith.constant dense<0.000000e+00> : vector<64x128xf32>
    %29 = tpu.matmul %26, %28, %cst_30 {dimension_numbers = #tpu.dot_dimension_numbers<[1], [0], [0], [1], [0, 0, 1, 1], [], []>} : vector<64x128xf32>, vector<128x128xf32>, vector<64x128xf32> -> vector<64x128xf32>
    %30 = arith.addf %23, %29 : vector<64x128xf32>
    %c4 = arith.constant 4 : index
    %c0_31 = arith.constant 0 : index
    %c0_32 = arith.constant 0 : index
    %31 = vector.load %arg2[%c4, %c0_31, %c0_32] : memref<9x64x64xf32, #tpu.memory_space<vmem>>, vector<1x64x64xf32>
    %32 = vector.shape_cast %31 : vector<1x64x64xf32> to vector<64x64xf32>
    %cst_33 = arith.constant dense<0.000000e+00> : vector<64x128xf32>
    %33 = tpu.matmul %32, %1, %cst_33 {dimension_numbers = #tpu.dot_dimension_numbers<[1], [0], [0], [1], [0, 0, 1, 1], [], []>} : vector<64x64xf32>, vector<64x128xf32>, vector<64x128xf32> -> vector<64x128xf32>
    %c4_34 = arith.constant 4 : index
    %c0_35 = arith.constant 0 : index
    %c0_36 = arith.constant 0 : index
    %34 = vector.load %arg3[%c4_34, %c0_35, %c0_36] : memref<9x128x128xf32, #tpu.memory_space<vmem>>, vector<1x128x128xf32>
    %35 = vector.shape_cast %34 : vector<1x128x128xf32> to vector<128x128xf32>
    %cst_37 = arith.constant dense<0.000000e+00> : vector<64x128xf32>
    %36 = tpu.matmul %33, %35, %cst_37 {dimension_numbers = #tpu.dot_dimension_numbers<[1], [0], [0], [1], [0, 0, 1, 1], [], []>} : vector<64x128xf32>, vector<128x128xf32>, vector<64x128xf32> -> vector<64x128xf32>
    %37 = arith.addf %30, %36 : vector<64x128xf32>
    %c5 = arith.constant 5 : index
    %c0_38 = arith.constant 0 : index
    %c0_39 = arith.constant 0 : index
    %38 = vector.load %arg2[%c5, %c0_38, %c0_39] : memref<9x64x64xf32, #tpu.memory_space<vmem>>, vector<1x64x64xf32>
    %39 = vector.shape_cast %38 : vector<1x64x64xf32> to vector<64x64xf32>
    %cst_40 = arith.constant dense<0.000000e+00> : vector<64x128xf32>
    %40 = tpu.matmul %39, %1, %cst_40 {dimension_numbers = #tpu.dot_dimension_numbers<[1], [0], [0], [1], [0, 0, 1, 1], [], []>} : vector<64x64xf32>, vector<64x128xf32>, vector<64x128xf32> -> vector<64x128xf32>
    %c5_41 = arith.constant 5 : index
    %c0_42 = arith.constant 0 : index
    %c0_43 = arith.constant 0 : index
    %41 = vector.load %arg3[%c5_41, %c0_42, %c0_43] : memref<9x128x128xf32, #tpu.memory_space<vmem>>, vector<1x128x128xf32>
    %42 = vector.shape_cast %41 : vector<1x128x128xf32> to vector<128x128xf32>
    %cst_44 = arith.constant dense<0.000000e+00> : vector<64x128xf32>
    %43 = tpu.matmul %40, %42, %cst_44 {dimension_numbers = #tpu.dot_dimension_numbers<[1], [0], [0], [1], [0, 0, 1, 1], [], []>} : vector<64x128xf32>, vector<128x128xf32>, vector<64x128xf32> -> vector<64x128xf32>
    %44 = arith.addf %37, %43 : vector<64x128xf32>
    %c6 = arith.constant 6 : index
    %c0_45 = arith.constant 0 : index
    %c0_46 = arith.constant 0 : index
    %45 = vector.load %arg2[%c6, %c0_45, %c0_46] : memref<9x64x64xf32, #tpu.memory_space<vmem>>, vector<1x64x64xf32>
    %46 = vector.shape_cast %45 : vector<1x64x64xf32> to vector<64x64xf32>
    %cst_47 = arith.constant dense<0.000000e+00> : vector<64x128xf32>
    %47 = tpu.matmul %46, %1, %cst_47 {dimension_numbers = #tpu.dot_dimension_numbers<[1], [0], [0], [1], [0, 0, 1, 1], [], []>} : vector<64x64xf32>, vector<64x128xf32>, vector<64x128xf32> -> vector<64x128xf32>
    %c6_48 = arith.constant 6 : index
    %c0_49 = arith.constant 0 : index
    %c0_50 = arith.constant 0 : index
    %48 = vector.load %arg3[%c6_48, %c0_49, %c0_50] : memref<9x128x128xf32, #tpu.memory_space<vmem>>, vector<1x128x128xf32>
    %49 = vector.shape_cast %48 : vector<1x128x128xf32> to vector<128x128xf32>
    %cst_51 = arith.constant dense<0.000000e+00> : vector<64x128xf32>
    %50 = tpu.matmul %47, %49, %cst_51 {dimension_numbers = #tpu.dot_dimension_numbers<[1], [0], [0], [1], [0, 0, 1, 1], [], []>} : vector<64x128xf32>, vector<128x128xf32>, vector<64x128xf32> -> vector<64x128xf32>
    %51 = arith.addf %44, %50 : vector<64x128xf32>
    %c7 = arith.constant 7 : index
    %c0_52 = arith.constant 0 : index
    %c0_53 = arith.constant 0 : index
    %52 = vector.load %arg2[%c7, %c0_52, %c0_53] : memref<9x64x64xf32, #tpu.memory_space<vmem>>, vector<1x64x64xf32>
    %53 = vector.shape_cast %52 : vector<1x64x64xf32> to vector<64x64xf32>
    %cst_54 = arith.constant dense<0.000000e+00> : vector<64x128xf32>
    %54 = tpu.matmul %53, %1, %cst_54 {dimension_numbers = #tpu.dot_dimension_numbers<[1], [0], [0], [1], [0, 0, 1, 1], [], []>} : vector<64x64xf32>, vector<64x128xf32>, vector<64x128xf32> -> vector<64x128xf32>
    %c7_55 = arith.constant 7 : index
    %c0_56 = arith.constant 0 : index
    %c0_57 = arith.constant 0 : index
    %55 = vector.load %arg3[%c7_55, %c0_56, %c0_57] : memref<9x128x128xf32, #tpu.memory_space<vmem>>, vector<1x128x128xf32>
    %56 = vector.shape_cast %55 : vector<1x128x128xf32> to vector<128x128xf32>
    %cst_58 = arith.constant dense<0.000000e+00> : vector<64x128xf32>
    %57 = tpu.matmul %54, %56, %cst_58 {dimension_numbers = #tpu.dot_dimension_numbers<[1], [0], [0], [1], [0, 0, 1, 1], [], []>} : vector<64x128xf32>, vector<128x128xf32>, vector<64x128xf32> -> vector<64x128xf32>
    %58 = arith.addf %51, %57 : vector<64x128xf32>
    %c8 = arith.constant 8 : index
    %c0_59 = arith.constant 0 : index
    %c0_60 = arith.constant 0 : index
    %59 = vector.load %arg2[%c8, %c0_59, %c0_60] : memref<9x64x64xf32, #tpu.memory_space<vmem>>, vector<1x64x64xf32>
    %60 = vector.shape_cast %59 : vector<1x64x64xf32> to vector<64x64xf32>
    %cst_61 = arith.constant dense<0.000000e+00> : vector<64x128xf32>
    %61 = tpu.matmul %60, %1, %cst_61 {dimension_numbers = #tpu.dot_dimension_numbers<[1], [0], [0], [1], [0, 0, 1, 1], [], []>} : vector<64x64xf32>, vector<64x128xf32>, vector<64x128xf32> -> vector<64x128xf32>
    %c8_62 = arith.constant 8 : index
    %c0_63 = arith.constant 0 : index
    %c0_64 = arith.constant 0 : index
    %62 = vector.load %arg3[%c8_62, %c0_63, %c0_64] : memref<9x128x128xf32, #tpu.memory_space<vmem>>, vector<1x128x128xf32>
    %63 = vector.shape_cast %62 : vector<1x128x128xf32> to vector<128x128xf32>
    %cst_65 = arith.constant dense<0.000000e+00> : vector<64x128xf32>
    %64 = tpu.matmul %61, %63, %cst_65 {dimension_numbers = #tpu.dot_dimension_numbers<[1], [0], [0], [1], [0, 0, 1, 1], [], []>} : vector<64x128xf32>, vector<128x128xf32>, vector<64x128xf32> -> vector<64x128xf32>
    %65 = arith.addf %58, %64 : vector<64x128xf32>
    %c0_66 = arith.constant 0 : index
    %c0_67 = arith.constant 0 : index
    %66 = vector.load %arg4[%c0_66, %c0_67] : memref<1x128xf32, #tpu.memory_space<vmem>>, vector<1x128xf32>
    %67 = vector.broadcast %66 : vector<1x128xf32> to vector<64x128xf32>
    %68 = arith.addf %65, %67 : vector<64x128xf32>
    %cst_68 = arith.constant 0.000000e+00 : f32
    %69 = vector.broadcast %cst_68 : f32 to vector<64x128xf32>
    %70 = arith.maximumf %68, %69 : vector<64x128xf32>
    %71 = arith.addf %70, %1 : vector<64x128xf32>
    %cst_69 = arith.constant 0.000000e+00 : f32
    %72 = vector.broadcast %cst_69 : f32 to vector<64x128xf32>
    %c0_70 = arith.constant 0 : index
    %c0_71 = arith.constant 0 : index
    %c0_72 = arith.constant 0 : index
    %73 = vector.load %arg2[%c0_70, %c0_71, %c0_72] : memref<9x64x64xf32, #tpu.memory_space<vmem>>, vector<1x64x64xf32>
    %74 = vector.shape_cast %73 : vector<1x64x64xf32> to vector<64x64xf32>
    %cst_73 = arith.constant dense<0.000000e+00> : vector<64x128xf32>
    %75 = tpu.matmul %74, %71, %cst_73 {dimension_numbers = #tpu.dot_dimension_numbers<[1], [0], [0], [1], [0, 0, 1, 1], [], []>} : vector<64x64xf32>, vector<64x128xf32>, vector<64x128xf32> -> vector<64x128xf32>
    %c0_74 = arith.constant 0 : index
    %c0_75 = arith.constant 0 : index
    %c0_76 = arith.constant 0 : index
    %76 = vector.load %arg5[%c0_74, %c0_75, %c0_76] : memref<9x128x128xf32, #tpu.memory_space<vmem>>, vector<1x128x128xf32>
    %77 = vector.shape_cast %76 : vector<1x128x128xf32> to vector<128x128xf32>
    %cst_77 = arith.constant dense<0.000000e+00> : vector<64x128xf32>
    %78 = tpu.matmul %75, %77, %cst_77 {dimension_numbers = #tpu.dot_dimension_numbers<[1], [0], [0], [1], [0, 0, 1, 1], [], []>} : vector<64x128xf32>, vector<128x128xf32>, vector<64x128xf32> -> vector<64x128xf32>
    %79 = arith.addf %72, %78 : vector<64x128xf32>
    %c1_78 = arith.constant 1 : index
    %c0_79 = arith.constant 0 : index
    %c0_80 = arith.constant 0 : index
    %80 = vector.load %arg2[%c1_78, %c0_79, %c0_80] : memref<9x64x64xf32, #tpu.memory_space<vmem>>, vector<1x64x64xf32>
    %81 = vector.shape_cast %80 : vector<1x64x64xf32> to vector<64x64xf32>
    %cst_81 = arith.constant dense<0.000000e+00> : vector<64x128xf32>
    %82 = tpu.matmul %81, %71, %cst_81 {dimension_numbers = #tpu.dot_dimension_numbers<[1], [0], [0], [1], [0, 0, 1, 1], [], []>} : vector<64x64xf32>, vector<64x128xf32>, vector<64x128xf32> -> vector<64x128xf32>
    %c1_82 = arith.constant 1 : index
    %c0_83 = arith.constant 0 : index
    %c0_84 = arith.constant 0 : index
    %83 = vector.load %arg5[%c1_82, %c0_83, %c0_84] : memref<9x128x128xf32, #tpu.memory_space<vmem>>, vector<1x128x128xf32>
    %84 = vector.shape_cast %83 : vector<1x128x128xf32> to vector<128x128xf32>
    %cst_85 = arith.constant dense<0.000000e+00> : vector<64x128xf32>
    %85 = tpu.matmul %82, %84, %cst_85 {dimension_numbers = #tpu.dot_dimension_numbers<[1], [0], [0], [1], [0, 0, 1, 1], [], []>} : vector<64x128xf32>, vector<128x128xf32>, vector<64x128xf32> -> vector<64x128xf32>
    %86 = arith.addf %79, %85 : vector<64x128xf32>
    %c2_86 = arith.constant 2 : index
    %c0_87 = arith.constant 0 : index
    %c0_88 = arith.constant 0 : index
    %87 = vector.load %arg2[%c2_86, %c0_87, %c0_88] : memref<9x64x64xf32, #tpu.memory_space<vmem>>, vector<1x64x64xf32>
    %88 = vector.shape_cast %87 : vector<1x64x64xf32> to vector<64x64xf32>
    %cst_89 = arith.constant dense<0.000000e+00> : vector<64x128xf32>
    %89 = tpu.matmul %88, %71, %cst_89 {dimension_numbers = #tpu.dot_dimension_numbers<[1], [0], [0], [1], [0, 0, 1, 1], [], []>} : vector<64x64xf32>, vector<64x128xf32>, vector<64x128xf32> -> vector<64x128xf32>
    %c2_90 = arith.constant 2 : index
    %c0_91 = arith.constant 0 : index
    %c0_92 = arith.constant 0 : index
    %90 = vector.load %arg5[%c2_90, %c0_91, %c0_92] : memref<9x128x128xf32, #tpu.memory_space<vmem>>, vector<1x128x128xf32>
    %91 = vector.shape_cast %90 : vector<1x128x128xf32> to vector<128x128xf32>
    %cst_93 = arith.constant dense<0.000000e+00> : vector<64x128xf32>
    %92 = tpu.matmul %89, %91, %cst_93 {dimension_numbers = #tpu.dot_dimension_numbers<[1], [0], [0], [1], [0, 0, 1, 1], [], []>} : vector<64x128xf32>, vector<128x128xf32>, vector<64x128xf32> -> vector<64x128xf32>
    %93 = arith.addf %86, %92 : vector<64x128xf32>
    %c3_94 = arith.constant 3 : index
    %c0_95 = arith.constant 0 : index
    %c0_96 = arith.constant 0 : index
    %94 = vector.load %arg2[%c3_94, %c0_95, %c0_96] : memref<9x64x64xf32, #tpu.memory_space<vmem>>, vector<1x64x64xf32>
    %95 = vector.shape_cast %94 : vector<1x64x64xf32> to vector<64x64xf32>
    %cst_97 = arith.constant dense<0.000000e+00> : vector<64x128xf32>
    %96 = tpu.matmul %95, %71, %cst_97 {dimension_numbers = #tpu.dot_dimension_numbers<[1], [0], [0], [1], [0, 0, 1, 1], [], []>} : vector<64x64xf32>, vector<64x128xf32>, vector<64x128xf32> -> vector<64x128xf32>
    %c3_98 = arith.constant 3 : index
    %c0_99 = arith.constant 0 : index
    %c0_100 = arith.constant 0 : index
    %97 = vector.load %arg5[%c3_98, %c0_99, %c0_100] : memref<9x128x128xf32, #tpu.memory_space<vmem>>, vector<1x128x128xf32>
    %98 = vector.shape_cast %97 : vector<1x128x128xf32> to vector<128x128xf32>
    %cst_101 = arith.constant dense<0.000000e+00> : vector<64x128xf32>
    %99 = tpu.matmul %96, %98, %cst_101 {dimension_numbers = #tpu.dot_dimension_numbers<[1], [0], [0], [1], [0, 0, 1, 1], [], []>} : vector<64x128xf32>, vector<128x128xf32>, vector<64x128xf32> -> vector<64x128xf32>
    %100 = arith.addf %93, %99 : vector<64x128xf32>
    %c4_102 = arith.constant 4 : index
    %c0_103 = arith.constant 0 : index
    %c0_104 = arith.constant 0 : index
    %101 = vector.load %arg2[%c4_102, %c0_103, %c0_104] : memref<9x64x64xf32, #tpu.memory_space<vmem>>, vector<1x64x64xf32>
    %102 = vector.shape_cast %101 : vector<1x64x64xf32> to vector<64x64xf32>
    %cst_105 = arith.constant dense<0.000000e+00> : vector<64x128xf32>
    %103 = tpu.matmul %102, %71, %cst_105 {dimension_numbers = #tpu.dot_dimension_numbers<[1], [0], [0], [1], [0, 0, 1, 1], [], []>} : vector<64x64xf32>, vector<64x128xf32>, vector<64x128xf32> -> vector<64x128xf32>
    %c4_106 = arith.constant 4 : index
    %c0_107 = arith.constant 0 : index
    %c0_108 = arith.constant 0 : index
    %104 = vector.load %arg5[%c4_106, %c0_107, %c0_108] : memref<9x128x128xf32, #tpu.memory_space<vmem>>, vector<1x128x128xf32>
    %105 = vector.shape_cast %104 : vector<1x128x128xf32> to vector<128x128xf32>
    %cst_109 = arith.constant dense<0.000000e+00> : vector<64x128xf32>
    %106 = tpu.matmul %103, %105, %cst_109 {dimension_numbers = #tpu.dot_dimension_numbers<[1], [0], [0], [1], [0, 0, 1, 1], [], []>} : vector<64x128xf32>, vector<128x128xf32>, vector<64x128xf32> -> vector<64x128xf32>
    %107 = arith.addf %100, %106 : vector<64x128xf32>
    %c5_110 = arith.constant 5 : index
    %c0_111 = arith.constant 0 : index
    %c0_112 = arith.constant 0 : index
    %108 = vector.load %arg2[%c5_110, %c0_111, %c0_112] : memref<9x64x64xf32, #tpu.memory_space<vmem>>, vector<1x64x64xf32>
    %109 = vector.shape_cast %108 : vector<1x64x64xf32> to vector<64x64xf32>
    %cst_113 = arith.constant dense<0.000000e+00> : vector<64x128xf32>
    %110 = tpu.matmul %109, %71, %cst_113 {dimension_numbers = #tpu.dot_dimension_numbers<[1], [0], [0], [1], [0, 0, 1, 1], [], []>} : vector<64x64xf32>, vector<64x128xf32>, vector<64x128xf32> -> vector<64x128xf32>
    %c5_114 = arith.constant 5 : index
    %c0_115 = arith.constant 0 : index
    %c0_116 = arith.constant 0 : index
    %111 = vector.load %arg5[%c5_114, %c0_115, %c0_116] : memref<9x128x128xf32, #tpu.memory_space<vmem>>, vector<1x128x128xf32>
    %112 = vector.shape_cast %111 : vector<1x128x128xf32> to vector<128x128xf32>
    %cst_117 = arith.constant dense<0.000000e+00> : vector<64x128xf32>
    %113 = tpu.matmul %110, %112, %cst_117 {dimension_numbers = #tpu.dot_dimension_numbers<[1], [0], [0], [1], [0, 0, 1, 1], [], []>} : vector<64x128xf32>, vector<128x128xf32>, vector<64x128xf32> -> vector<64x128xf32>
    %114 = arith.addf %107, %113 : vector<64x128xf32>
    %c6_118 = arith.constant 6 : index
    %c0_119 = arith.constant 0 : index
    %c0_120 = arith.constant 0 : index
    %115 = vector.load %arg2[%c6_118, %c0_119, %c0_120] : memref<9x64x64xf32, #tpu.memory_space<vmem>>, vector<1x64x64xf32>
    %116 = vector.shape_cast %115 : vector<1x64x64xf32> to vector<64x64xf32>
    %cst_121 = arith.constant dense<0.000000e+00> : vector<64x128xf32>
    %117 = tpu.matmul %116, %71, %cst_121 {dimension_numbers = #tpu.dot_dimension_numbers<[1], [0], [0], [1], [0, 0, 1, 1], [], []>} : vector<64x64xf32>, vector<64x128xf32>, vector<64x128xf32> -> vector<64x128xf32>
    %c6_122 = arith.constant 6 : index
    %c0_123 = arith.constant 0 : index
    %c0_124 = arith.constant 0 : index
    %118 = vector.load %arg5[%c6_122, %c0_123, %c0_124] : memref<9x128x128xf32, #tpu.memory_space<vmem>>, vector<1x128x128xf32>
    %119 = vector.shape_cast %118 : vector<1x128x128xf32> to vector<128x128xf32>
    %cst_125 = arith.constant dense<0.000000e+00> : vector<64x128xf32>
    %120 = tpu.matmul %117, %119, %cst_125 {dimension_numbers = #tpu.dot_dimension_numbers<[1], [0], [0], [1], [0, 0, 1, 1], [], []>} : vector<64x128xf32>, vector<128x128xf32>, vector<64x128xf32> -> vector<64x128xf32>
    %121 = arith.addf %114, %120 : vector<64x128xf32>
    %c7_126 = arith.constant 7 : index
    %c0_127 = arith.constant 0 : index
    %c0_128 = arith.constant 0 : index
    %122 = vector.load %arg2[%c7_126, %c0_127, %c0_128] : memref<9x64x64xf32, #tpu.memory_space<vmem>>, vector<1x64x64xf32>
    %123 = vector.shape_cast %122 : vector<1x64x64xf32> to vector<64x64xf32>
    %cst_129 = arith.constant dense<0.000000e+00> : vector<64x128xf32>
    %124 = tpu.matmul %123, %71, %cst_129 {dimension_numbers = #tpu.dot_dimension_numbers<[1], [0], [0], [1], [0, 0, 1, 1], [], []>} : vector<64x64xf32>, vector<64x128xf32>, vector<64x128xf32> -> vector<64x128xf32>
    %c7_130 = arith.constant 7 : index
    %c0_131 = arith.constant 0 : index
    %c0_132 = arith.constant 0 : index
    %125 = vector.load %arg5[%c7_130, %c0_131, %c0_132] : memref<9x128x128xf32, #tpu.memory_space<vmem>>, vector<1x128x128xf32>
    %126 = vector.shape_cast %125 : vector<1x128x128xf32> to vector<128x128xf32>
    %cst_133 = arith.constant dense<0.000000e+00> : vector<64x128xf32>
    %127 = tpu.matmul %124, %126, %cst_133 {dimension_numbers = #tpu.dot_dimension_numbers<[1], [0], [0], [1], [0, 0, 1, 1], [], []>} : vector<64x128xf32>, vector<128x128xf32>, vector<64x128xf32> -> vector<64x128xf32>
    %128 = arith.addf %121, %127 : vector<64x128xf32>
    %c8_134 = arith.constant 8 : index
    %c0_135 = arith.constant 0 : index
    %c0_136 = arith.constant 0 : index
    %129 = vector.load %arg2[%c8_134, %c0_135, %c0_136] : memref<9x64x64xf32, #tpu.memory_space<vmem>>, vector<1x64x64xf32>
    %130 = vector.shape_cast %129 : vector<1x64x64xf32> to vector<64x64xf32>
    %cst_137 = arith.constant dense<0.000000e+00> : vector<64x128xf32>
    %131 = tpu.matmul %130, %71, %cst_137 {dimension_numbers = #tpu.dot_dimension_numbers<[1], [0], [0], [1], [0, 0, 1, 1], [], []>} : vector<64x64xf32>, vector<64x128xf32>, vector<64x128xf32> -> vector<64x128xf32>
    %c8_138 = arith.constant 8 : index
    %c0_139 = arith.constant 0 : index
    %c0_140 = arith.constant 0 : index
    %132 = vector.load %arg5[%c8_138, %c0_139, %c0_140] : memref<9x128x128xf32, #tpu.memory_space<vmem>>, vector<1x128x128xf32>
    %133 = vector.shape_cast %132 : vector<1x128x128xf32> to vector<128x128xf32>
    %cst_141 = arith.constant dense<0.000000e+00> : vector<64x128xf32>
    %134 = tpu.matmul %131, %133, %cst_141 {dimension_numbers = #tpu.dot_dimension_numbers<[1], [0], [0], [1], [0, 0, 1, 1], [], []>} : vector<64x128xf32>, vector<128x128xf32>, vector<64x128xf32> -> vector<64x128xf32>
    %135 = arith.addf %128, %134 : vector<64x128xf32>
    %c0_142 = arith.constant 0 : index
    %c0_143 = arith.constant 0 : index
    %136 = vector.load %arg6[%c0_142, %c0_143] : memref<1x128xf32, #tpu.memory_space<vmem>>, vector<1x128xf32>
    %137 = vector.broadcast %136 : vector<1x128xf32> to vector<64x128xf32>
    %138 = arith.addf %135, %137 : vector<64x128xf32>
    %cst_144 = arith.constant dense<0.000000e+00> : vector<128xf32>
    %139 = vector.multi_reduction <add>, %138, %cst_144 [0] : vector<64x128xf32> to vector<128xf32>
    %140 = vector.shape_cast %139 : vector<128xf32> to vector<1x128xf32>
    %c0_145 = arith.constant 0 : index
    %c0_146 = arith.constant 0 : index
    %141 = vector.load %arg7[%c0_145, %c0_146] : memref<2x128xf32, #tpu.memory_space<vmem>>, vector<2x128xf32>
    %142 = vector.broadcast %140 : vector<1x128xf32> to vector<2x128xf32>
    %143 = arith.mulf %141, %142 : vector<2x128xf32>
    %cst_147 = arith.constant dense<0.000000e+00> : vector<2xf32>
    %144 = vector.multi_reduction <add>, %143, %cst_147 [1] : vector<2x128xf32> to vector<2xf32>
    %145 = vector.shape_cast %144 : vector<2xf32> to vector<2x1xf32>
    %c0_148 = arith.constant 0 : index
    %c0_149 = arith.constant 0 : index
    %146 = vector.load %arg8[%c0_148, %c0_149] : memref<2x1xf32, #tpu.memory_space<vmem>>, vector<2x1xf32>
    %147 = arith.addf %145, %146 : vector<2x1xf32>
    %cst_150 = arith.constant 0.000000e+00 : f32
    %148 = vector.broadcast %cst_150 : f32 to vector<2x1xf32>
    %149 = arith.maximumf %147, %148 : vector<2x1xf32>
    %c0_151 = arith.constant 0 : index
    %c0_152 = arith.constant 0 : index
    %150 = vector.load %arg9[%c0_151, %c0_152] : memref<2x128xf32, #tpu.memory_space<vmem>>, vector<2x128xf32>
    %151 = vector.broadcast %149 : vector<2x1xf32> to vector<2x128xf32>
    %152 = arith.mulf %150, %151 : vector<2x128xf32>
    %cst_153 = arith.constant dense<0.000000e+00> : vector<128xf32>
    %153 = vector.multi_reduction <add>, %152, %cst_153 [0] : vector<2x128xf32> to vector<128xf32>
    %154 = vector.shape_cast %153 : vector<128xf32> to vector<1x128xf32>
    %c0_154 = arith.constant 0 : index
    %c0_155 = arith.constant 0 : index
    %155 = vector.load %arg10[%c0_154, %c0_155] : memref<1x128xf32, #tpu.memory_space<vmem>>, vector<1x128xf32>
    %156 = arith.addf %154, %155 : vector<1x128xf32>
    %157 = arith.negf %156 : vector<1x128xf32>
    %158 = math.exp %157 : vector<1x128xf32>
    %cst_156 = arith.constant 1.000000e+00 : f32
    %159 = vector.broadcast %cst_156 : f32 to vector<1x128xf32>
    %160 = arith.addf %159, %158 : vector<1x128xf32>
    %161 = arith.divf %159, %160 : vector<1x128xf32>
    %162 = vector.broadcast %161 : vector<1x128xf32> to vector<64x128xf32>
    %163 = arith.mulf %138, %162 : vector<64x128xf32>
    %164 = arith.addf %163, %1 : vector<64x128xf32>
    %c0_157 = arith.constant 0 : index
    %c0_158 = arith.constant 0 : index
    %c0_159 = arith.constant 0 : index
    %165 = vector.load %arg11[%c0_157, %c0_158, %c0_159] : memref<1x64x128xf32, #tpu.memory_space<vmem>>, vector<1x64x128xf32>
    %166 = vector.shape_cast %165 : vector<1x64x128xf32> to vector<64x128xf32>
    %167 = vector.shape_cast %164 : vector<64x128xf32> to vector<1x64x128xf32>
    tpu.vector_store %arg11[%c0_157, %c0_158, %c0_159], %167 {strides = array<i32>} : memref<1x64x128xf32, #tpu.memory_space<vmem>>, vector<1x64x128xf32>,
    return
  }
  func.func @transform_0(%arg0: i32) -> (i32, i32, i32) {
    %c0_i32 = arith.constant 0 : i32
    %c0_i32_0 = arith.constant 0 : i32
    %c0_i32_1 = arith.constant 0 : i32
    return %arg0, %c0_i32, %c0_i32_0 : i32, i32, i32
  }
  func.func @transform_1(%arg0: i32) -> (i32, i32, i32) {
    %c0_i32 = arith.constant 0 : i32
    %c0_i32_0 = arith.constant 0 : i32
    %c0_i32_1 = arith.constant 0 : i32
    %c0_i32_2 = arith.constant 0 : i32
    return %c0_i32, %c0_i32_0, %c0_i32_1 : i32, i32, i32
  }
  func.func @transform_2(%arg0: i32) -> (i32, i32, i32) {
    %c0_i32 = arith.constant 0 : i32
    %c0_i32_0 = arith.constant 0 : i32
    %c0_i32_1 = arith.constant 0 : i32
    %c0_i32_2 = arith.constant 0 : i32
    return %c0_i32, %c0_i32_0, %c0_i32_1 : i32, i32, i32
  }
  func.func @transform_3(%arg0: i32) -> (i32, i32) {
    %c0_i32 = arith.constant 0 : i32
    %c0_i32_0 = arith.constant 0 : i32
    %c0_i32_1 = arith.constant 0 : i32
    return %c0_i32, %c0_i32_0 : i32, i32
  }
  func.func @transform_4(%arg0: i32) -> (i32, i32, i32) {
    %c0_i32 = arith.constant 0 : i32
    %c0_i32_0 = arith.constant 0 : i32
    %c0_i32_1 = arith.constant 0 : i32
    %c0_i32_2 = arith.constant 0 : i32
    return %c0_i32, %c0_i32_0, %c0_i32_1 : i32, i32, i32
  }
  func.func @transform_5(%arg0: i32) -> (i32, i32) {
    %c0_i32 = arith.constant 0 : i32
    %c0_i32_0 = arith.constant 0 : i32
    %c0_i32_1 = arith.constant 0 : i32
    return %c0_i32, %c0_i32_0 : i32, i32
  }
  func.func @transform_6(%arg0: i32) -> (i32, i32) {
    %c0_i32 = arith.constant 0 : i32
    %c0_i32_0 = arith.constant 0 : i32
    %c0_i32_1 = arith.constant 0 : i32
    return %c0_i32, %c0_i32_0 : i32, i32
  }
  func.func @transform_7(%arg0: i32) -> (i32, i32) {
    %c0_i32 = arith.constant 0 : i32
    %c0_i32_0 = arith.constant 0 : i32
    %c0_i32_1 = arith.constant 0 : i32
    return %c0_i32, %c0_i32_0 : i32, i32
  }
  func.func @transform_8(%arg0: i32) -> (i32, i32) {
    %c0_i32 = arith.constant 0 : i32
    %c0_i32_0 = arith.constant 0 : i32
    %c0_i32_1 = arith.constant 0 : i32
    return %c0_i32, %c0_i32_0 : i32, i32
  }
  func.func @transform_9(%arg0: i32) -> (i32, i32) {
    %c0_i32 = arith.constant 0 : i32
    %c0_i32_0 = arith.constant 0 : i32
    %c0_i32_1 = arith.constant 0 : i32
    return %c0_i32, %c0_i32_0 : i32, i32
  }
  func.func @transform_10(%arg0: i32) -> (i32, i32, i32) {
    %c0_i32 = arith.constant 0 : i32
    %c0_i32_0 = arith.constant 0 : i32
    %c0_i32_1 = arith.constant 0 : i32
    return %arg0, %c0_i32, %c0_i32_0 : i32, i32, i32
  }
}

</mosaic_0001>

<bundles_post_ra>
// kernel: tile.28
= control target key start
LH: loop header
LB: loop body
LE: loop exit
PB: predicated region body
PF: predicated region fallthrough
CT: control target
= control target key end

     0   :  { %s22_s0 = inlined_call_operand.vmem [shape: f32[16], index: 0, kind: input, shape index: {}]   ;;  %s23_s1 = inlined_call_operand.vmem [shape: f32[8,16], index: 1, kind: output, shape index: {}]  }
   0x1   :  { %v4_v0 = vld [vmem:[%s22_s0] ss:$0 sm:$0xff] }
   0x2   :  { %5 = vst [vmem:[%s23_s1] sm:$0xff] %v4_v0 }

// kernel: tile.29
= control target key start
LH: loop header
LB: loop body
LE: loop exit
PB: predicated region body
PF: predicated region fallthrough
CT: control target
= control target key end

     0   :  { %s67_s10 = smov 112   ;;  %s68_s11 = smov 80   ;;  %vm3_vm0 = vcmask 130048   ;;  %vm9_vm1 = vcmask 1048448   ;;  %vm15_vm2 = vcmask 917248   ;;  %vm21_vm3 = vcmask 786048   ;;  %s111_s0 = inlined_call_operand.vmem [shape: f32[8,16], index: 0, kind: input, shape index: {}]   ;;  %s112_s1 = inlined_call_operand.vmem [shape: f32[1,128], index: 1, kind: output, shape index: {}]  }
   0x1   :  { %v53_v0 = vld [vmem:[%s111_s0 + $0x7] sm:$0x1]   ;;  %v55_v1 = vld [vmem:[%s111_s0 + $0x5] sm:$0x1]   ;;  %v54_v2 = vld [vmem:[%s111_s0 + $0x6] sm:$0x1]  }
   0x2   :  { %7 = vrot.lane.b32.xlu0 %v53_v0, %s67_s10  ;;  %19 = vrot.lane.b32.xlu1 %v55_v1, %s68_s11  ;;  %v56_v3 = vld [vmem:[%s111_s0 + $0x4] sm:$0x1]   ;;  %v2_v4 = vld [vmem:[%s111_s0] sm:$0x1]   ;;  %s69_s18 = smov 96   ;;  %s70_s19 = smov 64  }
   0x3   :  { %4 = vst.msk [vmem:[#allocation0] sm:$0x1] %vm3_vm0, %v2_v4   ;;  %v57_v5 = vld [vmem:[%s111_s0 + $0x3] sm:$0x1]   ;;  %v58_v6 = vld [vmem:[%s111_s0 + $0x2] sm:$0x1]  }
   0x4   :  { %s71_s24 = smov 48   ;;  %s72_s25 = smov 32   ;;  %v59_v7 = vld [vmem:[%s111_s0 + $0x1] sm:$0x1]   ;;  %vm27_vm4 = vcmask 654848   ;;  %vm33_vm5 = vcmask 523648  }
   0x5   :  { %s73_s0 = smov 16   ;;  %vm39_vm6 = vcmask 392448   ;;  %vm45_vm7 = vcmask 261248  }
   0x6   :  { %13 = vrot.lane.b32.xlu0 %v54_v2, %s69_s18  ;;  %25 = vrot.lane.b32.xlu1 %v56_v3, %s70_s19 }
   0xa   :  { %31 = vrot.lane.b32.xlu0 %v57_v5, %s71_s24  ;;  %37 = vrot.lane.b32.xlu1 %v58_v6, %s72_s25 }
   0xe   :  { %43 = vrot.lane.b32.xlu0 %v59_v7, %s73_s0 }
  0x74   :  { %v8_v8 = vpop.permute.xlu0 %7   ;;  %v20_v9 = vpop.permute.xlu1 %19  }
  0x75   :  { %10 = vst.msk [vmem:[#allocation0] sm:$0x1] %vm9_vm1, %v8_v8  }
  0x78   :  { %v14_v10 = vpop.permute.xlu0 %13   ;;  %v26_v11 = vpop.permute.xlu1 %25  }
  0x79   :  { %16 = vst.msk [vmem:[#allocation0] sm:$0x1] %vm15_vm2, %v14_v10  }
  0x7a   :  { %22 = vst.msk [vmem:[#allocation0] sm:$0x1] %vm21_vm3, %v20_v9  }
  0x7b   :  { %28 = vst.msk [vmem:[#allocation0] sm:$0x1] %vm27_vm4, %v26_v11  }
  0x7c   :  { %v32_v12 = vpop.permute.xlu0 %31   ;;  %v38_v13 = vpop.permute.xlu1 %37  }
  0x7d   :  { %34 = vst.msk [vmem:[#allocation0] sm:$0x1] %vm33_vm5, %v32_v12  }
  0x7e   :  { %40 = vst.msk [vmem:[#allocation0] sm:$0x1] %vm39_vm6, %v38_v13  }
  0x80   :  { %v44_v14 = vpop.permute.xlu0 %43  }
  0x81   :  { %46 = vst.msk [vmem:[#allocation0] sm:$0x1] %vm45_vm7, %v44_v14  }
  0x88   :  { %v50_v15 = vld [vmem:[#allocation0] sm:$0x1] }
  0x89   :  { %52 = vst [vmem:[%s112_s1] sm:$0x1] %v50_v15 }

// kernel: ca_block_3d.1
= control target key start
LH: loop header
LB: loop body
LE: loop exit
PB: predicated region body
PF: predicated region fallthrough
CT: control target
= control target key end

     0   :  { %s8687_s13 = smov 0   ;;  %s10698_s0 = inlined_call_operand.vmem [shape: f32[2,64,128], index: 0, kind: input, shape index: {}]   ;;  %s10699_s1 = inlined_call_operand.vmem [shape: f32[9,64,64], index: 1, kind: input, shape index: {}]   ;;  %s10700_s2 = inlined_call_operand.vmem [shape: f32[9,128,128], index: 2, kind: input, shape index: {}]   ;;  %s10701_s3 = inlined_call_operand.vmem [shape: f32[1,128], index: 3, kind: input, shape index: {}]   ;;  %s10702_s4 = inlined_call_operand.vmem [shape: f32[9,128,128], index: 4, kind: input, shape index: {}]   ;;  %s10703_s5 = inlined_call_operand.vmem [shape: f32[1,128], index: 5, kind: input, shape index: {}]   ;;  %s10704_s6 = inlined_call_operand.vmem [shape: f32[2,128], index: 6, kind: input, shape index: {}]   ;;  %s10705_s7 = inlined_call_operand.vmem [shape: f32[2,1], index: 7, kind: input, shape index: {}]   ;;  %s10706_s8 = inlined_call_operand.vmem [shape: f32[2,128], index: 8, kind: input, shape index: {}]   ;;  %s10707_s9 = inlined_call_operand.vmem [shape: f32[1,128], index: 9, kind: input, shape index: {}]   ;;  %s10708_s10 = inlined_call_operand.vmem [shape: f32[2,64,128], index: 10, kind: output, shape index: {}]  }
   0x1 LB: > { %s5034_s14 = sadd.s32 4294967295, %s8629_s13   ;;  %p5038_p0 = scmp.ge.s32.totalorder %s8629_s13, 1  ;;  %s8629_s13 = sphi %s8687_s13, %s20_s13  }
   0x2   : > { %p312_p1 = scmp.lt.s32.totalorder %s8629_s13, 3 }
   0x4   : > { %p313_p2 = pnand %p5038_p0, %p312_p1 }
   0x5   : > { %p350_p3 = scmp.lt.s32.totalorder (!%p313_p2), %s5034_s14, 1  ;;  %v8698_v0 = vld [vmem:[%s10699_s1] sm:$0xff] (!%p313_p2)  ;;  %vm376_vm0 = vcmask (!%p313_p2), 523264   ;;  %v369_v14 = vld [vmem:[%s10699_s1 + $0x8] sm:$0xff] (!%p313_p2)  ;;  %v370_v16 = vld [vmem:[%s10699_s1 + $0x10] sm:$0xff] (!%p313_p2)  ;;  %vm4922_vm1 = vcmask (!%p313_p2), 1041408  }
   0x6   : > { %316 = sbr.rel (%p313_p2) target bundleno = 2167 (0x877), region = 60  ;;  %6250 = vmatprep.mubr.msk.f32.mxu0 (!%p313_p2), %vm376_vm0, %v8698_v0  ;;  %v5083_v1 = vld [vmem:[%s10699_s1 + $0x80] sm:$0xff] (!%p313_p2)  ;;  %v5084_v15 = vld [vmem:[%s10699_s1 + $0x88] sm:$0xff] (!%p313_p2)  ;;  %v5085_v17 = vld [vmem:[%s10699_s1 + $0x90] sm:$0xff] (!%p313_p2) }
   0x7   : > { %6394 = vmatprep.mubr.msk.f32.mxu1 (!%p313_p2), %vm376_vm0, %v5083_v1  ;;  %v371_v18 = vld [vmem:[%s10699_s1 + $0x18] sm:$0xff] (!%p313_p2)  ;;  %v372_v20 = vld [vmem:[%s10699_s1 + $0x20] sm:$0xff] (!%p313_p2)  ;;  %v373_v22 = vld [vmem:[%s10699_s1 + $0x28] sm:$0xff] (!%p313_p2) }
   0x8   : > { %v5086_v19 = vld [vmem:[%s10699_s1 + $0x98] sm:$0xff] (!%p313_p2)  ;;  %v5087_v21 = vld [vmem:[%s10699_s1 + $0xa0] sm:$0xff] (!%p313_p2)  ;;  %v5088_v23 = vld [vmem:[%s10699_s1 + $0xa8] sm:$0xff] (!%p313_p2) }
   0x9   : > { %v374_v24 = vld [vmem:[%s10699_s1 + $0x30] sm:$0xff] (!%p313_p2)  ;;  %v5067_v26 = vld [vmem:[%s10700_s2 + $0x80] sm:$0xff] (!%p313_p2)  ;;  %v5068_v27 = vld [vmem:[%s10700_s2 + $0x88] sm:$0xff] (!%p313_p2) }
   0xa   : > { %v5089_v25 = vld [vmem:[%s10699_s1 + $0xb0] sm:$0xff] (!%p313_p2)  ;;  %v375_v28 = vld [vmem:[%s10699_s1 + $0x38] sm:$0xff] (!%p313_p2)  ;;  %v5051_v30 = vld [vmem:[%s10699_s1 + $0x40] sm:$0xff] (!%p313_p2)  ;;  %v7562_v32 = vpack.c.bf16 (!%p313_p2), %v5068_v27, %v5067_v26 }
   0xb   : > { %v5090_v29 = vld [vmem:[%s10699_s1 + $0xb8] sm:$0xff] (!%p313_p2)  ;;  %v5115_v31 = vld [vmem:[%s10699_s1 + $0xc0] sm:$0xff] (!%p313_p2)  ;;  %v5052_v33 = vld [vmem:[%s10699_s1 + $0x48] sm:$0xff] (!%p313_p2) }
   0xc   : > { %v5069_v34 = vld [vmem:[%s10700_s2 + $0x90] sm:$0xff] (!%p313_p2)  ;;  %v5070_v35 = vld [vmem:[%s10700_s2 + $0x98] sm:$0xff] (!%p313_p2)  ;;  %v5116_v37 = vld [vmem:[%s10699_s1 + $0xc8] sm:$0xff] (!%p313_p2) }
   0xd   : > { %s10710_s14 = smov (!%p350_p3, %s5034_s14), 1  ;;  %v5053_v36 = vld [vmem:[%s10699_s1 + $0x50] sm:$0xff]  ;;  %v7566_v39 = vpack.c.bf16 %v5070_v35, %v5069_v34  ;;  %v5054_v40 = vld [vmem:[%s10699_s1 + $0x58] sm:$0xff]  ;;  %v5071_v41 = vld [vmem:[%s10700_s2 + $0xa0] sm:$0xff] }
   0xe   : > { %s5512_s17 = sshll.u32 %s10710_s14, 6  ;;  %v5117_v38 = vld [vmem:[%s10699_s1 + $0xd0] sm:$0xff]  ;;  %v5072_v42 = vld [vmem:[%s10700_s2 + $0xa8] sm:$0xff]  ;;  %v5055_v43 = vld [vmem:[%s10699_s1 + $0x60] sm:$0xff] }
   0xf   : > { %s8710_s20 = scalar_lea.vmem %s10698_s0, %s5512_s17  ;;  %v5118_v44 = vld [vmem:[%s10699_s1 + $0xd8] sm:$0xff]  ;;  %v5119_v45 = vld [vmem:[%s10699_s1 + $0xe0] sm:$0xff]  ;;  %v7570_v46 = vpack.c.bf16 %v5072_v42, %v5071_v41  ;;  %v5056_v47 = vld [vmem:[%s10699_s1 + $0x68] sm:$0xff]  ;;  %s359_s11 = scalar_lea.vmem %s10708_s10, %s5512_s17 }
  0x10   : > { %v360_v2 = vld [vmem:[%s8710_s20] sm:$0xff]  ;;  %v361_v3 = vld [vmem:[%s8710_s20 + $0x8] sm:$0xff]  ;;  %v362_v4 = vld [vmem:[%s8710_s20 + $0x10] sm:$0xff] }
  0x11   : > { %v8719_v5 = vpack.c.bf16 %v361_v3, %v360_v2  ;;  %v363_v6 = vld [vmem:[%s8710_s20 + $0x18] sm:$0xff]  ;;  %v364_v8 = vld [vmem:[%s8710_s20 + $0x20] sm:$0xff]  ;;  %v365_v9 = vld [vmem:[%s8710_s20 + $0x28] sm:$0xff] }
  0x12   : > { %v8722_v7 = vpack.c.bf16 %v363_v6, %v362_v4  ;;  %v8731_v10 = vpack.c.bf16 %v365_v9, %v364_v8  ;;  %v366_v11 = vld [vmem:[%s8710_s20 + $0x30] sm:$0xff]  ;;  %v367_v12 = vld [vmem:[%s8710_s20 + $0x38] sm:$0xff]  ;;  %v5120_v51 = vld [vmem:[%s10699_s1 + $0xe8] sm:$0xff] }
  0x13   : > { %7531 = vmatprep.subr.bf16.mxu0 %v8719_v5  ;;  %7627 = vmatprep.subr.bf16.mxu1 %v8719_v5  ;;  %v8739_v13 = vpack.c.bf16 %v367_v12, %v366_v11  ;;  %v5073_v48 = vld [vmem:[%s10700_s2 + $0xb0] sm:$0xff]  ;;  %v5074_v49 = vld [vmem:[%s10700_s2 + $0xb8] sm:$0xff]  ;;  %v5147_v56 = vld [vmem:[%s10699_s1 + $0x100] sm:$0xff] }
  0x14   : > { %7533 = vmatpush3.bf16.msra.mxu0 %v8719_v5  ;;  %7629 = vmatpush3.bf16.msra.mxu1 %v8719_v5  ;;  %v5057_v50 = vld [vmem:[%s10699_s1 + $0x70] sm:$0xff]  ;;  %v7574_v53 = vpack.c.bf16 %v5074_v49, %v5073_v48  ;;  %v5058_v54 = vld [vmem:[%s10699_s1 + $0x78] sm:$0xff]  ;;  %v5148_v57 = vld [vmem:[%s10699_s1 + $0x108] sm:$0xff] }
  0x15   : > { %7535 = vmatprep.subr.bf16.mxu0 %v8722_v7  ;;  %7631 = vmatprep.subr.bf16.mxu1 %v8722_v7  ;;  %v5121_v52 = vld [vmem:[%s10699_s1 + $0xf0] sm:$0xff]  ;;  %v5122_v55 = vld [vmem:[%s10699_s1 + $0xf8] sm:$0xff]  ;;  %v5151_v60 = vld [vmem:[%s10699_s1 + $0x120] sm:$0xff] }
  0x16   : > { %v5149_v58 = vld [vmem:[%s10699_s1 + $0x110] sm:$0xff]  ;;  %v5150_v59 = vld [vmem:[%s10699_s1 + $0x118] sm:$0xff]  ;;  %v5152_v61 = vld [vmem:[%s10699_s1 + $0x128] sm:$0xff] }
  0x17   : > { %v5153_v62 = vld [vmem:[%s10699_s1 + $0x130] sm:$0xff]  ;;  %v5154_v63 = vld [vmem:[%s10699_s1 + $0x138] sm:$0xff]  ;;  %v5179_v1 = vld [vmem:[%s10699_s1 + $0x140] sm:$0xff] }
  0x18   : > { %7537 = vmatpush3.bf16.msra.mxu0 %v8722_v7  ;;  %7633 = vmatpush3.bf16.msra.mxu1 %v8722_v7  ;;  %v5180_v2 = vld [vmem:[%s10699_s1 + $0x148] sm:$0xff]  ;;  %v5181_v3 = vld [vmem:[%s10699_s1 + $0x150] sm:$0xff]  ;;  %v5182_v4 = vld [vmem:[%s10699_s1 + $0x158] sm:$0xff] }
  0x19   : > { %7539 = vmatprep.subr.bf16.mxu0 %v8731_v10  ;;  %7635 = vmatprep.subr.bf16.mxu1 %v8731_v10  ;;  %v5183_v6 = vld [vmem:[%s10699_s1 + $0x160] sm:$0xff]  ;;  %v5184_v8 = vld [vmem:[%s10699_s1 + $0x168] sm:$0xff]  ;;  %v5185_v9 = vld [vmem:[%s10699_s1 + $0x170] sm:$0xff] }
  0x1a   : > { %v5186_v11 = vld [vmem:[%s10699_s1 + $0x178] sm:$0xff]  ;;  %v5211_v12 = vld [vmem:[%s10699_s1 + $0x180] sm:$0xff]  ;;  %v5213_v27 = vld [vmem:[%s10699_s1 + $0x190] sm:$0xff] }
  0x1b   : > { %v5217_v34 = vld [vmem:[%s10699_s1 + $0x1b0] sm:$0xff]  ;;  %v5218_v35 = vld [vmem:[%s10699_s1 + $0x1b8] sm:$0xff]  ;;  %v5276_v41 = vld [vmem:[%s10699_s1 + $0x208] sm:$0xff] }
  0x1c   : > { %7541 = vmatpush3.bf16.msra.mxu0 %v8731_v10  ;;  %7637 = vmatpush3.bf16.msra.mxu1 %v8731_v10  ;;  %v5277_v42 = vld [vmem:[%s10699_s1 + $0x210] sm:$0xff] }
  0x1d   : > { %7543 = vmatprep.subr.bf16.mxu0 %v8739_v13  ;;  %7639 = vmatprep.subr.bf16.mxu1 %v8739_v13 }
  0x20   : > { %7545 = vmatpush3.bf16.msra.mxu0 %v8739_v13  ;;  %7641 = vmatpush3.bf16.msra.mxu1 %v8739_v13 }
  0x21   : > { %7547 = vmatprep.subr.bf16.mxu0 %v8719_v5  ;;  %7675 = vmatprep.subr.bf16.mxu1 %v8719_v5 }
  0x23   : > { %6251 = vmatmul.mubr.msk.f32.vlgmr.msra.gmra.mrb[0].mxu0 %vm376_vm0, %v369_v14  ;;  %6395 = vmatmul.mubr.msk.f32.vlgmr.msra.gmra.mrb[0].mxu1 %vm376_vm0, %v5084_v15  ;;  %v5212_v14 = vld [vmem:[%s10699_s1 + $0x188] sm:$0xff]  ;;  %v5075_v15 = vld [vmem:[%s10700_s2 + $0xc0] sm:$0xff] }
  0x24   : > { %7549 = vmatpush3.bf16.msra.mxu0 %v8719_v5  ;;  %6253 = vmatprep.mubr.msk.f32.mxu0 %vm376_vm0, %v370_v16  ;;  %v5076_v16 = vld [vmem:[%s10700_s2 + $0xc8] sm:$0xff] }
  0x25   : > { %7551 = vmatprep.subr.bf16.mxu0 %v8722_v7  ;;  %7677 = vmatpush3.bf16.msra.mxu1 %v8719_v5 }
  0x26   : > { %6397 = vmatprep.mubr.msk.f32.mxu1 %vm376_vm0, %v5085_v17  ;;  %7679 = vmatprep.subr.bf16.mxu1 %v8722_v7  ;;  %v7578_v17 = vpack.c.bf16 %v5076_v16, %v5075_v15 }
  0x27   : > { %6254 = vmatmul.mubr.msk.f32.gmra.mrb[2].mxu0 %vm376_vm0, %v371_v18  ;;  %6398 = vmatmul.mubr.msk.f32.gmra.mrb[2].mxu1 %vm376_vm0, %v5086_v19  ;;  %v5077_v18 = vld [vmem:[%s10700_s2 + $0xd0] sm:$0xff]  ;;  %v5078_v19 = vld [vmem:[%s10700_s2 + $0xd8] sm:$0xff] }
  0x28   : > { %7553 = vmatpush3.bf16.msra.mxu0 %v8722_v7  ;;  %6256 = vmatprep.mubr.msk.f32.mxu0 %vm376_vm0, %v372_v20  ;;  %v7582_v20 = vpack.c.bf16 %v5078_v19, %v5077_v18  ;;  %v513_v18 = vld [vmem:[%s10700_s2 + $0x38] sm:$0xff] }
  0x29   : > { %7555 = vmatprep.subr.bf16.mxu0 %v8731_v10  ;;  %7681 = vmatpush3.bf16.msra.mxu1 %v8722_v7 }
  0x2a   : > { %6400 = vmatprep.mubr.msk.f32.mxu1 %vm376_vm0, %v5087_v21  ;;  %7683 = vmatprep.subr.bf16.mxu1 %v8731_v10  ;;  %v5079_v21 = vld [vmem:[%s10700_s2 + $0xe0] sm:$0xff] }
  0x2b   : > { %6257 = vmatmul.mubr.msk.f32.gmra.mrb[4].mxu0 %vm376_vm0, %v373_v22  ;;  %6401 = vmatmul.mubr.msk.f32.gmra.mrb[4].mxu1 %vm376_vm0, %v5088_v23  ;;  %v5080_v22 = vld [vmem:[%s10700_s2 + $0xe8] sm:$0xff] }
  0x2c   : > { %7557 = vmatpush3.bf16.msra.mxu0 %v8731_v10  ;;  %6259 = vmatprep.mubr.msk.f32.mxu0 %vm376_vm0, %v374_v24  ;;  %v7586_v23 = vpack.c.bf16 %v5080_v22, %v5079_v21  ;;  %v5081_v24 = vld [vmem:[%s10700_s2 + $0xf0] sm:$0xff] }
  0x2d   : > { %7559 = vmatprep.subr.bf16.mxu0 %v8739_v13  ;;  %7685 = vmatpush3.bf16.msra.mxu1 %v8731_v10 }
  0x2e   : > { %6403 = vmatprep.mubr.msk.f32.mxu1 %vm376_vm0, %v5089_v25  ;;  %7687 = vmatprep.subr.bf16.mxu1 %v8739_v13  ;;  %v5082_v25 = vld [vmem:[%s10700_s2 + $0xf8] sm:$0xff] }
  0x2f   : > { %6260 = vmatmul.mubr.msk.f32.gmra.mrb[6].mxu0 %vm376_vm0, %v375_v28  ;;  %6404 = vmatmul.mubr.msk.f32.gmra.mrb[6].mxu1 %vm376_vm0, %v5090_v29  ;;  %v7590_v26 = vpack.c.bf16 %v5082_v25, %v5081_v24  ;;  %v5214_v28 = vld [vmem:[%s10699_s1 + $0x198] sm:$0xff]  ;;  %v506_v29 = vld [vmem:[%s10700_s2] sm:$0xff]  ;;  %v515_v25 = vld [vmem:[%s10700_s2 + $0x48] sm:$0xff] }
  0x30   : > { %7561 = vmatpush3.bf16.msra.mxu0 %v8739_v13  ;;  %6278 = vmatprep.mubr.msk.f32.mxu0 %vm376_vm0, %v5051_v30  ;;  %v507_v30 = vld [vmem:[%s10700_s2 + $0x8] sm:$0xff]  ;;  %v514_v24 = vld [vmem:[%s10700_s2 + $0x40] sm:$0xff] }
  0x31   : > { %7689 = vmatpush3.bf16.msra.mxu1 %v8739_v13  ;;  %6466 = vmatprep.mubr.msk.f32.mxu1 %vm376_vm0, %v5115_v31  ;;  %v9051_v31 = vpack.c.bf16 %v507_v30, %v506_v29  ;;  %v7610_v29 = vpack.c.bf16 %v515_v25, %v514_v24  ;;  %v5113_v24 = vld [vmem:[%s10700_s2 + $0x170] sm:$0xff]  ;;  %v5114_v25 = vld [vmem:[%s10700_s2 + $0x178] sm:$0xff] }
  0x32   : > { %7723 = vmatprep.subr.bf16.mxu1 %v8719_v5  ;;  %7563 = vmatprep.subr.bf16.mxu0 %v7562_v32 }
  0x33   : > { %6279 = vmatmul.mubr.msk.f32.vlgmr.msra.gmra.mrb[8].mxu0 %vm376_vm0, %v5052_v33  ;;  %v5216_v33 = vld [vmem:[%s10699_s1 + $0x1a8] sm:$0xff] }
  0x34   : > { %6281 = vmatprep.mubr.msk.f32.mxu0 %vm376_vm0, %v5053_v36  ;;  %6467 = vmatmul.mubr.msk.f32.vlgmr.msra.gmra.mrb[8].mxu1 %vm376_vm0, %v5116_v37  ;;  %v5243_v36 = vld [vmem:[%s10699_s1 + $0x1c0] sm:$0xff]  ;;  %v5244_v37 = vld [vmem:[%s10699_s1 + $0x1c8] sm:$0xff] }
  0x35   : > { %7725 = vmatpush3.bf16.msra.mxu1 %v8719_v5  ;;  %6469 = vmatprep.mubr.msk.f32.mxu1 %vm376_vm0, %v5117_v38  ;;  %v5245_v38 = vld [vmem:[%s10699_s1 + $0x1d0] sm:$0xff] }
  0x36   : > { %7727 = vmatprep.subr.bf16.mxu1 %v8722_v7  ;;  %7565 = vmatpush3.bf16.msra.mxu0 %v7562_v32  ;;  %v5215_v32 = vld [vmem:[%s10699_s1 + $0x1a0] sm:$0xff] }
  0x37   : > { %6282 = vmatmul.mubr.msk.f32.gmra.mrb[10].mxu0 %vm376_vm0, %v5054_v40  ;;  %7567 = vmatprep.subr.bf16.mxu0 %v7566_v39  ;;  %v5275_v40 = vld [vmem:[%s10699_s1 + $0x200] sm:$0xff] }
  0x38   : > { %6284 = vmatprep.mubr.msk.f32.mxu0 %vm376_vm0, %v5055_v43  ;;  %6470 = vmatmul.mubr.msk.f32.gmra.mrb[10].mxu1 %vm376_vm0, %v5118_v44  ;;  %v5278_v43 = vld [vmem:[%s10699_s1 + $0x218] sm:$0xff]  ;;  %v5279_v44 = vld [vmem:[%s10699_s1 + $0x220] sm:$0xff] }
  0x39   : > { %7729 = vmatpush3.bf16.msra.mxu1 %v8722_v7  ;;  %6472 = vmatprep.mubr.msk.f32.mxu1 %vm376_vm0, %v5119_v45  ;;  %v5280_v45 = vld [vmem:[%s10699_s1 + $0x228] sm:$0xff] }
  0x3a   : > { %7731 = vmatprep.subr.bf16.mxu1 %v8731_v10  ;;  %7569 = vmatpush3.bf16.msra.mxu0 %v7566_v39  ;;  %v5250_v39 = vld [vmem:[%s10699_s1 + $0x1f8] sm:$0xff] }
  0x3b   : > { %6285 = vmatmul.mubr.msk.f32.gmra.mrb[12].mxu0 %vm376_vm0, %v5056_v47  ;;  %7571 = vmatprep.subr.bf16.mxu0 %v7570_v46  ;;  %v5282_v47 = vld [vmem:[%s10699_s1 + $0x238] sm:$0xff] }
  0x3c   : > { %6287 = vmatprep.mubr.msk.f32.mxu0 %vm376_vm0, %v5057_v50  ;;  %6473 = vmatmul.mubr.msk.f32.gmra.mrb[12].mxu1 %vm376_vm0, %v5120_v51 }
  0x3d   : > { %7733 = vmatpush3.bf16.msra.mxu1 %v8731_v10  ;;  %6475 = vmatprep.mubr.msk.f32.mxu1 %vm376_vm0, %v5121_v52 }
  0x3e   : > { %7735 = vmatprep.subr.bf16.mxu1 %v8739_v13  ;;  %7573 = vmatpush3.bf16.msra.mxu0 %v7570_v46  ;;  %v5281_v46 = vld [vmem:[%s10699_s1 + $0x230] sm:$0xff] }
  0x3f   : > { %6288 = vmatmul.mubr.msk.f32.gmra.mrb[14].mxu0 %vm376_vm0, %v5058_v54  ;;  %7575 = vmatprep.subr.bf16.mxu0 %v7574_v53 }
  0x40   : > { %6476 = vmatmul.mubr.msk.f32.gmra.mrb[14].mxu1 %vm376_vm0, %v5122_v55 }
  0x41   : > { %7737 = vmatpush3.bf16.msra.mxu1 %v8739_v13  ;;  %6538 = vmatprep.mubr.msk.f32.mxu1 %vm376_vm0, %v5147_v56 }
  0x42   : > { %7771 = vmatprep.subr.bf16.mxu1 %v8719_v5  ;;  %7577 = vmatpush3.bf16.msra.mxu0 %v7574_v53 }
  0x43   : > { %7579 = vmatprep.subr.bf16.mxu0 %v7578_v17 }
  0x44   : > { %6539 = vmatmul.mubr.msk.f32.vlgmr.msra.gmra.mrb[16].mxu1 %vm376_vm0, %v5148_v57 }
  0x45   : > { %7773 = vmatpush3.bf16.msra.mxu1 %v8719_v5  ;;  %6541 = vmatprep.mubr.msk.f32.mxu1 %vm376_vm0, %v5149_v58 }
  0x46   : > { %7775 = vmatprep.subr.bf16.mxu1 %v8722_v7  ;;  %7581 = vmatpush3.bf16.msra.mxu0 %v7578_v17  ;;  %v512_v17 = vld [vmem:[%s10700_s2 + $0x30] sm:$0xff] }
  0x47   : > { %7583 = vmatprep.subr.bf16.mxu0 %v7582_v20  ;;  %v7606_v22 = vpack.c.bf16 %v513_v18, %v512_v17  ;;  %v5110_v17 = vld [vmem:[%s10700_s2 + $0x158] sm:$0xff] }
  0x48   : > { %6542 = vmatmul.mubr.msk.f32.gmra.mrb[18].mxu1 %vm376_vm0, %v5150_v59 }
  0x49   : > { %7777 = vmatpush3.bf16.msra.mxu1 %v8722_v7  ;;  %6544 = vmatprep.mubr.msk.f32.mxu1 %vm376_vm0, %v5151_v60 }
  0x4a   : > { %7779 = vmatprep.subr.bf16.mxu1 %v8731_v10  ;;  %7585 = vmatpush3.bf16.msra.mxu0 %v7582_v20 }
  0x4b   : > { %7587 = vmatprep.subr.bf16.mxu0 %v7586_v23 }
  0x4c   : > { %6545 = vmatmul.mubr.msk.f32.gmra.mrb[20].mxu1 %vm376_vm0, %v5152_v61 }
  0x4d   : > { %7781 = vmatpush3.bf16.msra.mxu1 %v8731_v10  ;;  %6547 = vmatprep.mubr.msk.f32.mxu1 %vm376_vm0, %v5153_v62 }
  0x4e   : > { %7783 = vmatprep.subr.bf16.mxu1 %v8739_v13  ;;  %7589 = vmatpush3.bf16.msra.mxu0 %v7586_v23 }
  0x4f   : > { %7591 = vmatprep.subr.bf16.mxu0 %v7590_v26 }
  0x50   : > { %6548 = vmatmul.mubr.msk.f32.gmra.mrb[22].mxu1 %vm376_vm0, %v5154_v63  ;;  %v508_v63 = vld [vmem:[%s10700_s2 + $0x10] sm:$0xff] }
  0x51   : > { %7785 = vmatpush3.bf16.msra.mxu1 %v8739_v13  ;;  %6610 = vmatprep.mubr.msk.f32.mxu1 %vm376_vm0, %v5179_v1  ;;  %v509_v1 = vld [vmem:[%s10700_s2 + $0x18] sm:$0xff] }
  0x52   : > { %7819 = vmatprep.subr.bf16.mxu1 %v8719_v5  ;;  %7593 = vmatpush3.bf16.msra.mxu0 %v7590_v26 }
  0x53   : > { %7595 = vmatprep.subr.bf16.mxu0 %v9051_v31 }
  0x54   : > { %6611 = vmatmul.mubr.msk.f32.vlgmr.msra.gmra.mrb[24].mxu1 %vm376_vm0, %v5180_v2 }
  0x55   : > { %7821 = vmatpush3.bf16.msra.mxu1 %v8719_v5  ;;  %6613 = vmatprep.mubr.msk.f32.mxu1 %vm376_vm0, %v5181_v3 }
  0x56   : > { %7823 = vmatprep.subr.bf16.mxu1 %v8722_v7 }
  0x58   : > { %6614 = vmatmul.mubr.msk.f32.gmra.mrb[26].mxu1 %vm376_vm0, %v5182_v4  ;;  %v7598_v4 = vpack.c.bf16 %v509_v1, %v508_v63 }
  0x59   : > { %7825 = vmatpush3.bf16.msra.mxu1 %v8722_v7  ;;  %6616 = vmatprep.mubr.msk.f32.mxu1 %vm376_vm0, %v5183_v6 }
  0x5a   : > { %7827 = vmatprep.subr.bf16.mxu1 %v8731_v10 }
  0x5c   : > { %6617 = vmatmul.mubr.msk.f32.gmra.mrb[28].mxu1 %vm376_vm0, %v5184_v8  ;;  %v510_v8 = vld [vmem:[%s10700_s2 + $0x20] sm:$0xff] }
  0x5d   : > { %7829 = vmatpush3.bf16.msra.mxu1 %v8731_v10  ;;  %6619 = vmatprep.mubr.msk.f32.mxu1 %vm376_vm0, %v5185_v9  ;;  %v511_v9 = vld [vmem:[%s10700_s2 + $0x28] sm:$0xff] }
  0x5e   : > { %7831 = vmatprep.subr.bf16.mxu1 %v8739_v13  ;;  %v7602_v15 = vpack.c.bf16 %v511_v9, %v510_v8 }
  0x60   : > { %6620 = vmatmul.mubr.msk.f32.gmra.mrb[30].mxu1 %vm376_vm0, %v5186_v11 }
  0x61   : > { %7833 = vmatpush3.bf16.msra.mxu1 %v8739_v13  ;;  %6682 = vmatprep.mubr.msk.f32.mxu1 %vm376_vm0, %v5211_v12 }
  0x62   : > { %7867 = vmatprep.subr.bf16.mxu1 %v8719_v5 }
  0x64   : > { %6683 = vmatmul.mubr.msk.f32.vlgmr.msra.gmra.mrb[32].mxu1 %vm376_vm0, %v5212_v14 }
  0x65   : > { %7869 = vmatpush3.bf16.msra.mxu1 %v8719_v5  ;;  %6685 = vmatprep.mubr.msk.f32.mxu1 %vm376_vm0, %v5213_v27 }
  0x66   : > { %7871 = vmatprep.subr.bf16.mxu1 %v8722_v7 }
  0x68   : > { %6686 = vmatmul.mubr.msk.f32.gmra.mrb[34].mxu1 %vm376_vm0, %v5214_v28 }
  0x69   : > { %7873 = vmatpush3.bf16.msra.mxu1 %v8722_v7  ;;  %6688 = vmatprep.mubr.msk.f32.mxu1 %vm376_vm0, %v5215_v32  ;;  %v517_v32 = vld [vmem:[%s10700_s2 + $0x58] sm:$0xff] }
  0x6a   : > { %7875 = vmatprep.subr.bf16.mxu1 %v8731_v10 }
  0x6c   : > { %6689 = vmatmul.mubr.msk.f32.gmra.mrb[36].mxu1 %vm376_vm0, %v5216_v33 }
  0x6d   : > { %7877 = vmatpush3.bf16.msra.mxu1 %v8731_v10  ;;  %6691 = vmatprep.mubr.msk.f32.mxu1 %vm376_vm0, %v5217_v34 }
  0x6e   : > { %7879 = vmatprep.subr.bf16.mxu1 %v8739_v13 }
  0x70   : > { %6692 = vmatmul.mubr.msk.f32.gmra.mrb[38].mxu1 %vm376_vm0, %v5218_v35 }
  0x71   : > { %7881 = vmatpush3.bf16.msra.mxu1 %v8739_v13  ;;  %6754 = vmatprep.mubr.msk.f32.mxu1 %vm376_vm0, %v5243_v36  ;;  %v518_v36 = vld [vmem:[%s10700_s2 + $0x60] sm:$0xff] }
  0x72   : > { %7915 = vmatprep.subr.bf16.mxu1 %v8719_v5 }
  0x74   : > { %6755 = vmatmul.mubr.msk.f32.vlgmr.msra.gmra.mrb[40].mxu1 %vm376_vm0, %v5244_v37  ;;  %v519_v37 = vld [vmem:[%s10700_s2 + $0x68] sm:$0xff] }
  0x75   : > { %7917 = vmatpush3.bf16.msra.mxu1 %v8719_v5  ;;  %6757 = vmatprep.mubr.msk.f32.mxu1 %vm376_vm0, %v5245_v38  ;;  %v5246_v5 = vld [vmem:[%s10699_s1 + $0x1d8] sm:$0xff] }
  0x76   : > { %7919 = vmatprep.subr.bf16.mxu1 %v8722_v7 }
  0x78   : > { %6758 = vmatmul.mubr.msk.f32.gmra.mrb[42].mxu1 %vm376_vm0, %v5246_v5  ;;  %v7618_v5 = vpack.c.bf16 %v519_v37, %v518_v36  ;;  %v5133_v37 = vld [vmem:[%s10700_s2 + $0x190] sm:$0xff] }
  0x79   : > { %7921 = vmatpush3.bf16.msra.mxu1 %v8722_v7  ;;  %v5247_v7 = vld [vmem:[%s10699_s1 + $0x1e0] sm:$0xff] }
  0x7a   : > { %7923 = vmatprep.subr.bf16.mxu1 %v8731_v10  ;;  %6760 = vmatprep.mubr.msk.f32.mxu1 %vm376_vm0, %v5247_v7 }
  0x7d   : > { %7925 = vmatpush3.bf16.msra.mxu1 %v8731_v10  ;;  %v5248_v10 = vld [vmem:[%s10699_s1 + $0x1e8] sm:$0xff] }
  0x7e   : > { %7927 = vmatprep.subr.bf16.mxu1 %v8739_v13  ;;  %6761 = vmatmul.mubr.msk.f32.gmra.mrb[44].mxu1 %vm376_vm0, %v5248_v10  ;;  %v520_v10 = vld [vmem:[%s10700_s2 + $0x70] sm:$0xff] }
  0x81   : > { %7929 = vmatpush3.bf16.msra.mxu1 %v8739_v13  ;;  %v5249_v13 = vld [vmem:[%s10699_s1 + $0x1f0] sm:$0xff] }
  0x82   : > { %6763 = vmatprep.mubr.msk.f32.mxu1 %vm376_vm0, %v5249_v13  ;;  %v521_v13 = vld [vmem:[%s10700_s2 + $0x78] sm:$0xff] }
  0x83   : > { %6764 = vmatmul.mubr.msk.f32.gmra.mrb[46].mxu1 %vm376_vm0, %v5250_v39 }
  0x84   : > { %6826 = vmatprep.mubr.msk.f32.mxu1 %vm376_vm0, %v5275_v40  ;;  %v7622_v40 = vpack.c.bf16 %v521_v13, %v520_v10 }
  0x87   : > { %6827 = vmatmul.mubr.msk.f32.vlgmr.msra.gmra.mrb[48].mxu1 %vm376_vm0, %v5276_v41 }
  0x88   : > { %6829 = vmatprep.mubr.msk.f32.mxu1 %vm376_vm0, %v5277_v42  ;;  %v5099_v42 = vld [vmem:[%s10700_s2 + $0x100] sm:$0xff] }
  0x8b   : > { %6830 = vmatmul.mubr.msk.f32.gmra.mrb[50].mxu1 %vm376_vm0, %v5278_v43  ;;  %v5100_v43 = vld [vmem:[%s10700_s2 + $0x108] sm:$0xff] }
  0x8c   : > { %6832 = vmatprep.mubr.msk.f32.mxu1 %vm376_vm0, %v5279_v44 }
  0x8f   : > { %6833 = vmatmul.mubr.msk.f32.gmra.mrb[52].mxu1 %vm376_vm0, %v5280_v45  ;;  %v7642_v45 = vpack.c.bf16 %v5100_v43, %v5099_v42  ;;  %v5136_v42 = vld [vmem:[%s10700_s2 + $0x1a8] sm:$0xff] }
  0x90   : > { %6835 = vmatprep.mubr.msk.f32.mxu1 %vm376_vm0, %v5281_v46 }
  0x93   : > { %6836 = vmatmul.mubr.msk.f32.gmra.mrb[54].mxu1 %vm376_vm0, %v5282_v47  ;;  %v5101_v47 = vld [vmem:[%s10700_s2 + $0x110] sm:$0xff] }
  0x94   : > { %6898 = vmatprep.mubr.msk.f32.mxu1 %vm376_vm0, %v8698_v0 }
  0xf6   : > { %v9143_v48 = vpop.f32.mrb[0].mxu0  ;;  %v9145_v49 = vpop.f32.mrb[0].mxu1 }
  0xf7   : > { %v467_v50 = vpop.f32.mrb[1].mxu0  ;;  %v9147_v51 = vpop.f32.mrb[1].mxu1 }
  0xfa   : > { %v9149_v52 = vpop.f32.mrb[2].mxu0  ;;  %v9151_v53 = vpop.f32.mrb[2].mxu1 }
  0xfb   : > { %v9153_v54 = vpop.f32.mrb[3].mxu0  ;;  %v9155_v55 = vpop.f32.mrb[3].mxu1 }
  0xfe   : > { %v9157_v56 = vpop.f32.mrb[4].mxu0  ;;  %v9159_v57 = vpop.f32.mrb[4].mxu1 }
  0xff   : > { %v9161_v0 = vpop.f32.mrb[5].mxu0  ;;  %v9163_v58 = vpop.f32.mrb[5].mxu1 }
 0x102   : > { %v9165_v59 = vpop.f32.mrb[6].mxu0  ;;  %v9167_v60 = vpop.f32.mrb[6].mxu1 }
 0x103   : > { %v9169_v61 = vpop.f32.mrb[7].mxu0  ;;  %v9171_v62 = vpop.f32.mrb[7].mxu1 }
 0x106   : > { %v6280_v2 = vpop.f32.mrb[8].mxu0 }
 0x107   : > { %v621_v3 = vpop.f32.mrb[9].mxu0  ;;  %v9179_v6 = vpop.f32.mrb[8].mxu1 }
 0x108   : > { %6322 = vmatprep.mubr.f32.mxu0 %v621_v3  ;;  %v9187_v11 = vpop.f32.mrb[9].mxu1  ;;  %v5103_v3 = vld [vmem:[%s10700_s2 + $0x120] sm:$0xff] }
 0x109   : > { %6323 = vmatmul.mubr.f32.vlgmr.msra.gmra.mrb[16].mxu0 %v6280_v2 }
 0x10a   : > { %7597 = vmatpush3.bf16.msra.mxu0 %v9051_v31  ;;  %v6283_v12 = vpop.f32.mrb[10].mxu0  ;;  %v516_v31 = vld [vmem:[%s10700_s2 + $0x50] sm:$0xff] }
 0x10b   : > { %v631_v14 = vpop.f32.mrb[11].mxu0  ;;  %7599 = vmatprep.subr.bf16.mxu0 %v7598_v4  ;;  %v9190_v16 = vpop.f32.mrb[10].mxu1  ;;  %v7614_v34 = vpack.c.bf16 %v517_v32, %v516_v31  ;;  %v5131_v31 = vld [vmem:[%s10700_s2 + $0x180] sm:$0xff]  ;;  %v5132_v32 = vld [vmem:[%s10700_s2 + $0x188] sm:$0xff] }
 0x10c   : > { %6325 = vmatprep.mubr.f32.mxu0 %v631_v14  ;;  %v9198_v19 = vpop.f32.mrb[11].mxu1  ;;  %v5106_v14 = vld [vmem:[%s10700_s2 + $0x138] sm:$0xff] }
 0x10d   : > { %6326 = vmatmul.mubr.f32.gmra.mrb[18].mxu0 %v6283_v12  ;;  %v5105_v12 = vld [vmem:[%s10700_s2 + $0x130] sm:$0xff] }
 0x10e   : > { %7601 = vmatpush3.bf16.msra.mxu0 %v7598_v4  ;;  %v6286_v20 = vpop.f32.mrb[12].mxu0  ;;  %v5104_v4 = vld [vmem:[%s10700_s2 + $0x128] sm:$0xff] }
 0x10f   : > { %v641_v21 = vpop.f32.mrb[13].mxu0  ;;  %7603 = vmatprep.subr.bf16.mxu0 %v7602_v15  ;;  %v9200_v23 = vpop.f32.mrb[12].mxu1  ;;  %v7650_v9 = vpack.c.bf16 %v5104_v4, %v5103_v3  ;;  %v5144_v3 = vld [vmem:[%s10700_s2 + $0x1e8] sm:$0xff] }
 0x110   : > { %6328 = vmatprep.mubr.f32.mxu0 %v641_v21  ;;  %v9208_v26 = vpop.f32.mrb[13].mxu1  ;;  %v5112_v21 = vld [vmem:[%s10700_s2 + $0x168] sm:$0xff] }
 0x111   : > { %6329 = vmatmul.mubr.f32.gmra.mrb[20].mxu0 %v6286_v20  ;;  %v5111_v20 = vld [vmem:[%s10700_s2 + $0x160] sm:$0xff] }
 0x112   : > { %7605 = vmatpush3.bf16.msra.mxu0 %v7602_v15  ;;  %v6289_v27 = vpop.f32.mrb[14].mxu0  ;;  %v5108_v15 = vld [vmem:[%s10700_s2 + $0x148] sm:$0xff] }
 0x113   : > { %v651_v28 = vpop.f32.mrb[15].mxu0  ;;  %7607 = vmatprep.subr.bf16.mxu0 %v7606_v22  ;;  %v9210_v30 = vpop.f32.mrb[14].mxu1 }
 0x114   : > { %6331 = vmatprep.mubr.f32.mxu0 %v651_v28  ;;  %v9218_v33 = vpop.f32.mrb[15].mxu1  ;;  %v7670_v28 = vpack.c.bf16 %v5114_v25, %v5113_v24 }
 0x115   : > { %6332 = vmatmul.mubr.f32.gmra.mrb[22].mxu0 %v6289_v27 }
 0x116   : > { %7609 = vmatpush3.bf16.msra.mxu0 %v7606_v22  ;;  %6366 = vmatprep.mubr.f32.mxu0 %v467_v50  ;;  %v5102_v50 = vld [vmem:[%s10700_s2 + $0x118] sm:$0xff] }
 0x117   : > { %7611 = vmatprep.subr.bf16.mxu0 %v7610_v29  ;;  %v9220_v35 = vpop.f32.mrb[16].mxu1  ;;  %v7646_v1 = vpack.c.bf16 %v5102_v50, %v5101_v47  ;;  %v5138_v47 = vld [vmem:[%s10700_s2 + $0x1b8] sm:$0xff]  ;;  %v5140_v50 = vld [vmem:[%s10700_s2 + $0x1c8] sm:$0xff] }
 0x118   : > { %v9228_v38 = vpop.f32.mrb[17].mxu1 }
 0x11a   : > { %7613 = vmatpush3.bf16.msra.mxu0 %v7610_v29 }
 0x11b   : > { %7615 = vmatprep.subr.bf16.mxu0 %v7614_v34  ;;  %v9230_v7 = vpop.f32.mrb[18].mxu1 }
 0x11c   : > { %v9238_v39 = vpop.f32.mrb[19].mxu1 }
 0x11e   : > { %7617 = vmatpush3.bf16.msra.mxu0 %v7614_v34  ;;  %v7690_v34 = vpack.c.bf16 %v5132_v32, %v5131_v31  ;;  %v5168_v31 = vld [vmem:[%s10700_s2 + $0x228] sm:$0xff] }
 0x11f   : > { %7619 = vmatprep.subr.bf16.mxu0 %v7618_v5  ;;  %v9240_v41 = vpop.f32.mrb[20].mxu1 }
 0x120   : > { %v9248_v44 = vpop.f32.mrb[21].mxu1 }
 0x122   : > { %7621 = vmatpush3.bf16.msra.mxu0 %v7618_v5  ;;  %v5134_v5 = vld [vmem:[%s10700_s2 + $0x198] sm:$0xff] }
 0x123   : > { %7623 = vmatprep.subr.bf16.mxu0 %v7622_v40  ;;  %v9250_v46 = vpop.f32.mrb[22].mxu1  ;;  %v7694_v13 = vpack.c.bf16 %v5134_v5, %v5133_v37  ;;  %v5170_v37 = vld [vmem:[%s10700_s2 + $0x238] sm:$0xff]  ;;  %v5172_v5 = vld [vmem:[%s10700_s2 + $0x248] sm:$0xff] }
 0x124   : > { %v9258_v63 = vpop.f32.mrb[23].mxu1 }
 0x126   : > { %7625 = vmatpush3.bf16.msra.mxu0 %v7622_v40  ;;  %v5135_v40 = vld [vmem:[%s10700_s2 + $0x1a0] sm:$0xff] }
 0x127   : > { %7643 = vmatprep.subr.bf16.mxu0 %v7642_v45  ;;  %v9260_v2 = vpop.f32.mrb[24].mxu1  ;;  %v7698_v43 = vpack.c.bf16 %v5136_v42, %v5135_v40  ;;  %v5176_v42 = vld [vmem:[%s10700_s2 + $0x268] sm:$0xff] }
 0x128   : > { %v9268_v8 = vpop.f32.mrb[25].mxu1 }
 0x129   : > { %6367 = vmatmul.mubr.f32.vlgmr.msra.gmra.mrb[16].mxu0 %v9143_v48  ;;  %v7654_v48 = vpack.c.bf16 %v5106_v14, %v5105_v12  ;;  %v5146_v12 = vld [vmem:[%s10700_s2 + $0x1f8] sm:$0xff] }
 0x12a   : > { %6369 = vmatprep.mubr.f32.mxu0 %v9153_v54  ;;  %7645 = vmatpush3.bf16.msra.mxu0 %v7642_v45  ;;  %v5107_v54 = vld [vmem:[%s10700_s2 + $0x140] sm:$0xff]  ;;  %v5137_v45 = vld [vmem:[%s10700_s2 + $0x1b0] sm:$0xff] }
 0x12b   : > { %7647 = vmatprep.subr.bf16.mxu0 %v7646_v1  ;;  %v9296_v18 = vpop.f32.mrb[26].mxu1 }
 0x12d   : > { %6370 = vmatmul.mubr.f32.gmra.mrb[18].mxu0 %v9149_v52  ;;  %v7658_v52 = vpack.c.bf16 %v5108_v15, %v5107_v54  ;;  %v5163_v15 = vld [vmem:[%s10700_s2 + $0x200] sm:$0xff] }
 0x12e   : > { %6372 = vmatprep.mubr.f32.mxu0 %v9161_v0  ;;  %7649 = vmatpush3.bf16.msra.mxu0 %v7646_v1  ;;  %v5109_v0 = vld [vmem:[%s10700_s2 + $0x150] sm:$0xff]  ;;  %v5142_v1 = vld [vmem:[%s10700_s2 + $0x1d8] sm:$0xff] }
 0x12f   : > { %7651 = vmatprep.subr.bf16.mxu0 %v7650_v9 }
 0x131   : > { %6373 = vmatmul.mubr.f32.gmra.mrb[20].mxu0 %v9157_v56  ;;  %v7662_v56 = vpack.c.bf16 %v5110_v17, %v5109_v0 }
 0x132   : > { %6375 = vmatprep.mubr.f32.mxu0 %v9169_v61  ;;  %7653 = vmatpush3.bf16.msra.mxu0 %v7650_v9  ;;  %v9298_v61 = vpop.f32.mrb[27].mxu1 }
 0x133   : > { %7655 = vmatprep.subr.bf16.mxu0 %v7654_v48  ;;  %v9306_v22 = vpop.f32.mrb[28].mxu1 }
 0x135   : > { %6376 = vmatmul.mubr.f32.gmra.mrb[22].mxu0 %v9165_v59  ;;  %v7666_v59 = vpack.c.bf16 %v5112_v21, %v5111_v20  ;;  %v5165_v20 = vld [vmem:[%s10700_s2 + $0x210] sm:$0xff]  ;;  %v5166_v21 = vld [vmem:[%s10700_s2 + $0x218] sm:$0xff] }
 0x136   : > { %7657 = vmatpush3.bf16.msra.mxu0 %v7654_v48  ;;  %6438 = vmatprep.mubr.f32.mxu0 %v9147_v51  ;;  %v9308_v51 = vpop.f32.mrb[29].mxu1  ;;  %v7742_v24 = vpack.c.bf16 %v5166_v21, %v5165_v20  ;;  %v5201_v21 = vld [vmem:[%s10700_s2 + $0x2b0] sm:$0xff] }
 0x137   : > { %7659 = vmatprep.subr.bf16.mxu0 %v7658_v52  ;;  %v9316_v27 = vpop.f32.mrb[30].mxu1 }
 0x138   : > { %v9318_v29 = vpop.f32.mrb[31].mxu1 }
 0x139   : > { %v9326_v36 = vpop.f32.mrb[32].mxu1 }
 0x13a   : > { %7661 = vmatpush3.bf16.msra.mxu0 %v7658_v52  ;;  %v9334_v10 = vpop.f32.mrb[33].mxu1  ;;  %v5164_v52 = vld [vmem:[%s10700_s2 + $0x208] sm:$0xff] }
 0x13b   : > { %7663 = vmatprep.subr.bf16.mxu0 %v7662_v56  ;;  %v9374_v4 = vpop.f32.mrb[34].mxu1 }
 0x13c   : > { %v9376_v9 = vpop.f32.mrb[35].mxu1 }
 0x13e   : > { %7665 = vmatpush3.bf16.msra.mxu0 %v7662_v56  ;;  %v7738_v56 = vpack.c.bf16 %v5164_v52, %v5163_v15  ;;  %v5200_v15 = vld [vmem:[%s10700_s2 + $0x2a8] sm:$0xff] }
 0x13f   : > { %7667 = vmatprep.subr.bf16.mxu0 %v7666_v59  ;;  %v9384_v14 = vpop.f32.mrb[36].mxu1 }
 0x140   : > { %v9386_v48 = vpop.f32.mrb[37].mxu1 }
 0x142   : > { %7669 = vmatpush3.bf16.msra.mxu0 %v7666_v59 }
 0x143   : > { %7671 = vmatprep.subr.bf16.mxu0 %v7670_v28  ;;  %v9394_v0 = vpop.f32.mrb[38].mxu1 }
 0x144   : > { %v9396_v17 = vpop.f32.mrb[39].mxu1 }
 0x146   : > { %7673 = vmatpush3.bf16.msra.mxu0 %v7670_v28  ;;  %v5167_v28 = vld [vmem:[%s10700_s2 + $0x220] sm:$0xff] }
 0x147   : > { %7691 = vmatprep.subr.bf16.mxu0 %v7690_v34  ;;  %v9404_v59 = vpop.f32.mrb[40].mxu1  ;;  %v7746_v32 = vpack.c.bf16 %v5168_v31, %v5167_v28  ;;  %v5203_v31 = vld [vmem:[%s10700_s2 + $0x2c0] sm:$0xff] }
 0x148   : > { %v9406_v25 = vpop.f32.mrb[41].mxu1 }
 0x149   : > { %6439 = vmatmul.mubr.f32.vlgmr.msra.gmra.mrb[16].mxu0 %v9145_v49  ;;  %v7702_v49 = vpack.c.bf16 %v5138_v47, %v5137_v45  ;;  %v5178_v45 = vld [vmem:[%s10700_s2 + $0x278] sm:$0xff] }
 0x14a   : > { %7693 = vmatpush3.bf16.msra.mxu0 %v7690_v34  ;;  %6441 = vmatprep.mubr.f32.mxu0 %v9155_v55  ;;  %v5139_v55 = vld [vmem:[%s10700_s2 + $0x1c0] sm:$0xff]  ;;  %v5169_v34 = vld [vmem:[%s10700_s2 + $0x230] sm:$0xff] }
 0x14b   : > { %7695 = vmatprep.subr.bf16.mxu0 %v7694_v13  ;;  %v9440_v40 = vpop.f32.mrb[42].mxu1 }
 0x14d   : > { %6442 = vmatmul.mubr.f32.gmra.mrb[18].mxu0 %v9151_v53  ;;  %v7706_v53 = vpack.c.bf16 %v5140_v50, %v5139_v55  ;;  %v5195_v50 = vld [vmem:[%s10700_s2 + $0x280] sm:$0xff] }
 0x14e   : > { %7697 = vmatpush3.bf16.msra.mxu0 %v7694_v13  ;;  %6444 = vmatprep.mubr.f32.mxu0 %v9163_v58  ;;  %v5141_v58 = vld [vmem:[%s10700_s2 + $0x1d0] sm:$0xff]  ;;  %v5174_v13 = vld [vmem:[%s10700_s2 + $0x258] sm:$0xff] }
 0x14f   : > { %7699 = vmatprep.subr.bf16.mxu0 %v7698_v43 }
 0x151   : > { %6445 = vmatmul.mubr.f32.gmra.mrb[20].mxu0 %v9159_v57  ;;  %v7710_v57 = vpack.c.bf16 %v5142_v1, %v5141_v58 }
 0x152   : > { %7701 = vmatpush3.bf16.msra.mxu0 %v7698_v43  ;;  %6447 = vmatprep.mubr.f32.mxu0 %v9171_v62  ;;  %v5143_v62 = vld [vmem:[%s10700_s2 + $0x1e0] sm:$0xff]  ;;  %v9448_v43 = vpop.f32.mrb[43].mxu1 }
 0x153   : > { %7703 = vmatprep.subr.bf16.mxu0 %v7702_v49  ;;  %v9456_v47 = vpop.f32.mrb[44].mxu1 }
 0x155   : > { %6448 = vmatmul.mubr.f32.gmra.mrb[22].mxu0 %v9167_v60  ;;  %v7714_v60 = vpack.c.bf16 %v5144_v3, %v5143_v62  ;;  %v5197_v62 = vld [vmem:[%s10700_s2 + $0x290] sm:$0xff]  ;;  %v5198_v3 = vld [vmem:[%s10700_s2 + $0x298] sm:$0xff] }
 0x156   : > { %7705 = vmatpush3.bf16.msra.mxu0 %v7702_v49  ;;  %6510 = vmatprep.mubr.f32.mxu0 %v9187_v11  ;;  %v5145_v11 = vld [vmem:[%s10700_s2 + $0x1f0] sm:$0xff]  ;;  %v9458_v49 = vpop.f32.mrb[45].mxu1 }
 0x157   : > { %7707 = vmatprep.subr.bf16.mxu0 %v7706_v53  ;;  %v7718_v54 = vpack.c.bf16 %v5146_v12, %v5145_v11  ;;  %v9466_v58 = vpop.f32.mrb[46].mxu1  ;;  %v7790_v12 = vpack.c.bf16 %v5198_v3, %v5197_v62  ;;  %v5238_v62 = vld [vmem:[%s10700_s2 + $0x358] sm:$0xff]  ;;  %v5240_v3 = vld [vmem:[%s10700_s2 + $0x368] sm:$0xff] }
 0x158   : > { %v9468_v1 = vpop.f32.mrb[47].mxu1 }
 0x15a   : > { %7709 = vmatpush3.bf16.msra.mxu0 %v7706_v53  ;;  %v5196_v53 = vld [vmem:[%s10700_s2 + $0x288] sm:$0xff] }
 0x15b   : > { %7711 = vmatprep.subr.bf16.mxu0 %v7710_v57 }
 0x15e   : > { %7713 = vmatpush3.bf16.msra.mxu0 %v7710_v57  ;;  %v7786_v57 = vpack.c.bf16 %v5196_v53, %v5195_v50  ;;  %v5233_v50 = vld [vmem:[%s10700_s2 + $0x330] sm:$0xff]  ;;  %v5234_v53 = vld [vmem:[%s10700_s2 + $0x338] sm:$0xff] }
 0x15f   : > { %7715 = vmatprep.subr.bf16.mxu0 %v7714_v60 }
 0x162   : > { %7717 = vmatpush3.bf16.msra.mxu0 %v7714_v60  ;;  %v9476_v60 = vpop.f32.mrb[48].mxu1 }
 0x163   : > { %7719 = vmatprep.subr.bf16.mxu0 %v7718_v54  ;;  %v9478_v11 = vpop.f32.mrb[49].mxu1 }
 0x164   : > { %v9487_v52 = vpop.f32.mrb[50].mxu1 }
 0x166   : > { %7721 = vmatpush3.bf16.msra.mxu0 %v7718_v54  ;;  %v5199_v54 = vld [vmem:[%s10700_s2 + $0x2a0] sm:$0xff] }
 0x167   : > { %7739 = vmatprep.subr.bf16.mxu0 %v7738_v56  ;;  %v7794_v20 = vpack.c.bf16 %v5200_v15, %v5199_v54  ;;  %v5259_v15 = vld [vmem:[%s10700_s2 + $0x380] sm:$0xff] }
 0x169   : > { %6511 = vmatmul.mubr.f32.vlgmr.msra.gmra.mrb[16].mxu0 %v9179_v6  ;;  %v7750_v6 = vpack.c.bf16 %v5170_v37, %v5169_v34  ;;  %v5205_v37 = vld [vmem:[%s10700_s2 + $0x2d0] sm:$0xff] }
 0x16a   : > { %7741 = vmatpush3.bf16.msra.mxu0 %v7738_v56  ;;  %6513 = vmatprep.mubr.f32.mxu0 %v9198_v19  ;;  %v5171_v19 = vld [vmem:[%s10700_s2 + $0x240] sm:$0xff]  ;;  %v9490_v56 = vpop.f32.mrb[51].mxu1 }
 0x16b   : > { %7743 = vmatprep.subr.bf16.mxu0 %v7742_v24 }
 0x16d   : > { %6514 = vmatmul.mubr.f32.gmra.mrb[18].mxu0 %v9190_v16  ;;  %v7754_v16 = vpack.c.bf16 %v5172_v5, %v5171_v19  ;;  %v5208_v19 = vld [vmem:[%s10700_s2 + $0x2e8] sm:$0xff] }
 0x16e   : > { %7745 = vmatpush3.bf16.msra.mxu0 %v7742_v24  ;;  %6516 = vmatprep.mubr.f32.mxu0 %v9208_v26  ;;  %v5173_v26 = vld [vmem:[%s10700_s2 + $0x250] sm:$0xff]  ;;  %v5202_v24 = vld [vmem:[%s10700_s2 + $0x2b8] sm:$0xff] }
 0x16f   : > { %7747 = vmatprep.subr.bf16.mxu0 %v7746_v32  ;;  %v7798_v28 = vpack.c.bf16 %v5202_v24, %v5201_v21  ;;  %v5261_v24 = vld [vmem:[%s10700_s2 + $0x390] sm:$0xff] }
 0x171   : > { %6517 = vmatmul.mubr.f32.gmra.mrb[20].mxu0 %v9200_v23  ;;  %v7758_v23 = vpack.c.bf16 %v5174_v13, %v5173_v26  ;;  %v5227_v26 = vld [vmem:[%s10700_s2 + $0x300] sm:$0xff]  ;;  %v5228_v13 = vld [vmem:[%s10700_s2 + $0x308] sm:$0xff] }
 0x172   : > { %7749 = vmatpush3.bf16.msra.mxu0 %v7746_v32  ;;  %6519 = vmatprep.mubr.f32.mxu0 %v9218_v33  ;;  %v5175_v33 = vld [vmem:[%s10700_s2 + $0x260] sm:$0xff]  ;;  %v5204_v32 = vld [vmem:[%s10700_s2 + $0x2c8] sm:$0xff] }
 0x173   : > { %7751 = vmatprep.subr.bf16.mxu0 %v7750_v6  ;;  %v7802_v34 = vpack.c.bf16 %v5204_v32, %v5203_v31  ;;  %v5263_v32 = vld [vmem:[%s10700_s2 + $0x3a0] sm:$0xff] }
 0x175   : > { %6520 = vmatmul.mubr.f32.gmra.mrb[22].mxu0 %v9210_v30  ;;  %v7762_v30 = vpack.c.bf16 %v5176_v42, %v5175_v33  ;;  %v5229_v33 = vld [vmem:[%s10700_s2 + $0x310] sm:$0xff]  ;;  %v5230_v42 = vld [vmem:[%s10700_s2 + $0x318] sm:$0xff] }
 0x176   : > { %7753 = vmatpush3.bf16.msra.mxu0 %v7750_v6  ;;  %6582 = vmatprep.mubr.f32.mxu0 %v9228_v38  ;;  %v5177_v38 = vld [vmem:[%s10700_s2 + $0x270] sm:$0xff]  ;;  %v5206_v6 = vld [vmem:[%s10700_s2 + $0x2d8] sm:$0xff] }
 0x177   : > { %7755 = vmatprep.subr.bf16.mxu0 %v7754_v16  ;;  %v7766_v55 = vpack.c.bf16 %v5178_v45, %v5177_v38  ;;  %v5231_v38 = vld [vmem:[%s10700_s2 + $0x320] sm:$0xff]  ;;  %v5232_v45 = vld [vmem:[%s10700_s2 + $0x328] sm:$0xff] }
 0x17a   : > { %7757 = vmatpush3.bf16.msra.mxu0 %v7754_v16 }
 0x17b   : > { %7759 = vmatprep.subr.bf16.mxu0 %v7758_v23 }
 0x17e   : > { %7761 = vmatpush3.bf16.msra.mxu0 %v7758_v23  ;;  %v7834_v23 = vpack.c.bf16 %v5228_v13, %v5227_v26  ;;  %v5292_v26 = vld [vmem:[%s10700_s2 + $0x408] sm:$0xff] }
 0x17f   : > { %7763 = vmatprep.subr.bf16.mxu0 %v7762_v30 }
 0x182   : > { %7765 = vmatpush3.bf16.msra.mxu0 %v7762_v30  ;;  %v7838_v30 = vpack.c.bf16 %v5230_v42, %v5229_v33  ;;  %v5294_v33 = vld [vmem:[%s10700_s2 + $0x418] sm:$0xff] }
 0x183   : > { %7767 = vmatprep.subr.bf16.mxu0 %v7766_v55 }
 0x186   : > { %7769 = vmatpush3.bf16.msra.mxu0 %v7766_v55  ;;  %v7842_v55 = vpack.c.bf16 %v5232_v45, %v5231_v38  ;;  %v5296_v38 = vld [vmem:[%s10700_s2 + $0x428] sm:$0xff] }
 0x187   : > { %7787 = vmatprep.subr.bf16.mxu0 %v7786_v57 }
 0x189   : > { %6583 = vmatmul.mubr.f32.vlgmr.msra.gmra.mrb[16].mxu0 %v9220_v35  ;;  %v9499_v35 = vpop.f32.mrb[52].mxu1 }
 0x18a   : > { %7789 = vmatpush3.bf16.msra.mxu0 %v7786_v57  ;;  %6585 = vmatprep.mubr.f32.mxu0 %v9238_v39  ;;  %v9502_v39 = vpop.f32.mrb[53].mxu1  ;;  %v5236_v57 = vld [vmem:[%s10700_s2 + $0x348] sm:$0xff] }
 0x18b   : > { %7791 = vmatprep.subr.bf16.mxu0 %v7790_v12 }
 0x18d   : > { %6586 = vmatmul.mubr.f32.gmra.mrb[18].mxu0 %v9230_v7  ;;  %v9511_v7 = vpop.f32.mrb[54].mxu1 }
 0x18e   : > { %7793 = vmatpush3.bf16.msra.mxu0 %v7790_v12  ;;  %6588 = vmatprep.mubr.f32.mxu0 %v9248_v44  ;;  %v9514_v44 = vpop.f32.mrb[55].mxu1 }
 0x18f   : > { %7795 = vmatprep.subr.bf16.mxu0 %v7794_v20 }
 0x191   : > { %6589 = vmatmul.mubr.f32.gmra.mrb[20].mxu0 %v9240_v41  ;;  %v7806_v41 = vpack.c.bf16 %v5206_v6, %v5205_v37  ;;  %v5265_v6 = vld [vmem:[%s10700_s2 + $0x3b0] sm:$0xff] }
 0x192   : > { %7797 = vmatpush3.bf16.msra.mxu0 %v7794_v20  ;;  %6591 = vmatprep.mubr.f32.mxu0 %v9258_v63  ;;  %v5207_v63 = vld [vmem:[%s10700_s2 + $0x2e0] sm:$0xff]  ;;  %v5260_v20 = vld [vmem:[%s10700_s2 + $0x388] sm:$0xff] }
 0x193   : > { %7799 = vmatprep.subr.bf16.mxu0 %v7798_v28  ;;  %v7810_v5 = vpack.c.bf16 %v5208_v19, %v5207_v63  ;;  %v7882_v21 = vpack.c.bf16 %v5260_v20, %v5259_v15  ;;  %v5268_v63 = vld [vmem:[%s10700_s2 + $0x3c8] sm:$0xff]  ;;  %v5270_v19 = vld [vmem:[%s10700_s2 + $0x3d8] sm:$0xff]  ;;  %v5330_v15 = vld [vmem:[%s10702_s4 + $0xb0] sm:$0xff] }
 0x194   : > { %v5331_v20 = vld [vmem:[%s10702_s4 + $0xb8] sm:$0xff] }
 0x195   : > { %6592 = vmatmul.mubr.f32.gmra.mrb[22].mxu0 %v9250_v46  ;;  %v5209_v46 = vld [vmem:[%s10700_s2 + $0x2f0] sm:$0xff] }
 0x196   : > { %7801 = vmatpush3.bf16.msra.mxu0 %v7798_v28  ;;  %6654 = vmatprep.mubr.f32.mxu0 %v9268_v8  ;;  %v5210_v8 = vld [vmem:[%s10700_s2 + $0x2f8] sm:$0xff] }
 0x197   : > { %7803 = vmatprep.subr.bf16.mxu0 %v7802_v34  ;;  %v7814_v16 = vpack.c.bf16 %v5210_v8, %v5209_v46  ;;  %v5262_v28 = vld [vmem:[%s10700_s2 + $0x398] sm:$0xff] }
 0x198   : > { %v7886_v31 = vpack.c.bf16 %v5262_v28, %v5261_v24  ;;  %v5335_v24 = vld [vmem:[%s10702_s4 + $0xd8] sm:$0xff] }
 0x19a   : > { %7805 = vmatpush3.bf16.msra.mxu0 %v7802_v34  ;;  %v5264_v34 = vld [vmem:[%s10700_s2 + $0x3a8] sm:$0xff] }
 0x19b   : > { %7807 = vmatprep.subr.bf16.mxu0 %v7806_v41  ;;  %v7890_v37 = vpack.c.bf16 %v5264_v34, %v5263_v32  ;;  %v5339_v32 = vld [vmem:[%s10702_s4 + $0xf8] sm:$0xff] }
 0x19e   : > { %7809 = vmatpush3.bf16.msra.mxu0 %v7806_v41  ;;  %v5266_v41 = vld [vmem:[%s10700_s2 + $0x3b8] sm:$0xff] }
 0x19f   : > { %7811 = vmatprep.subr.bf16.mxu0 %v7810_v5 }
 0x1a2   : > { %7813 = vmatpush3.bf16.msra.mxu0 %v7810_v5  ;;  %v5272_v5 = vld [vmem:[%s10700_s2 + $0x3e8] sm:$0xff] }
 0x1a3   : > { %7815 = vmatprep.subr.bf16.mxu0 %v7814_v16 }
 0x1a6   : > { %7817 = vmatpush3.bf16.msra.mxu0 %v7814_v16  ;;  %v5291_v16 = vld [vmem:[%s10700_s2 + $0x400] sm:$0xff] }
 0x1a7   : > { %7835 = vmatprep.subr.bf16.mxu0 %v7834_v23  ;;  %v7930_v13 = vpack.c.bf16 %v5292_v26, %v5291_v16 }
 0x1a9   : > { %6655 = vmatmul.mubr.f32.vlgmr.msra.gmra.mrb[16].mxu0 %v9260_v2  ;;  %v7846_v2 = vpack.c.bf16 %v5234_v53, %v5233_v50  ;;  %v5298_v50 = vld [vmem:[%s10700_s2 + $0x438] sm:$0xff]  ;;  %v5300_v53 = vld [vmem:[%s10700_s2 + $0x448] sm:$0xff] }
 0x1aa   : > { %7837 = vmatpush3.bf16.msra.mxu0 %v7834_v23  ;;  %6657 = vmatprep.mubr.f32.mxu0 %v9298_v61  ;;  %v5235_v61 = vld [vmem:[%s10700_s2 + $0x340] sm:$0xff]  ;;  %v5293_v23 = vld [vmem:[%s10700_s2 + $0x410] sm:$0xff] }
 0x1ab   : > { %7839 = vmatprep.subr.bf16.mxu0 %v7838_v30  ;;  %v7934_v42 = vpack.c.bf16 %v5294_v33, %v5293_v23  ;;  %v8538_v23 = vld [vmem:[%s8710_s20 + $0x18] sm:$0xff] }
 0x1ad   : > { %6658 = vmatmul.mubr.f32.gmra.mrb[18].mxu0 %v9296_v18  ;;  %v7850_v18 = vpack.c.bf16 %v5236_v57, %v5235_v61  ;;  %v5304_v61 = vld [vmem:[%s10700_s2 + $0x468] sm:$0xff] }
 0x1ae   : > { %7841 = vmatpush3.bf16.msra.mxu0 %v7838_v30  ;;  %6660 = vmatprep.mubr.f32.mxu0 %v9308_v51  ;;  %v5237_v51 = vld [vmem:[%s10700_s2 + $0x350] sm:$0xff]  ;;  %v5295_v30 = vld [vmem:[%s10700_s2 + $0x420] sm:$0xff] }
 0x1af   : > { %7843 = vmatprep.subr.bf16.mxu0 %v7842_v55  ;;  %v7938_v45 = vpack.c.bf16 %v5296_v38, %v5295_v30  ;;  %v8539_v38 = vld [vmem:[%s8710_s20 + $0x10] sm:$0xff] }
 0x1b1   : > { %6661 = vmatmul.mubr.f32.gmra.mrb[20].mxu0 %v9306_v22  ;;  %v7854_v22 = vpack.c.bf16 %v5238_v62, %v5237_v51  ;;  %v5324_v51 = vld [vmem:[%s10702_s4 + $0x80] sm:$0xff]  ;;  %v5325_v62 = vld [vmem:[%s10702_s4 + $0x88] sm:$0xff] }
 0x1b2   : > { %7845 = vmatpush3.bf16.msra.mxu0 %v7842_v55  ;;  %6663 = vmatprep.mubr.f32.mxu0 %v9318_v29  ;;  %v5239_v29 = vld [vmem:[%s10700_s2 + $0x360] sm:$0xff]  ;;  %v5297_v55 = vld [vmem:[%s10700_s2 + $0x430] sm:$0xff] }
 0x1b3   : > { %7847 = vmatprep.subr.bf16.mxu0 %v7846_v2  ;;  %v7858_v12 = vpack.c.bf16 %v5240_v3, %v5239_v29  ;;  %v5326_v29 = vld [vmem:[%s10702_s4 + $0x90] sm:$0xff]  ;;  %v5327_v3 = vld [vmem:[%s10702_s4 + $0x98] sm:$0xff] }
 0x1b5   : > { %6664 = vmatmul.mubr.f32.gmra.mrb[22].mxu0 %v9316_v27  ;;  %v5241_v27 = vld [vmem:[%s10700_s2 + $0x370] sm:$0xff] }
 0x1b6   : > { %7849 = vmatpush3.bf16.msra.mxu0 %v7846_v2  ;;  %6726 = vmatprep.mubr.f32.mxu0 %v9334_v10  ;;  %v5242_v10 = vld [vmem:[%s10700_s2 + $0x378] sm:$0xff] }
 0x1b7   : > { %7851 = vmatprep.subr.bf16.mxu0 %v7850_v18  ;;  %v7862_v54 = vpack.c.bf16 %v5242_v10, %v5241_v27  ;;  %v5302_v2 = vld [vmem:[%s10700_s2 + $0x458] sm:$0xff]  ;;  %v5328_v27 = vld [vmem:[%s10702_s4 + $0xa0] sm:$0xff]  ;;  %v5329_v10 = vld [vmem:[%s10702_s4 + $0xa8] sm:$0xff] }
 0x1ba   : > { %7853 = vmatpush3.bf16.msra.mxu0 %v7850_v18 }
 0x1bb   : > { %7855 = vmatprep.subr.bf16.mxu0 %v7854_v22 }
 0x1be   : > { %7857 = vmatpush3.bf16.msra.mxu0 %v7854_v22  ;;  %v7994_v22 = vpack.c.bf16 %v5325_v62, %v5324_v51  ;;  %v8542_v51 = vld [vmem:[%s8710_s20 + $0x38] sm:$0xff] }
 0x1bf   : > { %7859 = vmatprep.subr.bf16.mxu0 %v7858_v12 }
 0x1c2   : > { %7861 = vmatpush3.bf16.msra.mxu0 %v7858_v12  ;;  %v7998_v12 = vpack.c.bf16 %v5327_v3, %v5326_v29 }
 0x1c3   : > { %7863 = vmatprep.subr.bf16.mxu0 %v7862_v54 }
 0x1c6   : > { %7865 = vmatpush3.bf16.msra.mxu0 %v7862_v54  ;;  %v8002_v54 = vpack.c.bf16 %v5329_v10, %v5328_v27  ;;  %v8545_v27 = vld [vmem:[%s10699_s1 + $0x10] sm:$0xff]  ;;  %v8546_v10 = vld [vmem:[%s10699_s1 + $0x18] sm:$0xff] }
 0x1c7   : > { %7883 = vmatprep.subr.bf16.mxu0 %v7882_v21 }
 0x1c9   : > { %6727 = vmatmul.mubr.f32.vlgmr.msra.gmra.mrb[16].mxu0 %v9326_v36  ;;  %v7894_v36 = vpack.c.bf16 %v5266_v41, %v5265_v6 }
 0x1ca   : > { %7885 = vmatpush3.bf16.msra.mxu0 %v7882_v21  ;;  %6729 = vmatprep.mubr.f32.mxu0 %v9376_v9  ;;  %v5267_v9 = vld [vmem:[%s10700_s2 + $0x3c0] sm:$0xff]  ;;  %v5333_v21 = vld [vmem:[%s10702_s4 + $0xc8] sm:$0xff] }
 0x1cb   : > { %7887 = vmatprep.subr.bf16.mxu0 %v7886_v31 }
 0x1cd   : > { %6730 = vmatmul.mubr.f32.gmra.mrb[18].mxu0 %v9374_v4  ;;  %v7898_v4 = vpack.c.bf16 %v5268_v63, %v5267_v9 }
 0x1ce   : > { %7889 = vmatpush3.bf16.msra.mxu0 %v7886_v31  ;;  %6732 = vmatprep.mubr.f32.mxu0 %v9386_v48  ;;  %v5269_v48 = vld [vmem:[%s10700_s2 + $0x3d0] sm:$0xff] }
 0x1cf   : > { %7891 = vmatprep.subr.bf16.mxu0 %v7890_v37  ;;  %v5338_v31 = vld [vmem:[%s10702_s4 + $0xf0] sm:$0xff] }
 0x1d0   : > { %v8022_v34 = vpack.c.bf16 %v5339_v32, %v5338_v31  ;;  %v8552_v31 = vld [vmem:[%s10699_s1 + $0x48] sm:$0xff]  ;;  %v8553_v32 = vld [vmem:[%s10699_s1 + $0x50] sm:$0xff] }
 0x1d1   : > { %6733 = vmatmul.mubr.f32.gmra.mrb[20].mxu0 %v9384_v14  ;;  %v7902_v14 = vpack.c.bf16 %v5270_v19, %v5269_v48  ;;  %v8536_v19 = vld [vmem:[%s8710_s20 + $0x8] sm:$0xff] }
 0x1d2   : > { %7893 = vmatpush3.bf16.msra.mxu0 %v7890_v37  ;;  %6735 = vmatprep.mubr.f32.mxu0 %v9396_v17  ;;  %v5271_v17 = vld [vmem:[%s10700_s2 + $0x3e0] sm:$0xff] }
 0x1d3   : > { %7895 = vmatprep.subr.bf16.mxu0 %v7894_v36  ;;  %v7906_v46 = vpack.c.bf16 %v5272_v5, %v5271_v17  ;;  %v5307_v37 = vld [vmem:[%s10701_s3] ss:$0 sm:$0xff] }
 0x1d5   : > { %6736 = vmatmul.mubr.f32.gmra.mrb[22].mxu0 %v9394_v0  ;;  %v5273_v0 = vld [vmem:[%s10700_s2 + $0x3f0] sm:$0xff] }
 0x1d6   : > { %7897 = vmatpush3.bf16.msra.mxu0 %v7894_v36  ;;  %6798 = vmatprep.mubr.f32.mxu0 %v9406_v25  ;;  %v5274_v25 = vld [vmem:[%s10700_s2 + $0x3f8] sm:$0xff] }
 0x1d7   : > { %7899 = vmatprep.subr.bf16.mxu0 %v7898_v4  ;;  %v7910_v8 = vpack.c.bf16 %v5274_v25, %v5273_v0 }
 0x1da   : > { %7901 = vmatpush3.bf16.msra.mxu0 %v7898_v4 }
 0x1db   : > { %7903 = vmatprep.subr.bf16.mxu0 %v7902_v14 }
 0x1de   : > { %7905 = vmatpush3.bf16.msra.mxu0 %v7902_v14 }
 0x1df   : > { %7907 = vmatprep.subr.bf16.mxu0 %v7906_v46 }
 0x1e2   : > { %7909 = vmatpush3.bf16.msra.mxu0 %v7906_v46  ;;  %v8537_v46 = vld [vmem:[%s8710_s20] sm:$0xff] }
 0x1e3   : > { %7911 = vmatprep.subr.bf16.mxu0 %v7910_v8 }
 0x1e6   : > { %7913 = vmatpush3.bf16.msra.mxu0 %v7910_v8 }
 0x1e7   : > { %7931 = vmatprep.subr.bf16.mxu0 %v7930_v13 }
 0x1e9   : > { %6799 = vmatmul.mubr.f32.vlgmr.msra.gmra.mrb[16].mxu0 %v9404_v59  ;;  %v7942_v59 = vpack.c.bf16 %v5298_v50, %v5297_v55 }
 0x1ea   : > { %7933 = vmatpush3.bf16.msra.mxu0 %v7930_v13  ;;  %6801 = vmatprep.mubr.f32.mxu0 %v9448_v43  ;;  %v5299_v43 = vld [vmem:[%s10700_s2 + $0x440] sm:$0xff] }
 0x1eb   : > { %7935 = vmatprep.subr.bf16.mxu0 %v7934_v42 }
 0x1ed   : > { %6802 = vmatmul.mubr.f32.gmra.mrb[18].mxu0 %v9440_v40  ;;  %v7946_v40 = vpack.c.bf16 %v5300_v53, %v5299_v43 }
 0x1ee   : > { %7937 = vmatpush3.bf16.msra.mxu0 %v7934_v42  ;;  %6804 = vmatprep.mubr.f32.mxu0 %v9458_v49  ;;  %v5301_v49 = vld [vmem:[%s10700_s2 + $0x450] sm:$0xff] }
 0x1ef   : > { %7939 = vmatprep.subr.bf16.mxu0 %v7938_v45 }
 0x1f1   : > { %6805 = vmatmul.mubr.f32.gmra.mrb[20].mxu0 %v9456_v47  ;;  %v7950_v47 = vpack.c.bf16 %v5302_v2, %v5301_v49 }
 0x1f2   : > { %7941 = vmatpush3.bf16.msra.mxu0 %v7938_v45  ;;  %6807 = vmatprep.mubr.f32.mxu0 %v9468_v1  ;;  %v5303_v1 = vld [vmem:[%s10700_s2 + $0x460] sm:$0xff] }
 0x1f3   : > { %7943 = vmatprep.subr.bf16.mxu0 %v7942_v59  ;;  %v7954_v57 = vpack.c.bf16 %v5304_v61, %v5303_v1  ;;  %v8541_v1 = vld [vmem:[%s8710_s20 + $0x20] sm:$0xff] }
 0x1f5   : > { %6808 = vmatmul.mubr.f32.gmra.mrb[22].mxu0 %v9466_v58  ;;  %v5305_v58 = vld [vmem:[%s10700_s2 + $0x470] sm:$0xff] }
 0x1f6   : > { %7945 = vmatpush3.bf16.msra.mxu0 %v7942_v59  ;;  %6870 = vmatprep.mubr.f32.mxu0 %v9478_v11  ;;  %v5306_v11 = vld [vmem:[%s10700_s2 + $0x478] sm:$0xff] }
 0x1f7   : > { %7947 = vmatprep.subr.bf16.mxu0 %v7946_v40  ;;  %v7958_v18 = vpack.c.bf16 %v5306_v11, %v5305_v58 }
 0x1fa   : > { %7949 = vmatpush3.bf16.msra.mxu0 %v7946_v40  ;;  %v8540_v40 = vld [vmem:[%s8710_s20 + $0x28] sm:$0xff] }
 0x1fb   : > { %7951 = vmatprep.subr.bf16.mxu0 %v7950_v47 }
 0x1fe   : > { %7953 = vmatpush3.bf16.msra.mxu0 %v7950_v47 }
 0x1ff   : > { %7955 = vmatprep.subr.bf16.mxu0 %v7954_v57 }
 0x202   : > { %7957 = vmatpush3.bf16.msra.mxu0 %v7954_v57 }
 0x203   : > { %7959 = vmatprep.subr.bf16.mxu0 %v7958_v18 }
 0x206   : > { %7961 = vmatpush3.bf16.msra.mxu0 %v7958_v18 }
 0x207   : > { %7995 = vmatprep.subr.bf16.mxu0 %v7994_v22 }
 0x209   : > { %6871 = vmatmul.mubr.f32.vlgmr.msra.gmra.mrb[16].mxu0 %v9476_v60  ;;  %v8006_v60 = vpack.c.bf16 %v5331_v20, %v5330_v15  ;;  %v2899_v15 = vld [vmem:[%s10702_s4] sm:$0xff]  ;;  %v2900_v20 = vld [vmem:[%s10702_s4 + $0x8] sm:$0xff] }
 0x20a   : > { %6873 = vmatprep.mubr.f32.mxu0 %v9490_v56  ;;  %7997 = vmatpush3.bf16.msra.mxu0 %v7994_v22  ;;  %v5332_v56 = vld [vmem:[%s10702_s4 + $0xc0] sm:$0xff]  ;;  %v8543_v22 = vld [vmem:[%s8710_s20 + $0x30] sm:$0xff] }
 0x20b   : > { %7999 = vmatprep.subr.bf16.mxu0 %v7998_v12 }
 0x20d   : > { %6874 = vmatmul.mubr.f32.gmra.mrb[18].mxu0 %v9487_v52  ;;  %v8010_v52 = vpack.c.bf16 %v5333_v21, %v5332_v56  ;;  %v8549_v56 = vld [vmem:[%s10699_s1 + $0x30] sm:$0xff]  ;;  %v8026_v21 = vpack.c.bf16 %v2900_v20, %v2899_v15  ;;  %v5355_v20 = vld [vmem:[%s10702_s4 + $0x138] sm:$0xff] }
 0x20e   : > { %6876 = vmatprep.mubr.f32.mxu0 %v9502_v39  ;;  %8001 = vmatpush3.bf16.msra.mxu0 %v7998_v12  ;;  %v5334_v39 = vld [vmem:[%s10702_s4 + $0xd0] sm:$0xff]  ;;  %v8544_v12 = vld [vmem:[%s10699_s1 + $0x8] sm:$0xff] }
 0x20f   : > { %8003 = vmatprep.subr.bf16.mxu0 %v8002_v54  ;;  %v8014_v28 = vpack.c.bf16 %v5335_v24, %v5334_v39  ;;  %v2902_v39 = vld [vmem:[%s10702_s4 + $0x18] sm:$0xff]  ;;  %v5354_v15 = vld [vmem:[%s10702_s4 + $0x130] sm:$0xff] }
 0x210   : > { %v8550_v24 = vld [vmem:[%s10699_s1 + $0x38] sm:$0xff] }
 0x211   : > { %6877 = vmatmul.mubr.f32.gmra.mrb[20].mxu0 %v9499_v35  ;;  %v5336_v35 = vld [vmem:[%s10702_s4 + $0xe0] sm:$0xff] }
 0x212   : > { %6879 = vmatprep.mubr.f32.mxu0 %v9514_v44  ;;  %8005 = vmatpush3.bf16.msra.mxu0 %v8002_v54  ;;  %v8547_v54 = vld [vmem:[%s10699_s1 + $0x20] sm:$0xff] }
 0x213   : > { %8007 = vmatprep.subr.bf16.mxu0 %v8006_v60 }
 0x215   : > { %6880 = vmatmul.mubr.f32.gmra.mrb[22].mxu0 %v9511_v7  ;;  %v5337_v7 = vld [vmem:[%s10702_s4 + $0xe8] sm:$0xff] }
 0x216   : > { %8009 = vmatpush3.bf16.msra.mxu0 %v8006_v60  ;;  %v8018_v44 = vpack.c.bf16 %v5337_v7, %v5336_v35  ;;  %v8548_v60 = vld [vmem:[%s10699_s1 + $0x28] sm:$0xff]  ;;  %v2903_v7 = vld [vmem:[%s10702_s4 + $0x20] sm:$0xff] }
 0x217   : > { %8011 = vmatprep.subr.bf16.mxu0 %v8010_v52 }
 0x21a   : > { %8013 = vmatpush3.bf16.msra.mxu0 %v8010_v52  ;;  %v2901_v52 = vld [vmem:[%s10702_s4 + $0x10] sm:$0xff] }
 0x21b   : > { %8015 = vmatprep.subr.bf16.mxu0 %v8014_v28  ;;  %v8030_v35 = vpack.c.bf16 %v2902_v39, %v2901_v52  ;;  %v8086_v52 = vpack.c.bf16 %v5355_v20, %v5354_v15  ;;  %v5356_v39 = vld [vmem:[%s10702_s4 + $0x140] sm:$0xff]  ;;  %v8604_v15 = vld [vmem:[%s10699_s1 + $0x228] sm:$0xff]  ;;  %v8605_v20 = vld [vmem:[%s10699_s1 + $0x230] sm:$0xff] }
 0x21e   : > { %8017 = vmatpush3.bf16.msra.mxu0 %v8014_v28  ;;  %v8551_v28 = vld [vmem:[%s10699_s1 + $0x40] sm:$0xff] }
 0x21f   : > { %8019 = vmatprep.subr.bf16.mxu0 %v8018_v44 }
 0x222   : > { %8021 = vmatpush3.bf16.msra.mxu0 %v8018_v44  ;;  %v2904_v44 = vld [vmem:[%s10702_s4 + $0x28] sm:$0xff] }
 0x223   : > { %8023 = vmatprep.subr.bf16.mxu0 %v8022_v34 }
 0x226   : > { %8025 = vmatpush3.bf16.msra.mxu0 %v8022_v34  ;;  %v8034_v34 = vpack.c.bf16 %v2904_v44, %v2903_v7  ;;  %v8565_v44 = vld [vmem:[%s10699_s1 + $0xb0] sm:$0xff] }
 0x2dc   : > { %v6872_v6 = vpop.f32.mrb[16].mxu0 }
 0x2dd   : > { %v2771_v41 = vadd.f32 %v6872_v6, %v5307_v37  ;;  %v2716_v36 = vpop.f32.mrb[17].mxu0  ;;  %v2906_v6 = vld [vmem:[%s10702_s4 + $0x38] sm:$0xff] }
 0x2de   : > { %v2770_v9 = vadd.f32 %v5307_v37, %v2716_v36  ;;  %v8555_v36 = vld [vmem:[%s10699_s1 + $0x60] sm:$0xff] }
 0x2df   : > { %v2779_v63 = vmax.f32 %v2771_v41, 0.0  ;;  %v8554_v41 = vld [vmem:[%s10699_s1 + $0x58] sm:$0xff] }
 0x2e0   : > { %v2778_v4 = vmax.f32 %v2770_v9, 0.0  ;;  %v6875_v48 = vpop.f32.mrb[18].mxu0 }
 0x2e1   : > { %v2787_v14 = vadd.f32 %v8536_v19, %v2779_v63  ;;  %v2773_v17 = vadd.f32 %v6875_v48, %v5307_v37  ;;  %v2726_v5 = vpop.f32.mrb[19].mxu0  ;;  %v2907_v63 = vld [vmem:[%s10702_s4 + $0x40] sm:$0xff]  ;;  %v8556_v48 = vld [vmem:[%s10699_s1 + $0x68] sm:$0xff]  ;;  %v8557_v19 = vld [vmem:[%s10699_s1 + $0x70] sm:$0xff] }
 0x2e2   : > { %v2786_v0 = vadd.f32 %v8537_v46, %v2778_v4  ;;  %v2772_v25 = vadd.f32 %v5307_v37, %v2726_v5  ;;  %v2908_v4 = vld [vmem:[%s10702_s4 + $0x48] sm:$0xff]  ;;  %v2910_v5 = vld [vmem:[%s10702_s4 + $0x58] sm:$0xff] }
 0x2e3   : > { %v2781_v8 = vmax.f32 %v2773_v17, 0.0  ;;  %v2909_v17 = vld [vmem:[%s10702_s4 + $0x50] sm:$0xff]  ;;  %v8558_v46 = vld [vmem:[%s10699_s1 + $0x78] sm:$0xff] }
 0x2e4   : > { %v9764_v16 = vpack.c.bf16 %v2787_v14, %v2786_v0  ;;  %v2780_v26 = vmax.f32 %v2772_v25, 0.0  ;;  %v6878_v13 = vpop.f32.mrb[20].mxu0  ;;  %v8042_v14 = vpack.c.bf16 %v2908_v4, %v2907_v63  ;;  %v8046_v0 = vpack.c.bf16 %v2910_v5, %v2909_v17  ;;  %v2911_v25 = vld [vmem:[%s10702_s4 + $0x60] sm:$0xff]  ;;  %v8568_v63 = vld [vmem:[%s10699_s1 + $0x108] sm:$0xff]  ;;  %v8570_v17 = vld [vmem:[%s10699_s1 + $0x118] sm:$0xff] }
 0x2e5   : > { %v2789_v33 = vadd.f32 %v8538_v23, %v2781_v8  ;;  %v2775_v42 = vadd.f32 %v6878_v13, %v5307_v37  ;;  %v2736_v30 = vpop.f32.mrb[21].mxu0  ;;  %v2912_v8 = vld [vmem:[%s10702_s4 + $0x68] sm:$0xff]  ;;  %v2913_v13 = vld [vmem:[%s10702_s4 + $0x70] sm:$0xff]  ;;  %v2914_v23 = vld [vmem:[%s10702_s4 + $0x78] sm:$0xff] }
 0x2e6   : > { %v2788_v45 = vadd.f32 %v8539_v38, %v2780_v26  ;;  %v2774_v55 = vadd.f32 %v5307_v37, %v2736_v30  ;;  %7963 = vmatprep.subr.bf16.mxu1 %v9764_v16  ;;  %8155 = vmatprep.subr.bf16.mxu0 %v9764_v16  ;;  %v8050_v26 = vpack.c.bf16 %v2912_v8, %v2911_v25  ;;  %v8573_v25 = vld [vmem:[%s10699_s1 + $0x130] sm:$0xff]  ;;  %v8574_v8 = vld [vmem:[%s10699_s1 + $0x138] sm:$0xff] }
 0x2e7   : > { %v2783_v50 = vmax.f32 %v2775_v42, 0.0  ;;  %7965 = vmatpush3.bf16.msra.mxu1 %v9764_v16 }
 0x2e8   : > { %v9771_v59 = vpack.c.bf16 %v2789_v33, %v2788_v45  ;;  %v2782_v43 = vmax.f32 %v2774_v55, 0.0  ;;  %v6881_v53 = vpop.f32.mrb[22].mxu0  ;;  %v8054_v33 = vpack.c.bf16 %v2914_v23, %v2913_v13  ;;  %v8576_v13 = vld [vmem:[%s10699_s1 + $0x148] sm:$0xff]  ;;  %v8577_v23 = vld [vmem:[%s10699_s1 + $0x150] sm:$0xff] }
 0x2e9   : > { %v2791_v49 = vadd.f32 %v8540_v40, %v2783_v50  ;;  %v2777_v2 = vadd.f32 %v6881_v53, %v5307_v37  ;;  %v2746_v47 = vpop.f32.mrb[23].mxu0  ;;  %v5349_v53 = vld [vmem:[%s10702_s4 + $0x108] sm:$0xff] }
 0x2ea   : > { %v2790_v61 = vadd.f32 %v8541_v1, %v2782_v43  ;;  %v2776_v57 = vadd.f32 %v5307_v37, %v2746_v47  ;;  %7967 = vmatprep.subr.bf16.mxu1 %v9771_v59  ;;  %v2905_v37 = vld [vmem:[%s10702_s4 + $0x30] sm:$0xff]  ;;  %v5348_v43 = vld [vmem:[%s10702_s4 + $0x100] sm:$0xff]  ;;  %v5351_v1 = vld [vmem:[%s10702_s4 + $0x118] sm:$0xff] }
 0x2eb   : > { %v2785_v58 = vmax.f32 %v2777_v2, 0.0  ;;  %7969 = vmatpush3.bf16.msra.mxu1 %v9771_v59  ;;  %v8038_v9 = vpack.c.bf16 %v2906_v6, %v2905_v37  ;;  %v8074_v2 = vpack.c.bf16 %v5349_v53, %v5348_v43  ;;  %v5350_v47 = vld [vmem:[%s10702_s4 + $0x110] sm:$0xff]  ;;  %v8566_v37 = vld [vmem:[%s10699_s1 + $0xb8] sm:$0xff] }
 0x2ec   : > { %v9777_v11 = vpack.c.bf16 %v2791_v49, %v2790_v61  ;;  %v2784_v18 = vmax.f32 %v2776_v57, 0.0  ;;  %v8559_v57 = vld [vmem:[%s10699_s1 + $0x80] sm:$0xff]  ;;  %v8585_v43 = vld [vmem:[%s10699_s1 + $0x190] sm:$0xff]  ;;  %v8586_v53 = vld [vmem:[%s10699_s1 + $0x198] sm:$0xff] }
 0x2ed   : > { %v2793_v62 = vadd.f32 %v8542_v51, %v2785_v58  ;;  %v8560_v51 = vld [vmem:[%s10699_s1 + $0x88] sm:$0xff] }
 0x2ee   : > { %v2792_v29 = vadd.f32 %v8543_v22, %v2784_v18  ;;  %7971 = vmatprep.subr.bf16.mxu1 %v9777_v11  ;;  %v8078_v18 = vpack.c.bf16 %v5351_v1, %v5350_v47  ;;  %v5353_v22 = vld [vmem:[%s10702_s4 + $0x128] sm:$0xff]  ;;  %v8590_v47 = vld [vmem:[%s10699_s1 + $0x1b8] sm:$0xff]  ;;  %v8591_v1 = vld [vmem:[%s10699_s1 + $0x1c0] sm:$0xff] }
 0x2ef   : > { %7973 = vmatpush3.bf16.msra.mxu1 %v9777_v11 }
 0x2f0   : > { %v9783_v3 = vpack.c.bf16 %v2793_v62, %v2792_v29  ;;  %v5352_v62 = vld [vmem:[%s10702_s4 + $0x120] sm:$0xff] }
 0x2f2   : > { %7975 = vmatprep.subr.bf16.mxu1 %v9783_v3 }
 0x2f3   : > { %7977 = vmatpush3.bf16.msra.mxu1 %v9783_v3 }
 0x2f4   : > { %7979 = vmatprep.subr.bf16.mxu1 %v9764_v16 }
 0x2f6   : > { %6899 = vmatmul.mubr.msk.f32.vlgmr.msra.gmra.mrb[56].mxu1 %vm376_vm0, %v8544_v12 }
 0x2f7   : > { %7981 = vmatpush3.bf16.msra.mxu1 %v9764_v16  ;;  %6901 = vmatprep.mubr.msk.f32.mxu1 %vm376_vm0, %v8545_v27  ;;  %v8561_v27 = vld [vmem:[%s10699_s1 + $0x90] sm:$0xff] }
 0x2f8   : > { %7983 = vmatprep.subr.bf16.mxu1 %v9771_v59 }
 0x2fa   : > { %6902 = vmatmul.mubr.msk.f32.gmra.mrb[58].mxu1 %vm376_vm0, %v8546_v10  ;;  %v8082_v10 = vpack.c.bf16 %v5353_v22, %v5352_v62  ;;  %v8597_v62 = vld [vmem:[%s10699_s1 + $0x1f0] sm:$0xff]  ;;  %v8598_v22 = vld [vmem:[%s10699_s1 + $0x1f8] sm:$0xff] }
 0x2fb   : > { %7985 = vmatpush3.bf16.msra.mxu1 %v9771_v59  ;;  %6904 = vmatprep.mubr.msk.f32.mxu1 %vm376_vm0, %v8547_v54  ;;  %v8562_v54 = vld [vmem:[%s10699_s1 + $0x98] sm:$0xff] }
 0x2fc   : > { %7987 = vmatprep.subr.bf16.mxu1 %v9777_v11 }
 0x2fe   : > { %6905 = vmatmul.mubr.msk.f32.gmra.mrb[60].mxu1 %vm376_vm0, %v8548_v60 }
 0x2ff   : > { %7989 = vmatpush3.bf16.msra.mxu1 %v9777_v11  ;;  %6907 = vmatprep.mubr.msk.f32.mxu1 %vm376_vm0, %v8549_v56 }
 0x300   : > { %7991 = vmatprep.subr.bf16.mxu1 %v9783_v3 }
 0x302   : > { %6908 = vmatmul.mubr.msk.f32.gmra.mrb[62].mxu1 %vm376_vm0, %v8550_v24  ;;  %v5357_v24 = vld [vmem:[%s10702_s4 + $0x148] sm:$0xff] }
 0x303   : > { %7993 = vmatpush3.bf16.msra.mxu1 %v9783_v3  ;;  %6926 = vmatprep.mubr.msk.f32.mxu1 %vm376_vm0, %v8551_v28  ;;  %v8564_v28 = vld [vmem:[%s10699_s1 + $0xa8] sm:$0xff] }
 0x304   : > { %8027 = vmatprep.subr.bf16.mxu1 %v8026_v21 }
 0x306   : > { %6927 = vmatmul.mubr.msk.f32.vlgmr.msra.gmra.mrb[64].mxu1 %vm376_vm0, %v8552_v31  ;;  %v8090_v31 = vpack.c.bf16 %v5357_v24, %v5356_v39 }
 0x307   : > { %8029 = vmatpush3.bf16.msra.mxu1 %v8026_v21  ;;  %6929 = vmatprep.mubr.msk.f32.mxu1 %vm376_vm0, %v8553_v32  ;;  %v8563_v21 = vld [vmem:[%s10699_s1 + $0xa0] sm:$0xff]  ;;  %v5358_v32 = vld [vmem:[%s10702_s4 + $0x150] sm:$0xff] }
 0x308   : > { %8031 = vmatprep.subr.bf16.mxu1 %v8030_v35 }
 0x30a   : > { %6930 = vmatmul.mubr.msk.f32.gmra.mrb[66].mxu1 %vm376_vm0, %v8554_v41  ;;  %v8567_v41 = vld [vmem:[%s10699_s1 + $0x100] sm:$0xff] }
 0x30b   : > { %8033 = vmatpush3.bf16.msra.mxu1 %v8030_v35  ;;  %6932 = vmatprep.mubr.msk.f32.mxu1 %vm376_vm0, %v8555_v36  ;;  %v5360_v36 = vld [vmem:[%s10702_s4 + $0x160] sm:$0xff] }
 0x30c   : > { %8035 = vmatprep.subr.bf16.mxu1 %v8034_v34 }
 0x30e   : > { %6933 = vmatmul.mubr.msk.f32.gmra.mrb[68].mxu1 %vm376_vm0, %v8556_v48  ;;  %v8569_v48 = vld [vmem:[%s10699_s1 + $0x110] sm:$0xff] }
 0x30f   : > { %8037 = vmatpush3.bf16.msra.mxu1 %v8034_v34  ;;  %6935 = vmatprep.mubr.msk.f32.mxu1 %vm376_vm0, %v8557_v19  ;;  %v5359_v34 = vld [vmem:[%s10702_s4 + $0x158] sm:$0xff]  ;;  %v5362_v19 = vld [vmem:[%s10702_s4 + $0x170] sm:$0xff] }
 0x310   : > { %8039 = vmatprep.subr.bf16.mxu1 %v8038_v9  ;;  %v8094_v6 = vpack.c.bf16 %v5359_v34, %v5358_v32 }
 0x312   : > { %6936 = vmatmul.mubr.msk.f32.gmra.mrb[70].mxu1 %vm376_vm0, %v8558_v46  ;;  %v8571_v46 = vld [vmem:[%s10699_s1 + $0x120] sm:$0xff] }
 0x313   : > { %8041 = vmatpush3.bf16.msra.mxu1 %v8038_v9  ;;  %v5361_v9 = vld [vmem:[%s10702_s4 + $0x168] sm:$0xff] }
 0x314   : > { %8043 = vmatprep.subr.bf16.mxu1 %v8042_v14  ;;  %v8098_v4 = vpack.c.bf16 %v5361_v9, %v5360_v36 }
 0x317   : > { %8045 = vmatpush3.bf16.msra.mxu1 %v8042_v14  ;;  %v5363_v14 = vld [vmem:[%s10702_s4 + $0x178] sm:$0xff] }
 0x318   : > { %8047 = vmatprep.subr.bf16.mxu1 %v8046_v0  ;;  %v8102_v5 = vpack.c.bf16 %v5363_v14, %v5362_v19  ;;  %v5376_v19 = vld [vmem:[%s10702_s4 + $0x1a0] sm:$0xff]  ;;  %v5377_v14 = vld [vmem:[%s10702_s4 + $0x1a8] sm:$0xff] }
 0x31b   : > { %8049 = vmatpush3.bf16.msra.mxu1 %v8046_v0  ;;  %v8572_v0 = vld [vmem:[%s10699_s1 + $0x128] sm:$0xff] }
 0x31c   : > { %8051 = vmatprep.subr.bf16.mxu1 %v8050_v26 }
 0x31f   : > { %8053 = vmatpush3.bf16.msra.mxu1 %v8050_v26  ;;  %v8575_v26 = vld [vmem:[%s10699_s1 + $0x140] sm:$0xff] }
 0x320   : > { %8055 = vmatprep.subr.bf16.mxu1 %v8054_v33 }
 0x323   : > { %8057 = vmatpush3.bf16.msra.mxu1 %v8054_v33  ;;  %v8578_v33 = vld [vmem:[%s10699_s1 + $0x158] sm:$0xff] }
 0x324   : > { %8059 = vmatprep.subr.bf16.mxu1 %v9764_v16 }
 0x3c9   : > { %v6900_v42 = vpop.f32.mrb[56].mxu1 }
 0x3ca   : > { %v2860_v30 = vpop.f32.mrb[57].mxu1 }
 0x3cb   : > { %7014 = vmatprep.mubr.f32.mxu1 %v2860_v30  ;;  %v8580_v30 = vld [vmem:[%s10699_s1 + $0x168] sm:$0xff] }
 0x3cc   : > { %7015 = vmatmul.mubr.f32.vlgmr.msra.gmra.mrb[72].mxu1 %v6900_v42  ;;  %v8579_v42 = vld [vmem:[%s10699_s1 + $0x160] sm:$0xff] }
 0x3cd   : > { %8061 = vmatpush3.bf16.msra.mxu1 %v9764_v16  ;;  %v6903_v38 = vpop.f32.mrb[58].mxu1 }
 0x3ce   : > { %8063 = vmatprep.subr.bf16.mxu1 %v9771_v59  ;;  %v2870_v45 = vpop.f32.mrb[59].mxu1 }
 0x3cf   : > { %7017 = vmatprep.mubr.f32.mxu1 %v2870_v45  ;;  %v8582_v45 = vld [vmem:[%s10699_s1 + $0x178] sm:$0xff] }
 0x3d0   : > { %7018 = vmatmul.mubr.f32.gmra.mrb[74].mxu1 %v6903_v38  ;;  %v8581_v38 = vld [vmem:[%s10699_s1 + $0x170] sm:$0xff] }
 0x3d1   : > { %8065 = vmatpush3.bf16.msra.mxu1 %v9771_v59  ;;  %v6906_v55 = vpop.f32.mrb[60].mxu1 }
 0x3d2   : > { %8067 = vmatprep.subr.bf16.mxu1 %v9777_v11  ;;  %v2880_v50 = vpop.f32.mrb[61].mxu1 }
 0x3d3   : > { %7020 = vmatprep.mubr.f32.mxu1 %v2880_v50  ;;  %v8584_v50 = vld [vmem:[%s10699_s1 + $0x188] sm:$0xff] }
 0x3d4   : > { %7021 = vmatmul.mubr.f32.gmra.mrb[76].mxu1 %v6906_v55  ;;  %v8583_v55 = vld [vmem:[%s10699_s1 + $0x180] sm:$0xff] }
 0x3d5   : > { %8069 = vmatpush3.bf16.msra.mxu1 %v9777_v11  ;;  %v6909_v40 = vpop.f32.mrb[62].mxu1 }
 0x3d6   : > { %8071 = vmatprep.subr.bf16.mxu1 %v9783_v3  ;;  %v2890_v49 = vpop.f32.mrb[63].mxu1 }
 0x3d7   : > { %7023 = vmatprep.mubr.f32.mxu1 %v2890_v49  ;;  %v8588_v49 = vld [vmem:[%s10699_s1 + $0x1a8] sm:$0xff] }
 0x3d8   : > { %7024 = vmatmul.mubr.f32.gmra.mrb[78].mxu1 %v6909_v40  ;;  %v8587_v40 = vld [vmem:[%s10699_s1 + $0x1a0] sm:$0xff] }
 0x3d9   : > { %8073 = vmatpush3.bf16.msra.mxu1 %v9783_v3  ;;  %v6928_v61 = vpop.f32.mrb[64].mxu1  ;;  %7042 = vmatprep.mubr.msk.f32.mxu1 %vm376_vm0, %v8559_v57  ;;  %v8593_v57 = vld [vmem:[%s10699_s1 + $0x1d0] sm:$0xff] }
 0x3da   : > { %v2981_v58 = vpop.f32.mrb[65].mxu1  ;;  %8075 = vmatprep.subr.bf16.mxu1 %v8074_v2 }
 0x3db   : > { %6970 = vmatprep.mubr.f32.mxu0 %v2981_v58  ;;  %v8594_v58 = vld [vmem:[%s10699_s1 + $0x1d8] sm:$0xff] }
 0x3dc   : > { %6971 = vmatmul.mubr.f32.vlgmr.msra.gmra.mrb[24].mxu0 %v6928_v61  ;;  %7043 = vmatmul.mubr.msk.f32.vlgmr.msra.gmra.mrb[80].mxu1 %vm376_vm0, %v8560_v51  ;;  %v8592_v61 = vld [vmem:[%s10699_s1 + $0x1c8] sm:$0xff] }
 0x3dd   : > { %8077 = vmatpush3.bf16.msra.mxu1 %v8074_v2  ;;  %8157 = vmatpush3.bf16.msra.mxu0 %v9764_v16  ;;  %v6931_v29 = vpop.f32.mrb[66].mxu1  ;;  %v8589_v2 = vld [vmem:[%s10699_s1 + $0x1b0] sm:$0xff]  ;;  %v8596_v51 = vld [vmem:[%s10699_s1 + $0x1e8] sm:$0xff] }
 0x3de   : > { %8159 = vmatprep.subr.bf16.mxu0 %v9771_v59  ;;  %v2991_v12 = vpop.f32.mrb[67].mxu1  ;;  %7045 = vmatprep.mubr.msk.f32.mxu1 %vm376_vm0, %v8561_v27  ;;  %v8601_v27 = vld [vmem:[%s10699_s1 + $0x210] sm:$0xff] }
 0x3df   : > { %6973 = vmatprep.mubr.f32.mxu0 %v2991_v12  ;;  %8079 = vmatprep.subr.bf16.mxu1 %v8078_v18  ;;  %v8600_v12 = vld [vmem:[%s10699_s1 + $0x208] sm:$0xff] }
 0x3e0   : > { %6974 = vmatmul.mubr.f32.gmra.mrb[26].mxu0 %v6931_v29  ;;  %7046 = vmatmul.mubr.msk.f32.gmra.mrb[82].mxu1 %vm376_vm0, %v8562_v54  ;;  %v8599_v29 = vld [vmem:[%s10699_s1 + $0x200] sm:$0xff] }
 0x3e1   : > { %8081 = vmatpush3.bf16.msra.mxu1 %v8078_v18  ;;  %8161 = vmatpush3.bf16.msra.mxu0 %v9771_v59  ;;  %v6934_v60 = vpop.f32.mrb[68].mxu1  ;;  %v8595_v18 = vld [vmem:[%s10699_s1 + $0x1e0] sm:$0xff] }
 0x3e2   : > { %8163 = vmatprep.subr.bf16.mxu0 %v9777_v11  ;;  %v3001_v56 = vpop.f32.mrb[69].mxu1  ;;  %7048 = vmatprep.mubr.msk.f32.mxu1 %vm376_vm0, %v8563_v21  ;;  %v8603_v54 = vld [vmem:[%s10699_s1 + $0x220] sm:$0xff] }
 0x3e3   : > { %6976 = vmatprep.mubr.f32.mxu0 %v3001_v56  ;;  %8083 = vmatprep.subr.bf16.mxu1 %v8082_v10 }
 0x3e4   : > { %6977 = vmatmul.mubr.f32.gmra.mrb[28].mxu0 %v6934_v60  ;;  %7049 = vmatmul.mubr.msk.f32.gmra.mrb[84].mxu1 %vm376_vm0, %v8564_v28  ;;  %v8606_v60 = vld [vmem:[%s10699_s1 + $0x238] sm:$0xff] }
 0x3e5   : > { %8085 = vmatpush3.bf16.msra.mxu1 %v8082_v10  ;;  %8165 = vmatpush3.bf16.msra.mxu0 %v9777_v11  ;;  %v6937_v35 = vpop.f32.mrb[70].mxu1  ;;  %v8602_v10 = vld [vmem:[%s10699_s1 + $0x218] sm:$0xff] }
 0x3e6   : > { %8167 = vmatprep.subr.bf16.mxu0 %v9783_v3  ;;  %v3011_v7 = vpop.f32.mrb[71].mxu1  ;;  %7051 = vmatprep.mubr.msk.f32.mxu1 %vm376_vm0, %v8565_v44 }
 0x3e7   : > { %6979 = vmatprep.mubr.f32.mxu0 %v3011_v7  ;;  %8087 = vmatprep.subr.bf16.mxu1 %v8086_v52 }
 0x3e8   : > { %6980 = vmatmul.mubr.f32.gmra.mrb[30].mxu0 %v6937_v35  ;;  %7052 = vmatmul.mubr.msk.f32.gmra.mrb[86].mxu1 %vm376_vm0, %v8566_v37  ;;  %v5373_v37 = vld [vmem:[%s10702_s4 + $0x188] sm:$0xff] }
 0x3e9   : > { %8089 = vmatpush3.bf16.msra.mxu1 %v8086_v52  ;;  %8169 = vmatpush3.bf16.msra.mxu0 %v9783_v3 }
 0x3ea   : > { %8203 = vmatprep.subr.bf16.mxu0 %v9764_v16  ;;  %8091 = vmatprep.subr.bf16.mxu1 %v8090_v31 }
 0x3eb   : > { %7186 = vmatprep.mubr.msk.f32.mxu0 %vm376_vm0, %v8567_v41 }
 0x3ec   : > { %7187 = vmatmul.mubr.msk.f32.vlgmr.msra.gmra.mrb[32].mxu0 %vm376_vm0, %v8568_v63  ;;  %v5374_v63 = vld [vmem:[%s10702_s4 + $0x190] sm:$0xff] }
 0x3ed   : > { %8093 = vmatpush3.bf16.msra.mxu1 %v8090_v31  ;;  %8205 = vmatpush3.bf16.msra.mxu0 %v9764_v16 }
 0x3ee   : > { %8207 = vmatprep.subr.bf16.mxu0 %v9771_v59  ;;  %8095 = vmatprep.subr.bf16.mxu1 %v8094_v6 }
 0x3ef   : > { %7189 = vmatprep.mubr.msk.f32.mxu0 %vm376_vm0, %v8569_v48 }
 0x3f0   : > { %7190 = vmatmul.mubr.msk.f32.gmra.mrb[34].mxu0 %vm376_vm0, %v8570_v17  ;;  %v8609_v17 = vld [vmem:[%s10699_s1 + $0xd0] sm:$0xff] }
 0x3f1   : > { %8097 = vmatpush3.bf16.msra.mxu1 %v8094_v6  ;;  %8209 = vmatpush3.bf16.msra.mxu0 %v9771_v59 }
 0x3f2   : > { %8211 = vmatprep.subr.bf16.mxu0 %v9777_v11  ;;  %8099 = vmatprep.subr.bf16.mxu1 %v8098_v4 }
 0x3f3   : > { %7192 = vmatprep.mubr.msk.f32.mxu0 %vm376_vm0, %v8571_v46  ;;  %v5378_v46 = vld [vmem:[%s10702_s4 + $0x1b0] sm:$0xff] }
 0x3f4   : > { %7193 = vmatmul.mubr.msk.f32.gmra.mrb[36].mxu0 %vm376_vm0, %v8572_v0  ;;  %v5379_v0 = vld [vmem:[%s10702_s4 + $0x1b8] sm:$0xff] }
 0x3f5   : > { %8101 = vmatpush3.bf16.msra.mxu1 %v8098_v4  ;;  %8213 = vmatpush3.bf16.msra.mxu0 %v9777_v11  ;;  %v5375_v4 = vld [vmem:[%s10702_s4 + $0x198] sm:$0xff] }
 0x3f6   : > { %8215 = vmatprep.subr.bf16.mxu0 %v9783_v3  ;;  %8103 = vmatprep.subr.bf16.mxu1 %v8102_v5  ;;  %v8126_v48 = vpack.c.bf16 %v5375_v4, %v5374_v63  ;;  %v5398_v4 = vld [vmem:[%s10702_s4 + $0x210] sm:$0xff] }
 0x3f7   : > { %7195 = vmatprep.mubr.msk.f32.mxu0 %vm376_vm0, %v8573_v25  ;;  %v8610_v25 = vld [vmem:[%s10699_s1 + $0xd8] sm:$0xff] }
 0x3f8   : > { %7196 = vmatmul.mubr.msk.f32.gmra.mrb[38].mxu0 %vm376_vm0, %v8574_v8  ;;  %v8611_v8 = vld [vmem:[%s10699_s1 + $0xe0] sm:$0xff] }
 0x3f9   : > { %8105 = vmatpush3.bf16.msra.mxu1 %v8102_v5  ;;  %8217 = vmatpush3.bf16.msra.mxu0 %v9783_v3  ;;  %v8130_v5 = vpack.c.bf16 %v5377_v14, %v5376_v19 }
 0x3fa   : > { %8107 = vmatprep.subr.bf16.mxu1 %v9764_v16  ;;  %8251 = vmatprep.subr.bf16.mxu0 %v9764_v16 }
 0x3fb   : > { %7258 = vmatprep.mubr.msk.f32.mxu0 %vm376_vm0, %v8575_v26  ;;  %v8134_v26 = vpack.c.bf16 %v5379_v0, %v5378_v46 }
 0x3fc   : > { %7259 = vmatmul.mubr.msk.f32.vlgmr.msra.gmra.mrb[40].mxu0 %vm376_vm0, %v8576_v13  ;;  %v5380_v13 = vld [vmem:[%s10702_s4 + $0x1c0] sm:$0xff] }
 0x3fd   : > { %8253 = vmatpush3.bf16.msra.mxu0 %v9764_v16  ;;  %7261 = vmatprep.mubr.msk.f32.mxu0 %vm376_vm0, %v8577_v23  ;;  %v5381_v23 = vld [vmem:[%s10702_s4 + $0x1c8] sm:$0xff] }
 0x3fe   : > { %8255 = vmatprep.subr.bf16.mxu0 %v9771_v59 }
 0x400   : > { %7262 = vmatmul.mubr.msk.f32.gmra.mrb[42].mxu0 %vm376_vm0, %v8578_v33  ;;  %v8612_v33 = vld [vmem:[%s10699_s1 + $0xe8] sm:$0xff] }
 0x401   : > { %8257 = vmatpush3.bf16.msra.mxu0 %v9771_v59  ;;  %7264 = vmatprep.mubr.msk.f32.mxu0 %vm376_vm0, %v8579_v42  ;;  %v8613_v42 = vld [vmem:[%s10699_s1 + $0xf0] sm:$0xff] }
 0x402   : > { %8259 = vmatprep.subr.bf16.mxu0 %v9777_v11 }
 0x404   : > { %7265 = vmatmul.mubr.msk.f32.gmra.mrb[44].mxu0 %vm376_vm0, %v8580_v30  ;;  %v8138_v30 = vpack.c.bf16 %v5381_v23, %v5380_v13 }
 0x405   : > { %8261 = vmatpush3.bf16.msra.mxu0 %v9777_v11  ;;  %7267 = vmatprep.mubr.msk.f32.mxu0 %vm376_vm0, %v8581_v38  ;;  %v5382_v38 = vld [vmem:[%s10702_s4 + $0x1d0] sm:$0xff] }
 0x406   : > { %8263 = vmatprep.subr.bf16.mxu0 %v9783_v3 }
 0x408   : > { %7268 = vmatmul.mubr.msk.f32.gmra.mrb[46].mxu0 %vm376_vm0, %v8582_v45  ;;  %v5383_v45 = vld [vmem:[%s10702_s4 + $0x1d8] sm:$0xff] }
 0x409   : > { %8265 = vmatpush3.bf16.msra.mxu0 %v9783_v3  ;;  %7330 = vmatprep.mubr.msk.f32.mxu0 %vm376_vm0, %v8583_v55  ;;  %v8614_v55 = vld [vmem:[%s10699_s1 + $0xf8] sm:$0xff] }
 0x40a   : > { %8299 = vmatprep.subr.bf16.mxu0 %v9764_v16 }
 0x40c   : > { %7331 = vmatmul.mubr.msk.f32.vlgmr.msra.gmra.mrb[48].mxu0 %vm376_vm0, %v8584_v50  ;;  %v8142_v50 = vpack.c.bf16 %v5383_v45, %v5382_v38 }
 0x40d   : > { %8301 = vmatpush3.bf16.msra.mxu0 %v9764_v16  ;;  %7333 = vmatprep.mubr.msk.f32.mxu0 %vm376_vm0, %v8585_v43  ;;  %v5384_v43 = vld [vmem:[%s10702_s4 + $0x1e0] sm:$0xff] }
 0x40e   : > { %8303 = vmatprep.subr.bf16.mxu0 %v9771_v59 }
 0x410   : > { %7334 = vmatmul.mubr.msk.f32.gmra.mrb[50].mxu0 %vm376_vm0, %v8586_v53  ;;  %v5385_v53 = vld [vmem:[%s10702_s4 + $0x1e8] sm:$0xff] }
 0x411   : > { %8305 = vmatpush3.bf16.msra.mxu0 %v9771_v59  ;;  %7336 = vmatprep.mubr.msk.f32.mxu0 %vm376_vm0, %v8587_v40  ;;  %v8146_v40 = vpack.c.bf16 %v5385_v53, %v5384_v43  ;;  %v5407_v43 = vld [vmem:[%s10702_s4 + $0x258] sm:$0xff] }
 0x412   : > { %8307 = vmatprep.subr.bf16.mxu0 %v9777_v11 }
 0x414   : > { %7337 = vmatmul.mubr.msk.f32.gmra.mrb[52].mxu0 %vm376_vm0, %v8588_v49  ;;  %v5386_v49 = vld [vmem:[%s10702_s4 + $0x1f0] sm:$0xff] }
 0x415   : > { %8309 = vmatpush3.bf16.msra.mxu0 %v9777_v11  ;;  %7339 = vmatprep.mubr.msk.f32.mxu0 %vm376_vm0, %v8589_v2  ;;  %v5387_v2 = vld [vmem:[%s10702_s4 + $0x1f8] sm:$0xff] }
 0x416   : > { %8311 = vmatprep.subr.bf16.mxu0 %v9783_v3 }
 0x418   : > { %7340 = vmatmul.mubr.msk.f32.gmra.mrb[54].mxu0 %vm376_vm0, %v8590_v47  ;;  %v8150_v47 = vpack.c.bf16 %v5387_v2, %v5386_v49  ;;  %v5408_v2 = vld [vmem:[%s10702_s4 + $0x260] sm:$0xff] }
 0x419   : > { %8313 = vmatpush3.bf16.msra.mxu0 %v9783_v3  ;;  %7402 = vmatprep.mubr.msk.f32.mxu0 %vm376_vm0, %v8591_v1  ;;  %v5396_v1 = vld [vmem:[%s10702_s4 + $0x200] sm:$0xff] }
 0x41a   : > { %8347 = vmatprep.subr.bf16.mxu0 %v9764_v16 }
 0x41c   : > { %7403 = vmatmul.mubr.msk.f32.vlgmr.msra.gmra.mrb[56].mxu0 %vm376_vm0, %v8592_v61  ;;  %v5397_v61 = vld [vmem:[%s10702_s4 + $0x208] sm:$0xff] }
 0x41d   : > { %8349 = vmatpush3.bf16.msra.mxu0 %v9764_v16  ;;  %7405 = vmatprep.mubr.msk.f32.mxu0 %vm376_vm0, %v8593_v57  ;;  %v8170_v57 = vpack.c.bf16 %v5397_v61, %v5396_v1 }
 0x41e   : > { %8351 = vmatprep.subr.bf16.mxu0 %v9771_v59 }
 0x420   : > { %7406 = vmatmul.mubr.msk.f32.gmra.mrb[58].mxu0 %vm376_vm0, %v8594_v58 }
 0x421   : > { %8353 = vmatpush3.bf16.msra.mxu0 %v9771_v59  ;;  %7408 = vmatprep.mubr.msk.f32.mxu0 %vm376_vm0, %v8595_v18 }
 0x422   : > { %8355 = vmatprep.subr.bf16.mxu0 %v9777_v11 }
 0x424   : > { %7409 = vmatmul.mubr.msk.f32.gmra.mrb[60].mxu0 %vm376_vm0, %v8596_v51 }
 0x425   : > { %8357 = vmatpush3.bf16.msra.mxu0 %v9777_v11  ;;  %7411 = vmatprep.mubr.msk.f32.mxu0 %vm376_vm0, %v8597_v62 }
 0x426   : > { %8359 = vmatprep.subr.bf16.mxu0 %v9783_v3 }
 0x428   : > { %7412 = vmatmul.mubr.msk.f32.gmra.mrb[62].mxu0 %vm376_vm0, %v8598_v22 }
 0x429   : > { %8361 = vmatpush3.bf16.msra.mxu0 %v9783_v3  ;;  %7474 = vmatprep.mubr.msk.f32.mxu0 %vm376_vm0, %v8599_v29 }
 0x42c   : > { %7475 = vmatmul.mubr.msk.f32.vlgmr.msra.gmra.mrb[64].mxu0 %vm376_vm0, %v8600_v12 }
 0x42d   : > { %7477 = vmatprep.mubr.msk.f32.mxu0 %vm376_vm0, %v8601_v27 }
 0x430   : > { %7478 = vmatmul.mubr.msk.f32.gmra.mrb[66].mxu0 %vm376_vm0, %v8602_v10 }
 0x431   : > { %7480 = vmatprep.mubr.msk.f32.mxu0 %vm376_vm0, %v8603_v54 }
 0x434   : > { %7481 = vmatmul.mubr.msk.f32.gmra.mrb[68].mxu0 %vm376_vm0, %v8604_v15 }
 0x435   : > { %7483 = vmatprep.mubr.msk.f32.mxu0 %vm376_vm0, %v8605_v20 }
 0x438   : > { %7484 = vmatmul.mubr.msk.f32.gmra.mrb[70].mxu0 %vm376_vm0, %v8606_v60 }
 0x4af   : > { %v7044_v56 = vpop.f32.mrb[80].mxu1  ;;  %v10191_v21 = vpop.f32.mrb[24].mxu0 }
 0x4b0   : > { %v3313_v52 = vpop.f32.mrb[81].mxu1  ;;  %v10193_v39 = vpop.f32.mrb[25].mxu0 }
 0x4b1   : > { %7086 = vmatprep.mubr.f32.mxu1 %v3313_v52 }
 0x4b2   : > { %7087 = vmatmul.mubr.f32.vlgmr.msra.gmra.mrb[72].mxu1 %v7044_v56 }
 0x4b3   : > { %8109 = vmatpush3.bf16.msra.mxu1 %v9764_v16  ;;  %v7047_v24 = vpop.f32.mrb[82].mxu1  ;;  %v10196_v28 = vpop.f32.mrb[26].mxu0  ;;  %v5372_v16 = vld [vmem:[%s10702_s4 + $0x180] sm:$0xff] }
 0x4b4   : > { %8111 = vmatprep.subr.bf16.mxu1 %v9771_v59  ;;  %v3323_v35 = vpop.f32.mrb[83].mxu1  ;;  %v10199_v7 = vpop.f32.mrb[27].mxu0  ;;  %v8122_v9 = vpack.c.bf16 %v5373_v37, %v5372_v16 }
 0x4b5   : > { %7089 = vmatprep.mubr.f32.mxu1 %v3323_v35 }
 0x4b6   : > { %7090 = vmatmul.mubr.f32.gmra.mrb[74].mxu1 %v7047_v24 }
 0x4b7   : > { %8113 = vmatpush3.bf16.msra.mxu1 %v9771_v59  ;;  %v7050_v44 = vpop.f32.mrb[84].mxu1  ;;  %v10202_v31 = vpop.f32.mrb[28].mxu0 }
 0x4b8   : > { %8115 = vmatprep.subr.bf16.mxu1 %v9777_v11  ;;  %v3333_v32 = vpop.f32.mrb[85].mxu1  ;;  %v10205_v34 = vpop.f32.mrb[29].mxu0 }
 0x4b9   : > { %7092 = vmatprep.mubr.f32.mxu1 %v3333_v32 }
 0x4ba   : > { %7093 = vmatmul.mubr.f32.gmra.mrb[76].mxu1 %v7050_v44 }
 0x4bb   : > { %8117 = vmatpush3.bf16.msra.mxu1 %v9777_v11  ;;  %v7053_v59 = vpop.f32.mrb[86].mxu1  ;;  %v10214_v6 = vpop.f32.mrb[30].mxu0  ;;  %v8607_v11 = vld [vmem:[%s10699_s1 + $0xc0] sm:$0xff] }
 0x4bc   : > { %8119 = vmatprep.subr.bf16.mxu1 %v9783_v3  ;;  %v3343_v41 = vpop.f32.mrb[87].mxu1  ;;  %v10217_v36 = vpop.f32.mrb[31].mxu0 }
 0x4bd   : > { %7095 = vmatprep.mubr.f32.mxu1 %v3343_v41 }
 0x4be   : > { %7096 = vmatmul.mubr.f32.gmra.mrb[78].mxu1 %v7053_v59 }
 0x4bf   : > { %8121 = vmatpush3.bf16.msra.mxu1 %v9783_v3  ;;  %7114 = vmatprep.mubr.msk.f32.mxu1 %vm376_vm0, %v8607_v11  ;;  %v8608_v3 = vld [vmem:[%s10699_s1 + $0xc8] sm:$0xff]  ;;  %v10300_v58 = vpop.f32.mrb[32].mxu0  ;;  %v5399_v11 = vld [vmem:[%s10702_s4 + $0x218] sm:$0xff] }
 0x4c0   : > { %8123 = vmatprep.subr.bf16.mxu1 %v8122_v9  ;;  %v3783_v18 = vpop.f32.mrb[33].mxu0 }
 0x4c2   : > { %7115 = vmatmul.mubr.msk.f32.vlgmr.msra.gmra.mrb[88].mxu1 %vm376_vm0, %v8608_v3  ;;  %v8174_v3 = vpack.c.bf16 %v5399_v11, %v5398_v4  ;;  %v5411_v4 = vld [vmem:[%s10702_s4 + $0x278] sm:$0xff] }
 0x4c3   : > { %7117 = vmatprep.mubr.msk.f32.mxu1 %vm376_vm0, %v8609_v17  ;;  %8125 = vmatpush3.bf16.msra.mxu1 %v8122_v9  ;;  %v10302_v51 = vpop.f32.mrb[34].mxu0  ;;  %v5400_v17 = vld [vmem:[%s10702_s4 + $0x220] sm:$0xff] }
 0x4c4   : > { %8127 = vmatprep.subr.bf16.mxu1 %v8126_v48  ;;  %v10304_v62 = vpop.f32.mrb[35].mxu0 }
 0x4c6   : > { %7118 = vmatmul.mubr.msk.f32.gmra.mrb[90].mxu1 %vm376_vm0, %v8610_v25 }
 0x4c7   : > { %7120 = vmatprep.mubr.msk.f32.mxu1 %vm376_vm0, %v8611_v8  ;;  %8129 = vmatpush3.bf16.msra.mxu1 %v8126_v48  ;;  %v10306_v22 = vpop.f32.mrb[36].mxu0  ;;  %v5402_v8 = vld [vmem:[%s10702_s4 + $0x230] sm:$0xff] }
 0x4c8   : > { %8131 = vmatprep.subr.bf16.mxu1 %v8130_v5  ;;  %v10308_v29 = vpop.f32.mrb[37].mxu0 }
 0x4ca   : > { %7121 = vmatmul.mubr.msk.f32.gmra.mrb[92].mxu1 %vm376_vm0, %v8612_v33 }
 0x4cb   : > { %7123 = vmatprep.mubr.msk.f32.mxu1 %vm376_vm0, %v8613_v42  ;;  %8133 = vmatpush3.bf16.msra.mxu1 %v8130_v5  ;;  %v10310_v12 = vpop.f32.mrb[38].mxu0  ;;  %v5401_v5 = vld [vmem:[%s10702_s4 + $0x228] sm:$0xff]  ;;  %v5404_v42 = vld [vmem:[%s10702_s4 + $0x240] sm:$0xff] }
 0x4cc   : > { %8135 = vmatprep.subr.bf16.mxu1 %v8134_v26  ;;  %v10312_v27 = vpop.f32.mrb[39].mxu0  ;;  %v8178_v0 = vpack.c.bf16 %v5401_v5, %v5400_v17  ;;  %v5421_v17 = vld [vmem:[%s10702_s4 + $0x288] sm:$0xff] }
 0x4ce   : > { %7124 = vmatmul.mubr.msk.f32.gmra.mrb[94].mxu1 %vm376_vm0, %v8614_v55 }
 0x4cf   : > { %8137 = vmatpush3.bf16.msra.mxu1 %v8134_v26  ;;  %v10314_v10 = vpop.f32.mrb[40].mxu0  ;;  %v5403_v26 = vld [vmem:[%s10702_s4 + $0x238] sm:$0xff] }
 0x4d0   : > { %8139 = vmatprep.subr.bf16.mxu1 %v8138_v30  ;;  %v10316_v54 = vpop.f32.mrb[41].mxu0  ;;  %v8182_v23 = vpack.c.bf16 %v5403_v26, %v5402_v8 }
 0x4d3   : > { %8141 = vmatpush3.bf16.msra.mxu1 %v8138_v30  ;;  %v10318_v15 = vpop.f32.mrb[42].mxu0  ;;  %v5405_v30 = vld [vmem:[%s10702_s4 + $0x248] sm:$0xff] }
 0x4d4   : > { %8143 = vmatprep.subr.bf16.mxu1 %v8142_v50  ;;  %v10320_v20 = vpop.f32.mrb[43].mxu0  ;;  %v8186_v45 = vpack.c.bf16 %v5405_v30, %v5404_v42 }
 0x4d7   : > { %8145 = vmatpush3.bf16.msra.mxu1 %v8142_v50  ;;  %v10322_v60 = vpop.f32.mrb[44].mxu0  ;;  %v5406_v50 = vld [vmem:[%s10702_s4 + $0x250] sm:$0xff] }
 0x4d8   : > { %8147 = vmatprep.subr.bf16.mxu1 %v8146_v40  ;;  %v10324_v56 = vpop.f32.mrb[45].mxu0 }
 0x4db   : > { %8149 = vmatpush3.bf16.msra.mxu1 %v8146_v40  ;;  %v10326_v52 = vpop.f32.mrb[46].mxu0  ;;  %v8190_v40 = vpack.c.bf16 %v5407_v43, %v5406_v50  ;;  %v5428_v50 = vld [vmem:[%s10702_s4 + $0x2c0] sm:$0xff]  ;;  %v5429_v43 = vld [vmem:[%s10702_s4 + $0x2c8] sm:$0xff] }
 0x4dc   : > { %8151 = vmatprep.subr.bf16.mxu1 %v8150_v47  ;;  %v10328_v24 = vpop.f32.mrb[47].mxu0 }
 0x4df   : > { %8153 = vmatpush3.bf16.msra.mxu1 %v8150_v47  ;;  %v10330_v35 = vpop.f32.mrb[48].mxu0  ;;  %v5409_v47 = vld [vmem:[%s10702_s4 + $0x268] sm:$0xff] }
 0x4e0   : > { %8171 = vmatprep.subr.bf16.mxu1 %v8170_v57  ;;  %v10332_v44 = vpop.f32.mrb[49].mxu0  ;;  %v8194_v61 = vpack.c.bf16 %v5409_v47, %v5408_v2  ;;  %v5430_v2 = vld [vmem:[%s10702_s4 + $0x2d0] sm:$0xff]  ;;  %v5431_v47 = vld [vmem:[%s10702_s4 + $0x2d8] sm:$0xff] }
 0x4e3   : > { %v10334_v32 = vpop.f32.mrb[50].mxu0 }
 0x4e4   : > { %v10336_v16 = vpop.f32.mrb[51].mxu0 }
 0x4e7   : > { %v10338_v37 = vpop.f32.mrb[52].mxu0 }
 0x4e8   : > { %v10340_v59 = vpop.f32.mrb[53].mxu0 }
 0x4eb   : > { %v10342_v41 = vpop.f32.mrb[54].mxu0 }
 0x4ec   : > { %v10344_v9 = vpop.f32.mrb[55].mxu0 }
 0x4ef   : > { %v10346_v63 = vpop.f32.mrb[56].mxu0 }
 0x4f0   : > { %v10354_v19 = vpop.f32.mrb[57].mxu0 }
 0x4f3   : > { %v10380_v53 = vpop.f32.mrb[58].mxu0 }
 0x4f4   : > { %v10382_v49 = vpop.f32.mrb[59].mxu0 }
 0x4f7   : > { %v10390_v1 = vpop.f32.mrb[60].mxu0 }
 0x595   : > { %v7116_v48 = vpop.f32.mrb[88].mxu1 }
 0x596   : > { %v3548_v14 = vpop.f32.mrb[89].mxu1 }
 0x597   : > { %7158 = vmatprep.mubr.f32.mxu1 %v3548_v14 }
 0x598   : > { %7159 = vmatmul.mubr.f32.vlgmr.msra.gmra.mrb[72].mxu1 %v7116_v48 }
 0x599   : > { %8173 = vmatpush3.bf16.msra.mxu1 %v8170_v57  ;;  %v7119_v46 = vpop.f32.mrb[90].mxu1  ;;  %v10392_v57 = vpop.f32.mrb[61].mxu0 }
 0x59a   : > { %8175 = vmatprep.subr.bf16.mxu1 %v8174_v3  ;;  %v3558_v25 = vpop.f32.mrb[91].mxu1  ;;  %v10400_v11 = vpop.f32.mrb[62].mxu0 }
 0x59b   : > { %7161 = vmatprep.mubr.f32.mxu1 %v3558_v25  ;;  %v10402_v14 = vpop.f32.mrb[63].mxu0  ;;  %v5423_v25 = vld [vmem:[%s10702_s4 + $0x298] sm:$0xff] }
 0x59c   : > { %7162 = vmatmul.mubr.f32.gmra.mrb[74].mxu1 %v7119_v46  ;;  %v10410_v46 = vpop.f32.mrb[64].mxu0 }
 0x59d   : > { %8177 = vmatpush3.bf16.msra.mxu1 %v8174_v3  ;;  %v7122_v13 = vpop.f32.mrb[92].mxu1  ;;  %v5420_v3 = vld [vmem:[%s10702_s4 + $0x280] sm:$0xff]  ;;  %v10418_v8 = vpop.f32.mrb[65].mxu0 }
 0x59e   : > { %8179 = vmatprep.subr.bf16.mxu1 %v8178_v0  ;;  %v3568_v33 = vpop.f32.mrb[93].mxu1  ;;  %v8218_v5 = vpack.c.bf16 %v5421_v17, %v5420_v3  ;;  %v5445_v3 = vld [vmem:[%s10702_s4 + $0x308] sm:$0xff] }
 0x59f   : > { %7164 = vmatprep.mubr.f32.mxu1 %v3568_v33  ;;  %v10427_v33 = vpop.f32.mrb[66].mxu0 }
 0x5a0   : > { %7165 = vmatmul.mubr.f32.gmra.mrb[76].mxu1 %v7122_v13  ;;  %v5424_v13 = vld [vmem:[%s10702_s4 + $0x2a0] sm:$0xff]  ;;  %v10430_v42 = vpop.f32.mrb[67].mxu0 }
 0x5a1   : > { %8181 = vmatpush3.bf16.msra.mxu1 %v8178_v0  ;;  %v7125_v38 = vpop.f32.mrb[94].mxu1  ;;  %v5422_v0 = vld [vmem:[%s10702_s4 + $0x290] sm:$0xff] }
 0x5a2   : > { %8183 = vmatprep.subr.bf16.mxu1 %v8182_v23  ;;  %v3578_v55 = vpop.f32.mrb[95].mxu1  ;;  %v8222_v26 = vpack.c.bf16 %v5423_v25, %v5422_v0  ;;  %v5447_v0 = vld [vmem:[%s10702_s4 + $0x318] sm:$0xff] }
 0x5a3   : > { %7167 = vmatprep.mubr.f32.mxu1 %v3578_v55 }
 0x5a4   : > { %7168 = vmatmul.mubr.f32.gmra.mrb[78].mxu1 %v7125_v38  ;;  %v5426_v38 = vld [vmem:[%s10702_s4 + $0x2b0] sm:$0xff] }
 0x5a5   : > { %8185 = vmatpush3.bf16.msra.mxu1 %v8182_v23  ;;  %7230 = vmatprep.mubr.f32.mxu1 %v3783_v18  ;;  %v5410_v18 = vld [vmem:[%s10702_s4 + $0x270] sm:$0xff]  ;;  %v5425_v23 = vld [vmem:[%s10702_s4 + $0x2a8] sm:$0xff] }
 0x5a6   : > { %8187 = vmatprep.subr.bf16.mxu1 %v8186_v45  ;;  %v8198_v48 = vpack.c.bf16 %v5411_v4, %v5410_v18  ;;  %v8226_v30 = vpack.c.bf16 %v5425_v23, %v5424_v13  ;;  %v5449_v13 = vld [vmem:[%s10702_s4 + $0x328] sm:$0xff] }
 0x5a9   : > { %8189 = vmatpush3.bf16.msra.mxu1 %v8186_v45  ;;  %v5427_v45 = vld [vmem:[%s10702_s4 + $0x2b8] sm:$0xff] }
 0x5aa   : > { %8191 = vmatprep.subr.bf16.mxu1 %v8190_v40  ;;  %v8230_v55 = vpack.c.bf16 %v5427_v45, %v5426_v38  ;;  %v5451_v38 = vld [vmem:[%s10702_s4 + $0x338] sm:$0xff]  ;;  %v5453_v45 = vld [vmem:[%s10702_s4 + $0x348] sm:$0xff] }
 0x5ad   : > { %8193 = vmatpush3.bf16.msra.mxu1 %v8190_v40  ;;  %v8234_v40 = vpack.c.bf16 %v5429_v43, %v5428_v50  ;;  %v5457_v50 = vld [vmem:[%s10702_s4 + $0x368] sm:$0xff] }
 0x5ae   : > { %8195 = vmatprep.subr.bf16.mxu1 %v8194_v61 }
 0x5b1   : > { %8197 = vmatpush3.bf16.msra.mxu1 %v8194_v61  ;;  %v5433_v61 = vld [vmem:[%s10702_s4 + $0x2e8] sm:$0xff] }
 0x5b2   : > { %8199 = vmatprep.subr.bf16.mxu1 %v8198_v48 }
 0x5b5   : > { %8201 = vmatpush3.bf16.msra.mxu1 %v8198_v48  ;;  %v5444_v48 = vld [vmem:[%s10702_s4 + $0x300] sm:$0xff] }
 0x5b6   : > { %8219 = vmatprep.subr.bf16.mxu1 %v8218_v5  ;;  %v8266_v17 = vpack.c.bf16 %v5445_v3, %v5444_v48  ;;  %v5474_v48 = vld [vmem:[%s10702_s4 + $0x3b0] sm:$0xff]  ;;  %v5475_v3 = vld [vmem:[%s10702_s4 + $0x3b8] sm:$0xff] }
 0x5b8   : > { %7231 = vmatmul.mubr.f32.vlgmr.msra.gmra.mrb[72].mxu1 %v10300_v58  ;;  %v10439_v58 = vpop.f32.mrb[68].mxu0 }
 0x5b9   : > { %8221 = vmatpush3.bf16.msra.mxu1 %v8218_v5  ;;  %7233 = vmatprep.mubr.f32.mxu1 %v10304_v62  ;;  %v10442_v62 = vpop.f32.mrb[69].mxu0  ;;  %v5446_v5 = vld [vmem:[%s10702_s4 + $0x310] sm:$0xff] }
 0x5ba   : > { %8223 = vmatprep.subr.bf16.mxu1 %v8222_v26  ;;  %v8270_v25 = vpack.c.bf16 %v5447_v0, %v5446_v5  ;;  %v5479_v5 = vld [vmem:[%s10702_s4 + $0x3d8] sm:$0xff]  ;;  %v5481_v0 = vld [vmem:[%s10702_s4 + $0x3e8] sm:$0xff] }
 0x5bc   : > { %7234 = vmatmul.mubr.f32.gmra.mrb[74].mxu1 %v10302_v51  ;;  %v10451_v51 = vpop.f32.mrb[70].mxu0 }
 0x5bd   : > { %8225 = vmatpush3.bf16.msra.mxu1 %v8222_v26  ;;  %7236 = vmatprep.mubr.f32.mxu1 %v10308_v29  ;;  %v10454_v29 = vpop.f32.mrb[71].mxu0  ;;  %v5448_v26 = vld [vmem:[%s10702_s4 + $0x320] sm:$0xff] }
 0x5be   : > { %8227 = vmatprep.subr.bf16.mxu1 %v8226_v30  ;;  %v8274_v23 = vpack.c.bf16 %v5449_v13, %v5448_v26  ;;  %v5492_v13 = vld [vmem:[%s10702_s4 + $0x400] sm:$0xff] }
 0x5c0   : > { %7237 = vmatmul.mubr.f32.gmra.mrb[76].mxu1 %v10306_v22  ;;  %v8238_v22 = vpack.c.bf16 %v5431_v47, %v5430_v2  ;;  %v5468_v2 = vld [vmem:[%s10702_s4 + $0x380] sm:$0xff]  ;;  %v5469_v47 = vld [vmem:[%s10702_s4 + $0x388] sm:$0xff] }
 0x5c1   : > { %8229 = vmatpush3.bf16.msra.mxu1 %v8226_v30  ;;  %7239 = vmatprep.mubr.f32.mxu1 %v10312_v27  ;;  %v5432_v27 = vld [vmem:[%s10702_s4 + $0x2e0] sm:$0xff]  ;;  %v5450_v30 = vld [vmem:[%s10702_s4 + $0x330] sm:$0xff] }
 0x5c2   : > { %8231 = vmatprep.subr.bf16.mxu1 %v8230_v55  ;;  %v8242_v18 = vpack.c.bf16 %v5433_v61, %v5432_v27  ;;  %v5470_v27 = vld [vmem:[%s10702_s4 + $0x390] sm:$0xff]  ;;  %v5471_v61 = vld [vmem:[%s10702_s4 + $0x398] sm:$0xff] }
 0x5c4   : > { %7240 = vmatmul.mubr.f32.gmra.mrb[78].mxu1 %v10310_v12  ;;  %v5434_v12 = vld [vmem:[%s10702_s4 + $0x2f0] sm:$0xff] }
 0x5c5   : > { %8233 = vmatpush3.bf16.msra.mxu1 %v8230_v55  ;;  %7302 = vmatprep.mubr.f32.mxu1 %v10316_v54  ;;  %v5435_v54 = vld [vmem:[%s10702_s4 + $0x2f8] sm:$0xff] }
 0x5c6   : > { %8235 = vmatprep.subr.bf16.mxu1 %v8234_v40  ;;  %v8246_v4 = vpack.c.bf16 %v5435_v54, %v5434_v12  ;;  %v5455_v55 = vld [vmem:[%s10702_s4 + $0x358] sm:$0xff]  ;;  %v5472_v12 = vld [vmem:[%s10702_s4 + $0x3a0] sm:$0xff]  ;;  %v5473_v54 = vld [vmem:[%s10702_s4 + $0x3a8] sm:$0xff] }
 0x5c9   : > { %8237 = vmatpush3.bf16.msra.mxu1 %v8234_v40 }
 0x5ca   : > { %8239 = vmatprep.subr.bf16.mxu1 %v8238_v22 }
 0x5cd   : > { %8241 = vmatpush3.bf16.msra.mxu1 %v8238_v22  ;;  %v8314_v22 = vpack.c.bf16 %v5469_v47, %v5468_v2  ;;  %v5508_v47 = vld [vmem:[%s10703_s5] ss:$0 sm:$0xff] }
 0x5ce   : > { %8243 = vmatprep.subr.bf16.mxu1 %v8242_v18 }
 0x5d1   : > { %8245 = vmatpush3.bf16.msra.mxu1 %v8242_v18  ;;  %v8318_v18 = vpack.c.bf16 %v5471_v61, %v5470_v27 }
 0x5d2   : > { %8247 = vmatprep.subr.bf16.mxu1 %v8246_v4 }
 0x5d5   : > { %8249 = vmatpush3.bf16.msra.mxu1 %v8246_v4  ;;  %v8322_v4 = vpack.c.bf16 %v5473_v54, %v5472_v12 }
 0x5d6   : > { %8267 = vmatprep.subr.bf16.mxu1 %v8266_v17 }
 0x5d8   : > { %7303 = vmatmul.mubr.f32.vlgmr.msra.gmra.mrb[72].mxu1 %v10314_v10  ;;  %v8278_v10 = vpack.c.bf16 %v5451_v38, %v5450_v30  ;;  %v5494_v38 = vld [vmem:[%s10702_s4 + $0x410] sm:$0xff] }
 0x5d9   : > { %8269 = vmatpush3.bf16.msra.mxu1 %v8266_v17  ;;  %7305 = vmatprep.mubr.f32.mxu1 %v10320_v20  ;;  %v5452_v20 = vld [vmem:[%s10702_s4 + $0x340] sm:$0xff]  ;;  %v5477_v17 = vld [vmem:[%s10702_s4 + $0x3c8] sm:$0xff] }
 0x5da   : > { %8271 = vmatprep.subr.bf16.mxu1 %v8270_v25 }
 0x5dc   : > { %7306 = vmatmul.mubr.f32.gmra.mrb[74].mxu1 %v10318_v15  ;;  %v8282_v15 = vpack.c.bf16 %v5453_v45, %v5452_v20  ;;  %v5496_v45 = vld [vmem:[%s10702_s4 + $0x420] sm:$0xff] }
 0x5dd   : > { %8273 = vmatpush3.bf16.msra.mxu1 %v8270_v25  ;;  %7308 = vmatprep.mubr.f32.mxu1 %v10324_v56  ;;  %v5454_v56 = vld [vmem:[%s10702_s4 + $0x350] sm:$0xff] }
 0x5de   : > { %8275 = vmatprep.subr.bf16.mxu1 %v8274_v23 }
 0x5e0   : > { %7309 = vmatmul.mubr.f32.gmra.mrb[76].mxu1 %v10322_v60  ;;  %v8286_v60 = vpack.c.bf16 %v5455_v55, %v5454_v56  ;;  %v5498_v55 = vld [vmem:[%s10702_s4 + $0x430] sm:$0xff] }
 0x5e1   : > { %8277 = vmatpush3.bf16.msra.mxu1 %v8274_v23  ;;  %7311 = vmatprep.mubr.f32.mxu1 %v10328_v24  ;;  %v5456_v24 = vld [vmem:[%s10702_s4 + $0x360] sm:$0xff]  ;;  %v5493_v23 = vld [vmem:[%s10702_s4 + $0x408] sm:$0xff] }
 0x5e2   : > { %8279 = vmatprep.subr.bf16.mxu1 %v8278_v10  ;;  %v8290_v43 = vpack.c.bf16 %v5457_v50, %v5456_v24  ;;  %v8362_v30 = vpack.c.bf16 %v5493_v23, %v5492_v13  ;;  %v5501_v24 = vld [vmem:[%s10702_s4 + $0x448] sm:$0xff]  ;;  %v5503_v50 = vld [vmem:[%s10702_s4 + $0x458] sm:$0xff] }
 0x5e4   : > { %7312 = vmatmul.mubr.f32.gmra.mrb[78].mxu1 %v10326_v52  ;;  %v5458_v52 = vld [vmem:[%s10702_s4 + $0x370] sm:$0xff] }
 0x5e5   : > { %8281 = vmatpush3.bf16.msra.mxu1 %v8278_v10  ;;  %7374 = vmatprep.mubr.f32.mxu1 %v10332_v44  ;;  %v5459_v44 = vld [vmem:[%s10702_s4 + $0x378] sm:$0xff] }
 0x5e6   : > { %8283 = vmatprep.subr.bf16.mxu1 %v8282_v15  ;;  %v8294_v40 = vpack.c.bf16 %v5459_v44, %v5458_v52  ;;  %v5495_v10 = vld [vmem:[%s10702_s4 + $0x418] sm:$0xff] }
 0x5e7   : > { %v8366_v20 = vpack.c.bf16 %v5495_v10, %v5494_v38 }
 0x5e9   : > { %8285 = vmatpush3.bf16.msra.mxu1 %v8282_v15  ;;  %v5497_v15 = vld [vmem:[%s10702_s4 + $0x428] sm:$0xff] }
 0x5ea   : > { %8287 = vmatprep.subr.bf16.mxu1 %v8286_v60  ;;  %v8370_v56 = vpack.c.bf16 %v5497_v15, %v5496_v45  ;;  %v4929_v45 = vld [vmem:[%s10706_s8] sm:$0x3] }
 0x5ed   : > { %8289 = vmatpush3.bf16.msra.mxu1 %v8286_v60  ;;  %v5499_v60 = vld [vmem:[%s10702_s4 + $0x438] sm:$0xff] }
 0x5ee   : > { %8291 = vmatprep.subr.bf16.mxu1 %v8290_v43 }
 0x5f1   : > { %8293 = vmatpush3.bf16.msra.mxu1 %v8290_v43  ;;  %v5505_v43 = vld [vmem:[%s10702_s4 + $0x468] sm:$0xff] }
 0x5f2   : > { %8295 = vmatprep.subr.bf16.mxu1 %v8294_v40 }
 0x5f5   : > { %8297 = vmatpush3.bf16.msra.mxu1 %v8294_v40 }
 0x5f6   : > { %8315 = vmatprep.subr.bf16.mxu1 %v8314_v22 }
 0x5f8   : > { %7375 = vmatmul.mubr.f32.vlgmr.msra.gmra.mrb[72].mxu1 %v10330_v35  ;;  %v8326_v35 = vpack.c.bf16 %v5475_v3, %v5474_v48 }
 0x5f9   : > { %8317 = vmatpush3.bf16.msra.mxu1 %v8314_v22  ;;  %7377 = vmatprep.mubr.f32.mxu1 %v10336_v16  ;;  %v5476_v16 = vld [vmem:[%s10702_s4 + $0x3c0] sm:$0xff] }
 0x5fa   : > { %8319 = vmatprep.subr.bf16.mxu1 %v8318_v18 }
 0x5fc   : > { %7378 = vmatmul.mubr.f32.gmra.mrb[74].mxu1 %v10334_v32  ;;  %v8330_v32 = vpack.c.bf16 %v5477_v17, %v5476_v16 }
 0x5fd   : > { %8321 = vmatpush3.bf16.msra.mxu1 %v8318_v18  ;;  %7380 = vmatprep.mubr.f32.mxu1 %v10340_v59  ;;  %v5478_v59 = vld [vmem:[%s10702_s4 + $0x3d0] sm:$0xff] }
 0x5fe   : > { %8323 = vmatprep.subr.bf16.mxu1 %v8322_v4 }
 0x600   : > { %7381 = vmatmul.mubr.f32.gmra.mrb[76].mxu1 %v10338_v37  ;;  %v8334_v37 = vpack.c.bf16 %v5479_v5, %v5478_v59 }
 0x601   : > { %8325 = vmatpush3.bf16.msra.mxu1 %v8322_v4  ;;  %7383 = vmatprep.mubr.f32.mxu1 %v10344_v9  ;;  %v5480_v9 = vld [vmem:[%s10702_s4 + $0x3e0] sm:$0xff] }
 0x602   : > { %8327 = vmatprep.subr.bf16.mxu1 %v8326_v35  ;;  %v8338_v25 = vpack.c.bf16 %v5481_v0, %v5480_v9 }
 0x604   : > { %7384 = vmatmul.mubr.f32.gmra.mrb[78].mxu1 %v10342_v41  ;;  %v5482_v41 = vld [vmem:[%s10702_s4 + $0x3f0] sm:$0xff] }
 0x605   : > { %8329 = vmatpush3.bf16.msra.mxu1 %v8326_v35  ;;  %7446 = vmatprep.mubr.f32.mxu1 %v10354_v19  ;;  %v5483_v19 = vld [vmem:[%s10702_s4 + $0x3f8] sm:$0xff] }
 0x606   : > { %8331 = vmatprep.subr.bf16.mxu1 %v8330_v32  ;;  %v8342_v26 = vpack.c.bf16 %v5483_v19, %v5482_v41 }
 0x609   : > { %8333 = vmatpush3.bf16.msra.mxu1 %v8330_v32 }
 0x60a   : > { %8335 = vmatprep.subr.bf16.mxu1 %v8334_v37 }
 0x60d   : > { %8337 = vmatpush3.bf16.msra.mxu1 %v8334_v37 }
 0x60e   : > { %8339 = vmatprep.subr.bf16.mxu1 %v8338_v25 }
 0x611   : > { %8341 = vmatpush3.bf16.msra.mxu1 %v8338_v25 }
 0x612   : > { %8343 = vmatprep.subr.bf16.mxu1 %v8342_v26 }
 0x615   : > { %8345 = vmatpush3.bf16.msra.mxu1 %v8342_v26  ;;  %v4920_v26 = vld [vmem:[%s10704_s6] sm:$0x3] }
 0x616   : > { %8363 = vmatprep.subr.bf16.mxu1 %v8362_v30 }
 0x618   : > { %7447 = vmatmul.mubr.f32.vlgmr.msra.gmra.mrb[72].mxu1 %v10346_v63  ;;  %v8374_v63 = vpack.c.bf16 %v5499_v60, %v5498_v55 }
 0x619   : > { %8365 = vmatpush3.bf16.msra.mxu1 %v8362_v30  ;;  %7449 = vmatprep.mubr.f32.mxu1 %v10382_v49  ;;  %v5500_v49 = vld [vmem:[%s10702_s4 + $0x440] sm:$0xff] }
 0x61a   : > { %8367 = vmatprep.subr.bf16.mxu1 %v8366_v20  ;;  %v4926_v30 = vld [vmem:[%s10705_s7] sm:$0x3] }
 0x61c   : > { %7450 = vmatmul.mubr.f32.gmra.mrb[74].mxu1 %v10380_v53  ;;  %v8378_v53 = vpack.c.bf16 %v5501_v24, %v5500_v49 }
 0x61d   : > { %8369 = vmatpush3.bf16.msra.mxu1 %v8366_v20  ;;  %7452 = vmatprep.mubr.f32.mxu1 %v10392_v57  ;;  %v5502_v57 = vld [vmem:[%s10702_s4 + $0x450] sm:$0xff] }
 0x61e   : > { %8371 = vmatprep.subr.bf16.mxu1 %v8370_v56 }
 0x620   : > { %7453 = vmatmul.mubr.f32.gmra.mrb[76].mxu1 %v10390_v1  ;;  %v8382_v1 = vpack.c.bf16 %v5503_v50, %v5502_v57  ;;  %v4943_v57 = vld [vmem:[%s10707_s9] sm:$0x1] }
 0x621   : > { %8373 = vmatpush3.bf16.msra.mxu1 %v8370_v56  ;;  %7455 = vmatprep.mubr.f32.mxu1 %v10402_v14  ;;  %v5504_v14 = vld [vmem:[%s10702_s4 + $0x460] sm:$0xff] }
 0x622   : > { %8375 = vmatprep.subr.bf16.mxu1 %v8374_v63  ;;  %v8386_v52 = vpack.c.bf16 %v5505_v43, %v5504_v14 }
 0x624   : > { %7456 = vmatmul.mubr.f32.gmra.mrb[78].mxu1 %v10400_v11  ;;  %v5506_v11 = vld [vmem:[%s10702_s4 + $0x470] sm:$0xff] }
 0x625   : > { %8377 = vmatpush3.bf16.msra.mxu1 %v8374_v63  ;;  %7518 = vmatprep.mubr.f32.mxu1 %v10418_v8  ;;  %v5507_v8 = vld [vmem:[%s10702_s4 + $0x478] sm:$0xff] }
 0x626   : > { %8379 = vmatprep.subr.bf16.mxu1 %v8378_v53  ;;  %v8390_v44 = vpack.c.bf16 %v5507_v8, %v5506_v11  ;;  %v4951_v11 = vlaneseq }
 0x628   : > { %v4952_v8 = vshrl.u32 %v4951_v11, 7 }
 0x629   : > { %8381 = vmatpush3.bf16.msra.mxu1 %v8378_v53 }
 0x62a   : > { %8383 = vmatprep.subr.bf16.mxu1 %v8382_v1 }
 0x62d   : > { %8385 = vmatpush3.bf16.msra.mxu1 %v8382_v1 }
 0x62e   : > { %8387 = vmatprep.subr.bf16.mxu1 %v8386_v52 }
 0x631   : > { %8389 = vmatpush3.bf16.msra.mxu1 %v8386_v52 }
 0x632   : > { %8391 = vmatprep.subr.bf16.mxu1 %v8390_v44 }
 0x635   : > { %8393 = vmatpush3.bf16.msra.mxu1 %v8390_v44  ;;  %v4953_v44 = vsub.s32 0, %v4952_v8 }
 0x638   : > { %7519 = vmatmul.mubr.f32.vlgmr.msra.gmra.mrb[72].mxu1 %v10410_v46 }
 0x639   : > { %7521 = vmatprep.mubr.f32.mxu1 %v10430_v42 }
 0x63c   : > { %7522 = vmatmul.mubr.f32.gmra.mrb[74].mxu1 %v10427_v33 }
 0x63d   : > { %7524 = vmatprep.mubr.f32.mxu1 %v10442_v62 }
 0x640   : > { %7525 = vmatmul.mubr.f32.gmra.mrb[76].mxu1 %v10439_v58 }
 0x641   : > { %7527 = vmatprep.mubr.f32.mxu1 %v10454_v29 }
 0x644   : > { %7528 = vmatmul.mubr.f32.gmra.mrb[78].mxu1 %v10451_v51 }
 0x70b   : > { %v7520_v40 = vpop.f32.mrb[72].mxu1 }
 0x70c   : > { %v8394_v2 = vadd.f32 %v7520_v40, %v10191_v21  ;;  %v4845_v46 = vpop.f32.mrb[73].mxu1 }
 0x70d   : > { %v8395_v42 = vadd.f32 %v4845_v46, %v10193_v39 }
 0x70e   : > { %v10656_v22 = vadd.f32 %v8394_v2, %v5508_v47 }
 0x70f   : > { %v10658_v33 = vadd.f32 %v8395_v42, %v5508_v47  ;;  %v7523_v62 = vpop.f32.mrb[74].mxu1 }
 0x710   : > { %v8396_v58 = vadd.f32 %v7523_v62, %v10196_v28  ;;  %v4855_v29 = vpop.f32.mrb[75].mxu1 }
 0x711   : > { %v8397_v51 = vadd.f32 %v4855_v29, %v10199_v7  ;;  %v4907_v21 = vadd.f32 %v10656_v22, %v10658_v33 }
 0x712   : > { %v4902_v54 = vadd.f32 %v8396_v58, %v5508_v47 }
 0x713   : > { %v4901_v27 = vadd.f32 %v8397_v51, %v5508_v47  ;;  %v7526_v61 = vpop.f32.mrb[76].mxu1 }
 0x714   : > { %v8398_v18 = vadd.f32 %v7526_v61, %v10202_v31  ;;  %v4865_v12 = vpop.f32.mrb[77].mxu1  ;;  %v8615_v61 = vld [vmem:[%s8710_s20] sm:$0xff] }
 0x715   : > { %v4908_v39 = vadd.f32 %v4907_v21, %v4901_v27  ;;  %v8399_v4 = vadd.f32 %v4865_v12, %v10205_v34 }
 0x716   : > { %v4904_v17 = vadd.f32 %v8398_v18, %v5508_v47 }
 0x717   : > { %v4903_v48 = vadd.f32 %v8399_v4, %v5508_v47  ;;  %v4909_v3 = vadd.f32 %v4908_v39, %v4902_v54  ;;  %v7529_v35 = vpop.f32.mrb[78].mxu1  ;;  %v8619_v4 = vld [vmem:[%s8710_s20 + $0x20] sm:$0xff] }
 0x718   : > { %v8400_v28 = vadd.f32 %v7529_v35, %v10214_v6  ;;  %v4875_v16 = vpop.f32.mrb[79].mxu1  ;;  %v8620_v35 = vld [vmem:[%s8710_s20 + $0x28] sm:$0xff] }
 0x719   : > { %v4910_v7 = vadd.f32 %v4909_v3, %v4903_v48  ;;  %v8401_v32 = vadd.f32 %v4875_v16, %v10217_v36  ;;  %v8631_v36 = vmov 0   ;;  %v8621_v16 = vld [vmem:[%s8710_s20 + $0x30] sm:$0xff] }
 0x71a   : > { %v4906_v37 = vadd.f32 %v8400_v28, %v5508_v47  ;;  %8531 = vset.pattern.permute.xlu0 %v8631_v36 }
 0x71b   : > { %v4905_v59 = vadd.f32 %v8401_v32, %v5508_v47  ;;  %v4911_v5 = vadd.f32 %v4910_v7, %v4904_v17 }
 0x71d   : > { %v4912_v9 = vadd.f32 %v4911_v5, %v4905_v59 }
 0x71f   : > { %v4913_v31 = vadd.f32 %v4912_v9, %v4906_v37 }
 0x721   : > { %v4914_v0 = vrot.slane %v4913_v31, 4 }
 0x723   : > { %v4915_v25 = vadd.f32 %v4914_v0, %v4913_v31 }
 0x725   : > { %v4916_v41 = vrot.slane %v4915_v25, 2 }
 0x727   : > { %v4917_v19 = vadd.f32 %v4916_v41, %v4915_v25 }
 0x729   : > { %v4918_v34 = vrot.slane %v4917_v19, 1 }
 0x72b   : > { %v4919_v6 = vadd.f32 %v4918_v34, %v4917_v19 }
 0x72d   : > { %v4921_v13 = vmul.f32 %v4920_v26, %v4919_v6 }
 0x72f   : > { %v4923_v23 = vsel %vm4922_vm1, %v4921_v13, 0.0 }
 0x730   : > { %4924 = vadd.xlane.f32.xlu0 %v4923_v23 }
 0x7bd   : > { %v4925_v38 = vpop.xlane.xlu0 %4924 }
 0x7be   : > { %v4927_v10 = vadd.f32 %v4926_v30, %v4925_v38 }
 0x7c0   : > { %v4928_v20 = vmax.f32 %v4927_v10, 0.0 }
 0x7c2   : > { %4932 = vperm.xlu0 %8531, %v4928_v20  }
 0x841   : > { %v4933_v15 = vpop.permute.xlu0 %4932 }
 0x842   : > { %v4935_v56 = vmul.f32 %v4933_v15, %v4929_v45 }
 0x844   : > { %v4936_v55 = vsel %vm4922_vm1, %v4935_v56, 0.0 }
 0x845   : > { %v4937_v60 = vrot.slane %v4936_v55, 4 }
 0x847   : > { %v4938_v63 = vadd.f32 %v4937_v60, %v4936_v55 }
 0x849   : > { %v4939_v49 = vrot.slane %v4938_v63, 2 }
 0x84b   : > { %v4940_v24 = vadd.f32 %v4939_v49, %v4938_v63 }
 0x84d   : > { %v4941_v53 = vrot.slane %v4940_v24, 1 }
 0x84f   : > { %v4942_v50 = vadd.f32 %v4941_v53, %v4940_v24 }
 0x851   : > { %v4944_v1 = vadd.f32 %v4943_v57, %v4942_v50 }
 0x853   : > { %v5509_v14 = vmul.f32 -1.442695, %v4944_v1 }
 0x855   : > { %8532 = vpow2.f32 %v5509_v14 }
 0x85f   : > { %v8533_v43 = vpop.eup %8532 }
 0x860   : > { %v4948_v52 = vadd.f32 1.0, %v8533_v43 }
 0x862   : > { %8534 = vrcp.f32 %v4948_v52 }
 0x86c   : > { %v8535_v40 = vpop.eup %8534 }
 0x86d   : > { %v4954_v2 = vrot.slane %v8535_v40, %v4953_v44 }
 0x86f   : > { %v4955_v47 = vmul.f32 %v4954_v2, %v10658_v33  ;;  %v4956_v46 = vmul.f32 %v4954_v2, %v10656_v22  ;;  %v4957_v42 = vmul.f32 %v4954_v2, %v4901_v27  ;;  %v4958_v62 = vmul.f32 %v4954_v2, %v4902_v54  ;;  %v8616_v33 = vld [vmem:[%s8710_s20 + $0x8] sm:$0xff]  ;;  %v8617_v22 = vld [vmem:[%s8710_s20 + $0x10] sm:$0xff]  ;;  %v8618_v27 = vld [vmem:[%s8710_s20 + $0x18] sm:$0xff] }
 0x870   : > { %v4959_v58 = vmul.f32 %v4954_v2, %v4903_v48  ;;  %v4960_v29 = vmul.f32 %v4954_v2, %v4904_v17  ;;  %v4961_v51 = vmul.f32 %v4954_v2, %v4905_v59  ;;  %v4962_v21 = vmul.f32 %v4954_v2, %v4906_v37  ;;  %v8622_v48 = vld [vmem:[%s8710_s20 + $0x38] sm:$0xff] }
 0x871   : > { %v4963_v18 = vadd.f32 %v8615_v61, %v4955_v47  ;;  %v4964_v12 = vadd.f32 %v8616_v33, %v4956_v46  ;;  %v4965_v39 = vadd.f32 %v8617_v22, %v4957_v42  ;;  %v4966_v54 = vadd.f32 %v8618_v27, %v4958_v62 }
 0x872   : > { %v4967_v3 = vadd.f32 %v8619_v4, %v4959_v58  ;;  %v4968_v28 = vadd.f32 %v8620_v35, %v4960_v29  ;;  %v4969_v7 = vadd.f32 %v8621_v16, %v4961_v51  ;;  %v4970_v32 = vadd.f32 %v8622_v48, %v4962_v21 }
 0x873   : > { %4971 = vst [vmem:[%s359_s11] sm:$0xff] %v4963_v18  ;;  %4972 = vst [vmem:[%s359_s11 + $0x8] sm:$0xff] %v4964_v12 }
 0x874   : > { %4973 = vst [vmem:[%s359_s11 + $0x10] sm:$0xff] %v4965_v39  ;;  %4974 = vst [vmem:[%s359_s11 + $0x18] sm:$0xff] %v4966_v54 }
 0x875   : > { %4975 = vst [vmem:[%s359_s11 + $0x20] sm:$0xff] %v4967_v3  ;;  %4976 = vst [vmem:[%s359_s11 + $0x28] sm:$0xff] %v4968_v28 }
 0x876   : > { %4977 = vst [vmem:[%s359_s11 + $0x30] sm:$0xff] %v4969_v7  ;;  %4978 = vst [vmem:[%s359_s11 + $0x38] sm:$0xff] %v4970_v32 }
 0x877 PF: > { %s20_s13 = sadd.s32 1, %s8629_s13  }
 0x878   : > { %p17_p4 = scmp.ge.s32.totalorder %s20_s13, 4  }
 0x87a   :  { %19 = sbr.rel (!%p17_p4) target bundleno = 1 (0x1), region = 114 }

</bundles_post_ra>
